<compile_context>
chip_gen: v7x
topology: tpu7x:2x2x1
jax: 0.10.0
libtpu: 0.0.40
codegen_flags: <defaults>
</compile_context>

<pallas_src>
import functools

import jax
import jax.numpy as jnp
import numpy as np
from jax.experimental import pallas as pl
from jax.experimental.pallas import tpu as pltpu


# ----------------------------------------------------------------------------
# Fused Pallas kernel: the full DCGRU stack for one time step, one batch tile.
#   refs = (adj_mx (N,N), x_nm (N,BT,Din), h (L,BT,N,U),
#           [wx_ru, ws_ru, wx_c, ws_c, b_ru, b_c] * L,
#           h_out (L,BT,N,U))
# ----------------------------------------------------------------------------
def _encoder_stack_kernel(*refs, K, L, BT, N, U):
    f32 = jnp.float32
    bf16 = jnp.bfloat16
    NB = N * BT

    adj_ref, x_ref, h_ref = refs[0], refs[1], refs[2]
    wrefs = refs[3:3 + 6 * L]
    out_ref = refs[3 + 6 * L]

    # Transposed random-walk matrix (PyTorch's adj_mx); bf16 operand for the MXU.
    adj = adj_ref[...].astype(bf16)                      # (N, N)

    def diffusion_terms(y):
        """Chebyshev diffusion terms y_0..y_K of a node-major (N, BT, F) tensor.

        Each step is a single lane-dense (N,N)@(N, BT*F) matmul; terms stay f32.
        """
        terms = [y]
        if K >= 1:
            y1 = jnp.einsum('nm,mbf->nbf', adj, y.astype(bf16),
                            preferred_element_type=f32)
            terms.append(y1)
            ykm2, ykm1 = y, y1
            for _ in range(2, K + 1):
                yk = 2.0 * jnp.einsum('nm,mbf->nbf', adj, ykm1.astype(bf16),
                                      preferred_element_type=f32) - ykm2
                terms.append(yk)
                ykm2, ykm1 = ykm1, yk
        return terms

    def gconv(terms_x, terms_s, wx_ref, ws_ref, b_ref):
        """sum_k x_k @ Wx[k] + s_k @ Ws[k] + b  (rows = node-major N*BT).

        Per-order accumulation: no concatenated Z is ever materialised.
        """
        acc = jnp.dot(terms_x[0].reshape(NB, -1).astype(bf16), wx_ref[0],
                      preferred_element_type=f32)
        acc = acc + jnp.dot(terms_s[0].reshape(NB, -1).astype(bf16), ws_ref[0],
                            preferred_element_type=f32)
        for k in range(1, K + 1):
            acc = acc + jnp.dot(terms_x[k].reshape(NB, -1).astype(bf16), wx_ref[k],
                                preferred_element_type=f32)
            acc = acc + jnp.dot(terms_s[k].reshape(NB, -1).astype(bf16), ws_ref[k],
                                preferred_element_type=f32)
        return acc + b_ref[...]

    x = x_ref[...]                                       # (N, BT, Din) node-major, f32
    for layer in range(L):
        wx_ru, ws_ru, wx_c, ws_c, b_ru, b_c = wrefs[6 * layer: 6 * layer + 6]

        # Hidden state for this layer: (BT, N, U) -> node-major (N, BT, U).
        h = jnp.transpose(h_ref[layer], (1, 0, 2))

        # x-side diffusion terms are shared by gate and candidate gconvs.
        terms_x = diffusion_terms(x)
        terms_h = diffusion_terms(h)

        # One 2U-wide gate matmul; r / u are lane slices of its output.
        ru = jax.nn.sigmoid(gconv(terms_x, terms_h, wx_ru, ws_ru, b_ru))
        r = ru[:, :U].reshape(N, BT, U)
        u = ru[:, U:].reshape(N, BT, U)

        terms_rh = diffusion_terms(r * h)
        c = jnp.tanh(gconv(terms_x, terms_rh, wx_c, ws_c, b_c)).reshape(N, BT, U)

        h_new = u * h + (1.0 - u) * c                    # (N, BT, U) node-major, f32

        # Writeback in batch-major (BT, N, U); wrapper reshape to (B, N*U) is free.
        out_ref[layer] = jnp.transpose(h_new, (1, 0, 2))

        x = h_new                                        # next layer input, stays in VMEM


# ----------------------------------------------------------------------------
# Wrapper helpers (plain JAX glue)
# ----------------------------------------------------------------------------
def _transposed_random_walk_matrix(adj):
    """adj_mx = (D^-1 (A + I)).T, matching DCGRUCell.forward (rw then .t())."""
    n = adj.shape[0]
    a = adj + jnp.eye(n, dtype=adj.dtype)
    d_inv = 1.0 / jnp.sum(a, axis=1)
    d_inv = jnp.where(jnp.isinf(d_inv), jnp.zeros_like(d_inv), d_inv)
    rw = d_inv[:, None] * a
    return rw.T


def _split_gconv_weight(w, din, num_units, k1):
    """PyTorch gconv weight ((din+U)*(K+1), out) with row index f*(K+1)+k ->
    (Wx, Ws) of shapes (K+1, din, out) and (K+1, U, out)."""
    out = w.shape[-1]
    w3 = w.reshape(din + num_units, k1, out)
    wx = jnp.transpose(w3[:din], (1, 0, 2))
    ws = jnp.transpose(w3[din:], (1, 0, 2))
    return wx, ws


def _xavier_normal(key, shape):
    fan_in, fan_out = shape
    std = (2.0 / (fan_in + fan_out)) ** 0.5
    return std * jax.random.normal(key, shape, dtype=jnp.float32)


def _choose_batch_tile(batch):
    """Smallest multiple-of-8 divisor of batch (best pipelining / both v7x cores),
    falling back to the full batch for awkward sizes."""
    for bt in range(8, batch + 1, 8):
        if batch % bt == 0:
            return bt
    return batch


def _resident_spec(arr):
    """Full-array block with a constant index_map: stays VMEM-resident, not
    re-DMA'd across grid steps."""
    zeros = (0,) * arr.ndim
    return pl.BlockSpec(arr.shape, lambda i: zeros)


class PallasEncoderModel:
    def __init__(self, key, *, num_nodes, rnn_units, input_dim,
                 num_rnn_layers, max_diffusion_step, seq_len, batch_tile=None):
        self.num_nodes = num_nodes
        self.rnn_units = rnn_units
        self.input_dim = input_dim
        self.num_rnn_layers = num_rnn_layers
        self.max_diffusion_step = max_diffusion_step
        self.seq_len = seq_len                    # unused in forward (as in PyTorch)
        self.hidden_state_size = num_nodes * rnn_units
        self.batch_tile = batch_tile

        K1 = max_diffusion_step + 1
        U = rnn_units
        self.kernel_params = []   # per layer: (wx_ru, ws_ru, wx_c, ws_c, b_ru, b_c)
        self.ref_params = []      # per layer: (w_ru, b_ru, w_c, b_c), PyTorch layout
        for layer in range(num_rnn_layers):
            din = input_dim if layer == 0 else U
            fdim = din + U
            key, k_ru, k_c = jax.random.split(key, 3)
            w_ru = _xavier_normal(k_ru, (fdim * K1, 2 * U))      # PyTorch row order f*(K+1)+k
            w_c = _xavier_normal(k_c, (fdim * K1, U))
            b_ru = jnp.ones((2 * U,), jnp.float32)               # bias_start = 1.0
            b_c = jnp.zeros((U,), jnp.float32)                   # bias_start = 0.0
            self.ref_params.append((w_ru, b_ru, w_c, b_c))

            # Split by {input | state} block and diffusion order ONCE at init;
            # store matmul operands in bf16 (f32 accumulation in the kernel).
            wx_ru, ws_ru = _split_gconv_weight(w_ru, din, U, K1)
            wx_c, ws_c = _split_gconv_weight(w_c, din, U, K1)
            self.kernel_params.append((
                wx_ru.astype(jnp.bfloat16), ws_ru.astype(jnp.bfloat16),
                wx_c.astype(jnp.bfloat16), ws_c.astype(jnp.bfloat16),
                b_ru.reshape(1, 2 * U), b_c.reshape(1, U)))

    def compute_support(self, adj):
        """Hoisted: compute the transposed random-walk matrix once per sequence."""
        return _transposed_random_walk_matrix(adj.astype(jnp.float32))

    def __call__(self, inputs, adj=None, hidden_state=None, *, support=None):
        """
        inputs: (B, num_nodes * input_dim)
        adj:    (num_nodes, num_nodes)   (ignored if `support` is given)
        returns (output (B, hidden_state_size),
                 hidden_state (num_rnn_layers, B, hidden_state_size))
        """
        B = inputs.shape[0]
        N, U, L = self.num_nodes, self.rnn_units, self.num_rnn_layers
        Din, K = self.input_dim, self.max_diffusion_step

        if support is None:
            support = self.compute_support(adj)

        # Layer-0 input in node-major layout (tiny; transposed once in XLA).
        x_nm = inputs.astype(jnp.float32).reshape(B, N, Din).transpose(1, 0, 2)

        if hidden_state is None:
            h0 = jnp.zeros((L, B, N, U), dtype=jnp.float32)
        else:
            h0 = hidden_state.astype(jnp.float32).reshape(L, B, N, U)

        bt = self.batch_tile or _choose_batch_tile(B)
        assert B % bt == 0, f"batch {B} not divisible by batch tile {bt}"
        n_tiles = B // bt

        flat_w = [w for lp in self.kernel_params for w in lp]
        w_specs = [_resident_spec(w) for w in flat_w]

        kernel = functools.partial(
            _encoder_stack_kernel, K=K, L=L, BT=bt, N=N, U=U)

        grid_spec = pltpu.PrefetchScalarGridSpec(
            num_scalar_prefetch=0,
            grid=(n_tiles,),
            in_specs=[
                pl.BlockSpec((N, N), lambda i: (0, 0)),               # support (resident)
                pl.BlockSpec((N, bt, Din), lambda i: (0, i, 0)),      # x, node-major
                pl.BlockSpec((L, bt, N, U), lambda i: (0, i, 0, 0)),  # hidden state
            ] + w_specs,
            out_specs=pl.BlockSpec((L, bt, N, U), lambda i: (0, i, 0, 0)),
        )

        h_new = pl.pallas_call(
            kernel,
            out_shape=jax.ShapeDtypeStruct((L, B, N, U), jnp.float32),
            grid_spec=grid_spec,
            compiler_params=pltpu.CompilerParams(
                dimension_semantics=("parallel",),
                # 32 MiB is safe on every chip at these tile sizes; raise towards
                # 64-96 MiB on v6e (128 MiB physical) if a larger batch tile is
                # used; do NOT raise on v7x (64 MiB physical) - shrink the tile.
                vmem_limit_bytes=32 * 1024 * 1024),
        )(support, x_nm, h0, *flat_w)

        hidden = h_new.reshape(L, B, N * U)     # free (contiguous) reshape in XLA
        output = hidden[-1]
        return output, hidden

    # ---------------- pure-JAX reference (mirrors the PyTorch code) ----------------
    def _gconv_ref(self, adj_mx, x_bnf, state_bnf, w, b):
        B = x_bnf.shape[0]
        N, K = self.num_nodes, self.max_diffusion_step
        xs = jnp.concatenate([x_bnf, state_bnf], axis=2)          # (B, N, F)
        fdim = xs.shape[2]
        x0 = jnp.transpose(xs, (1, 2, 0)).reshape(N, fdim * B)
        mats = [x0]
        if K >= 1:
            x1 = adj_mx @ x0
            mats.append(x1)
            xkm2, xkm1 = x0, x1
            for _ in range(2, K + 1):
                xk = 2.0 * (adj_mx @ xkm1) - xkm2
                mats.append(xk)
                xkm2, xkm1 = xkm1, xk
        x = jnp.stack(mats, axis=0).reshape(K + 1, N, fdim, B)
        x = jnp.transpose(x, (3, 1, 2, 0)).reshape(B * N, fdim * (K + 1))
        return (x @ w + b).reshape(B, N, -1)

    def reference_forward(self, inputs, adj, hidden_state=None):
        B = inputs.shape[0]
        N, U, L = self.num_nodes, self.rnn_units, self.num_rnn_layers
        adj_mx = self.compute_support(adj)
        if hidden_state is None:
            hidden_state = jnp.zeros((L, B, N * U), jnp.float32)
        output = inputs.astype(jnp.float32)
        hiddens = []
        for layer in range(L):
            din = self.input_dim if layer == 0 else U
            x = output.reshape(B, N, din)
            h = hidden_state[layer].reshape(B, N, U)
            w_ru, b_ru, w_c, b_c = self.ref_params[layer]
            ru = jax.nn.sigmoid(self._gconv_ref(adj_mx, x, h, w_ru, b_ru))
            r, u = ru[..., :U], ru[..., U:]
            c = jnp.tanh(self._gconv_ref(adj_mx, x, r * h, w_c, b_c))
            h_new = u * h + (1.0 - u) * c
            h_flat = h_new.reshape(B, N * U)
            hiddens.append(h_flat)
            output = h_flat
        return output, jnp.stack(hiddens)


# ----------------------------------------------------------------------------
if __name__ == "__main__":
    num_nodes = 8
    rnn_units = 32
    input_dim = 2
    num_rnn_layers = 2
    max_diffusion_step = 2
    seq_len = 8
    batch = 16          # tiled as 2 grid steps of 8 (exercises the batch grid)

    key = jax.random.PRNGKey(0)
    key, k_model, k_x, k_x2, k_adj = jax.random.split(key, 5)

    model = PallasEncoderModel(
        k_model,
        num_nodes=num_nodes,
        rnn_units=rnn_units,
        input_dim=input_dim,
        num_rnn_layers=num_rnn_layers,
        max_diffusion_step=max_diffusion_step,
        seq_len=seq_len,
        batch_tile=8,
    )

    inputs = jax.random.normal(k_x, (batch, num_nodes * input_dim), dtype=jnp.float32)
    inputs2 = jax.random.normal(k_x2, (batch, num_nodes * input_dim), dtype=jnp.float32)
    adj = jax.nn.relu(jax.random.normal(k_adj, (num_nodes, num_nodes), dtype=jnp.float32))

    # Support matrix computed once per sequence (hoisted out of the per-step call).
    support = model.compute_support(adj)

    # step 1 (hidden_state = None)
    out1, hid1 = model(inputs, adj, support=support)
    out1 = jax.block_until_ready(out1)
    hid1 = jax.block_until_ready(hid1)

    # step 2, feeding the returned hidden state back in (same compiled kernel)
    out2, hid2 = model(inputs2, adj, hid1, support=support)
    out2 = jax.block_until_ready(out2)
    hid2 = jax.block_until_ready(hid2)

    assert out1.shape == (batch, num_nodes * rnn_units)
    assert hid1.shape == (num_rnn_layers, batch, num_nodes * rnn_units)
    assert bool(jnp.all(jnp.isfinite(out2))) and bool(jnp.all(jnp.isfinite(hid2)))

    # numerical check against a pure-JAX port of the PyTorch forward
    ref_out1, ref_hid1 = model.reference_forward(inputs, adj)
    ref_out2, ref_hid2 = model.reference_forward(inputs2, adj, hid1)
    np.testing.assert_allclose(np.asarray(hid1), np.asarray(ref_hid1), atol=3e-2, rtol=0)
    np.testing.assert_allclose(np.asarray(hid2), np.asarray(ref_hid2), atol=3e-2, rtol=0)

    print("KERNEL_OK")
</pallas_src>

<mosaic_0001>
module attributes {stable_mosaic.version = 11 : i64} {
  func.func @_encoder_stack_kernel(%arg0: i32, %arg1: memref<8x8xf32, #tpu.memory_space<vmem>>, %arg2: memref<8x8x2xf32, #tpu.memory_space<vmem>>, %arg3: memref<2x8x8x32xf32, #tpu.memory_space<vmem>>, %arg4: memref<3x2x64xbf16, #tpu.memory_space<vmem>>, %arg5: memref<3x32x64xbf16, #tpu.memory_space<vmem>>, %arg6: memref<3x2x32xbf16, #tpu.memory_space<vmem>>, %arg7: memref<3x32x32xbf16, #tpu.memory_space<vmem>>, %arg8: memref<1x64xf32, #tpu.memory_space<vmem>>, %arg9: memref<1x32xf32, #tpu.memory_space<vmem>>, %arg10: memref<3x32x64xbf16, #tpu.memory_space<vmem>>, %arg11: memref<3x32x64xbf16, #tpu.memory_space<vmem>>, %arg12: memref<3x32x32xbf16, #tpu.memory_space<vmem>>, %arg13: memref<3x32x32xbf16, #tpu.memory_space<vmem>>, %arg14: memref<1x64xf32, #tpu.memory_space<vmem>>, %arg15: memref<1x32xf32, #tpu.memory_space<vmem>>, %arg16: memref<2x8x8x32xf32, #tpu.memory_space<vmem>>) attributes {dimension_semantics = [#tpu.dimension_semantics<parallel>], iteration_bounds = array<i64: 2>, scalar_prefetch = 0 : i64, scratch_operands = 0 : i64, tpu.core_type = #tpu.core_type<tc>, window_params = [{pipeline_mode = #tpu.pipeline_mode<synchronous>, transform_indices = @transform_0, window_bounds = array<i64: 8, 8>}, {transform_indices = @transform_1, window_bounds = array<i64: 8, 8, 2>}, {transform_indices = @transform_2, window_bounds = array<i64: 2, 8, 8, 32>}, {pipeline_mode = #tpu.pipeline_mode<synchronous>, transform_indices = @transform_3, window_bounds = array<i64: 3, 2, 64>}, {pipeline_mode = #tpu.pipeline_mode<synchronous>, transform_indices = @transform_4, window_bounds = array<i64: 3, 32, 64>}, {pipeline_mode = #tpu.pipeline_mode<synchronous>, transform_indices = @transform_5, window_bounds = array<i64: 3, 2, 32>}, {pipeline_mode = #tpu.pipeline_mode<synchronous>, transform_indices = @transform_6, window_bounds = array<i64: 3, 32, 32>}, {pipeline_mode = #tpu.pipeline_mode<synchronous>, transform_indices = @transform_7, window_bounds = array<i64: 1, 64>}, {pipeline_mode = #tpu.pipeline_mode<synchronous>, transform_indices = @transform_8, window_bounds = array<i64: 1, 32>}, {pipeline_mode = #tpu.pipeline_mode<synchronous>, transform_indices = @transform_9, window_bounds = array<i64: 3, 32, 64>}, {pipeline_mode = #tpu.pipeline_mode<synchronous>, transform_indices = @transform_10, window_bounds = array<i64: 3, 32, 64>}, {pipeline_mode = #tpu.pipeline_mode<synchronous>, transform_indices = @transform_11, window_bounds = array<i64: 3, 32, 32>}, {pipeline_mode = #tpu.pipeline_mode<synchronous>, transform_indices = @transform_12, window_bounds = array<i64: 3, 32, 32>}, {pipeline_mode = #tpu.pipeline_mode<synchronous>, transform_indices = @transform_13, window_bounds = array<i64: 1, 64>}, {pipeline_mode = #tpu.pipeline_mode<synchronous>, transform_indices = @transform_14, window_bounds = array<i64: 1, 32>}, {transform_indices = @transform_15, window_bounds = array<i64: 2, 8, 8, 32>}]} {
    %c0 = arith.constant 0 : index
    %c0_0 = arith.constant 0 : index
    %0 = vector.load %arg1[%c0, %c0_0] : memref<8x8xf32, #tpu.memory_space<vmem>>, vector<8x8xf32>
    %1 = arith.truncf %0 : vector<8x8xf32> to vector<8x8xbf16>
    %c0_1 = arith.constant 0 : index
    %c0_2 = arith.constant 0 : index
    %c0_3 = arith.constant 0 : index
    %2 = vector.load %arg2[%c0_1, %c0_2, %c0_3] : memref<8x8x2xf32, #tpu.memory_space<vmem>>, vector<8x8x2xf32>
    %c0_4 = arith.constant 0 : index
    %c0_5 = arith.constant 0 : index
    %c0_6 = arith.constant 0 : index
    %c0_7 = arith.constant 0 : index
    %3 = vector.load %arg3[%c0_4, %c0_5, %c0_6, %c0_7] : memref<2x8x8x32xf32, #tpu.memory_space<vmem>>, vector<1x8x8x32xf32>
    %4 = vector.shape_cast %3 : vector<1x8x8x32xf32> to vector<8x8x32xf32>
    %5 = tpu.transpose %4, [1, 0, 2] : vector<8x8x32xf32> -> vector<8x8x32xf32>
    %6 = arith.truncf %2 : vector<8x8x2xf32> to vector<8x8x2xbf16>
    "tpu.trace_start"() <{level = 10 : i32, message = "nm,mbf->nbf"}> : () -> ()
    %cst = arith.constant dense<0.000000e+00> : vector<8x8x2xf32>
    %7 = tpu.matmul %1, %6, %cst {dimension_numbers = #tpu.dot_dimension_numbers<[1], [0], [0], [1, 2], [0, 0, 1, 1, 1, 2], [], []>} : vector<8x8xbf16>, vector<8x8x2xbf16>, vector<8x8x2xf32> -> vector<8x8x2xf32>
    "tpu.trace_stop"() : () -> ()
    %8 = arith.truncf %7 : vector<8x8x2xf32> to vector<8x8x2xbf16>
    "tpu.trace_start"() <{level = 10 : i32, message = "nm,mbf->nbf"}> : () -> ()
    %cst_8 = arith.constant dense<0.000000e+00> : vector<8x8x2xf32>
    %9 = tpu.matmul %1, %8, %cst_8 {dimension_numbers = #tpu.dot_dimension_numbers<[1], [0], [0], [1, 2], [0, 0, 1, 1, 1, 2], [], []>} : vector<8x8xbf16>, vector<8x8x2xbf16>, vector<8x8x2xf32> -> vector<8x8x2xf32>
    "tpu.trace_stop"() : () -> ()
    %cst_9 = arith.constant 2.000000e+00 : f32
    %10 = vector.broadcast %cst_9 : f32 to vector<8x8x2xf32>
    %11 = arith.mulf %10, %9 : vector<8x8x2xf32>
    %12 = arith.subf %11, %2 : vector<8x8x2xf32>
    %13 = arith.truncf %5 : vector<8x8x32xf32> to vector<8x8x32xbf16>
    "tpu.trace_start"() <{level = 10 : i32, message = "nm,mbf->nbf"}> : () -> ()
    %cst_10 = arith.constant dense<0.000000e+00> : vector<8x8x32xf32>
    %14 = tpu.matmul %1, %13, %cst_10 {dimension_numbers = #tpu.dot_dimension_numbers<[1], [0], [0], [1, 2], [0, 0, 1, 1, 1, 2], [], []>} : vector<8x8xbf16>, vector<8x8x32xbf16>, vector<8x8x32xf32> -> vector<8x8x32xf32>
    "tpu.trace_stop"() : () -> ()
    %15 = arith.truncf %14 : vector<8x8x32xf32> to vector<8x8x32xbf16>
    "tpu.trace_start"() <{level = 10 : i32, message = "nm,mbf->nbf"}> : () -> ()
    %cst_11 = arith.constant dense<0.000000e+00> : vector<8x8x32xf32>
    %16 = tpu.matmul %1, %15, %cst_11 {dimension_numbers = #tpu.dot_dimension_numbers<[1], [0], [0], [1, 2], [0, 0, 1, 1, 1, 2], [], []>} : vector<8x8xbf16>, vector<8x8x32xbf16>, vector<8x8x32xf32> -> vector<8x8x32xf32>
    "tpu.trace_stop"() : () -> ()
    %cst_12 = arith.constant 2.000000e+00 : f32
    %17 = vector.broadcast %cst_12 : f32 to vector<8x8x32xf32>
    %18 = arith.mulf %17, %16 : vector<8x8x32xf32>
    %19 = arith.subf %18, %5 : vector<8x8x32xf32>
    %20 = vector.shape_cast %2 : vector<8x8x2xf32> to vector<64x2xf32>
    %21 = arith.truncf %20 : vector<64x2xf32> to vector<64x2xbf16>
    %c0_13 = arith.constant 0 : index
    %c0_14 = arith.constant 0 : index
    %c0_15 = arith.constant 0 : index
    %22 = vector.load %arg4[%c0_13, %c0_14, %c0_15] : memref<3x2x64xbf16, #tpu.memory_space<vmem>>, vector<1x2x64xbf16>
    %23 = vector.shape_cast %22 : vector<1x2x64xbf16> to vector<2x64xbf16>
    %cst_16 = arith.constant dense<0.000000e+00> : vector<64x64xf32>
    %24 = tpu.matmul %21, %23, %cst_16 {dimension_numbers = #tpu.dot_dimension_numbers<[1], [0], [0], [1], [0, 0, 1, 1], [], []>} : vector<64x2xbf16>, vector<2x64xbf16>, vector<64x64xf32> -> vector<64x64xf32>
    %25 = vector.shape_cast %5 : vector<8x8x32xf32> to vector<64x32xf32>
    %26 = arith.truncf %25 : vector<64x32xf32> to vector<64x32xbf16>
    %c0_17 = arith.constant 0 : index
    %c0_18 = arith.constant 0 : index
    %c0_19 = arith.constant 0 : index
    %27 = vector.load %arg5[%c0_17, %c0_18, %c0_19] : memref<3x32x64xbf16, #tpu.memory_space<vmem>>, vector<1x32x64xbf16>
    %28 = vector.shape_cast %27 : vector<1x32x64xbf16> to vector<32x64xbf16>
    %cst_20 = arith.constant dense<0.000000e+00> : vector<64x64xf32>
    %29 = tpu.matmul %26, %28, %cst_20 {dimension_numbers = #tpu.dot_dimension_numbers<[1], [0], [0], [1], [0, 0, 1, 1], [], []>} : vector<64x32xbf16>, vector<32x64xbf16>, vector<64x64xf32> -> vector<64x64xf32>
    %30 = arith.addf %24, %29 : vector<64x64xf32>
    %31 = vector.shape_cast %7 : vector<8x8x2xf32> to vector<64x2xf32>
    %32 = arith.truncf %31 : vector<64x2xf32> to vector<64x2xbf16>
    %c1 = arith.constant 1 : index
    %c0_21 = arith.constant 0 : index
    %c0_22 = arith.constant 0 : index
    %33 = vector.load %arg4[%c1, %c0_21, %c0_22] : memref<3x2x64xbf16, #tpu.memory_space<vmem>>, vector<1x2x64xbf16>
    %34 = vector.shape_cast %33 : vector<1x2x64xbf16> to vector<2x64xbf16>
    %cst_23 = arith.constant dense<0.000000e+00> : vector<64x64xf32>
    %35 = tpu.matmul %32, %34, %cst_23 {dimension_numbers = #tpu.dot_dimension_numbers<[1], [0], [0], [1], [0, 0, 1, 1], [], []>} : vector<64x2xbf16>, vector<2x64xbf16>, vector<64x64xf32> -> vector<64x64xf32>
    %36 = arith.addf %30, %35 : vector<64x64xf32>
    %37 = vector.shape_cast %14 : vector<8x8x32xf32> to vector<64x32xf32>
    %38 = arith.truncf %37 : vector<64x32xf32> to vector<64x32xbf16>
    %c1_24 = arith.constant 1 : index
    %c0_25 = arith.constant 0 : index
    %c0_26 = arith.constant 0 : index
    %39 = vector.load %arg5[%c1_24, %c0_25, %c0_26] : memref<3x32x64xbf16, #tpu.memory_space<vmem>>, vector<1x32x64xbf16>
    %40 = vector.shape_cast %39 : vector<1x32x64xbf16> to vector<32x64xbf16>
    %cst_27 = arith.constant dense<0.000000e+00> : vector<64x64xf32>
    %41 = tpu.matmul %38, %40, %cst_27 {dimension_numbers = #tpu.dot_dimension_numbers<[1], [0], [0], [1], [0, 0, 1, 1], [], []>} : vector<64x32xbf16>, vector<32x64xbf16>, vector<64x64xf32> -> vector<64x64xf32>
    %42 = arith.addf %36, %41 : vector<64x64xf32>
    %43 = vector.shape_cast %12 : vector<8x8x2xf32> to vector<64x2xf32>
    %44 = arith.truncf %43 : vector<64x2xf32> to vector<64x2xbf16>
    %c2 = arith.constant 2 : index
    %c0_28 = arith.constant 0 : index
    %c0_29 = arith.constant 0 : index
    %45 = vector.load %arg4[%c2, %c0_28, %c0_29] : memref<3x2x64xbf16, #tpu.memory_space<vmem>>, vector<1x2x64xbf16>
    %46 = vector.shape_cast %45 : vector<1x2x64xbf16> to vector<2x64xbf16>
    %cst_30 = arith.constant dense<0.000000e+00> : vector<64x64xf32>
    %47 = tpu.matmul %44, %46, %cst_30 {dimension_numbers = #tpu.dot_dimension_numbers<[1], [0], [0], [1], [0, 0, 1, 1], [], []>} : vector<64x2xbf16>, vector<2x64xbf16>, vector<64x64xf32> -> vector<64x64xf32>
    %48 = arith.addf %42, %47 : vector<64x64xf32>
    %49 = vector.shape_cast %19 : vector<8x8x32xf32> to vector<64x32xf32>
    %50 = arith.truncf %49 : vector<64x32xf32> to vector<64x32xbf16>
    %c2_31 = arith.constant 2 : index
    %c0_32 = arith.constant 0 : index
    %c0_33 = arith.constant 0 : index
    %51 = vector.load %arg5[%c2_31, %c0_32, %c0_33] : memref<3x32x64xbf16, #tpu.memory_space<vmem>>, vector<1x32x64xbf16>
    %52 = vector.shape_cast %51 : vector<1x32x64xbf16> to vector<32x64xbf16>
    %cst_34 = arith.constant dense<0.000000e+00> : vector<64x64xf32>
    %53 = tpu.matmul %50, %52, %cst_34 {dimension_numbers = #tpu.dot_dimension_numbers<[1], [0], [0], [1], [0, 0, 1, 1], [], []>} : vector<64x32xbf16>, vector<32x64xbf16>, vector<64x64xf32> -> vector<64x64xf32>
    %54 = arith.addf %48, %53 : vector<64x64xf32>
    %c0_35 = arith.constant 0 : index
    %c0_36 = arith.constant 0 : index
    %55 = vector.load %arg8[%c0_35, %c0_36] : memref<1x64xf32, #tpu.memory_space<vmem>>, vector<1x64xf32>
    %56 = vector.broadcast %55 : vector<1x64xf32> to vector<64x64xf32>
    %57 = arith.addf %54, %56 : vector<64x64xf32>
    %58 = arith.negf %57 : vector<64x64xf32>
    %59 = math.exp %58 : vector<64x64xf32>
    %cst_37 = arith.constant 1.000000e+00 : f32
    %60 = vector.broadcast %cst_37 : f32 to vector<64x64xf32>
    %61 = arith.addf %60, %59 : vector<64x64xf32>
    %62 = arith.divf %60, %61 : vector<64x64xf32>
    %63 = vector.extract_strided_slice %62 {offsets = [0, 0], sizes = [64, 32], strides = [1, 1]} : vector<64x64xf32> to vector<64x32xf32>
    %64 = vector.shape_cast %63 : vector<64x32xf32> to vector<8x8x32xf32>
    %65 = vector.extract_strided_slice %62 {offsets = [0, 32], sizes = [64, 32], strides = [1, 1]} : vector<64x64xf32> to vector<64x32xf32>
    %66 = vector.shape_cast %65 : vector<64x32xf32> to vector<8x8x32xf32>
    %67 = arith.mulf %64, %5 : vector<8x8x32xf32>
    %68 = arith.truncf %67 : vector<8x8x32xf32> to vector<8x8x32xbf16>
    "tpu.trace_start"() <{level = 10 : i32, message = "nm,mbf->nbf"}> : () -> ()
    %cst_38 = arith.constant dense<0.000000e+00> : vector<8x8x32xf32>
    %69 = tpu.matmul %1, %68, %cst_38 {dimension_numbers = #tpu.dot_dimension_numbers<[1], [0], [0], [1, 2], [0, 0, 1, 1, 1, 2], [], []>} : vector<8x8xbf16>, vector<8x8x32xbf16>, vector<8x8x32xf32> -> vector<8x8x32xf32>
    "tpu.trace_stop"() : () -> ()
    %70 = arith.truncf %69 : vector<8x8x32xf32> to vector<8x8x32xbf16>
    "tpu.trace_start"() <{level = 10 : i32, message = "nm,mbf->nbf"}> : () -> ()
    %cst_39 = arith.constant dense<0.000000e+00> : vector<8x8x32xf32>
    %71 = tpu.matmul %1, %70, %cst_39 {dimension_numbers = #tpu.dot_dimension_numbers<[1], [0], [0], [1, 2], [0, 0, 1, 1, 1, 2], [], []>} : vector<8x8xbf16>, vector<8x8x32xbf16>, vector<8x8x32xf32> -> vector<8x8x32xf32>
    "tpu.trace_stop"() : () -> ()
    %cst_40 = arith.constant 2.000000e+00 : f32
    %72 = vector.broadcast %cst_40 : f32 to vector<8x8x32xf32>
    %73 = arith.mulf %72, %71 : vector<8x8x32xf32>
    %74 = arith.subf %73, %67 : vector<8x8x32xf32>
    %75 = vector.shape_cast %2 : vector<8x8x2xf32> to vector<64x2xf32>
    %76 = arith.truncf %75 : vector<64x2xf32> to vector<64x2xbf16>
    %c0_41 = arith.constant 0 : index
    %c0_42 = arith.constant 0 : index
    %c0_43 = arith.constant 0 : index
    %77 = vector.load %arg6[%c0_41, %c0_42, %c0_43] : memref<3x2x32xbf16, #tpu.memory_space<vmem>>, vector<1x2x32xbf16>
    %78 = vector.shape_cast %77 : vector<1x2x32xbf16> to vector<2x32xbf16>
    %cst_44 = arith.constant dense<0.000000e+00> : vector<64x32xf32>
    %79 = tpu.matmul %76, %78, %cst_44 {dimension_numbers = #tpu.dot_dimension_numbers<[1], [0], [0], [1], [0, 0, 1, 1], [], []>} : vector<64x2xbf16>, vector<2x32xbf16>, vector<64x32xf32> -> vector<64x32xf32>
    %80 = vector.shape_cast %67 : vector<8x8x32xf32> to vector<64x32xf32>
    %81 = arith.truncf %80 : vector<64x32xf32> to vector<64x32xbf16>
    %c0_45 = arith.constant 0 : index
    %c0_46 = arith.constant 0 : index
    %c0_47 = arith.constant 0 : index
    %82 = vector.load %arg7[%c0_45, %c0_46, %c0_47] : memref<3x32x32xbf16, #tpu.memory_space<vmem>>, vector<1x32x32xbf16>
    %83 = vector.shape_cast %82 : vector<1x32x32xbf16> to vector<32x32xbf16>
    %cst_48 = arith.constant dense<0.000000e+00> : vector<64x32xf32>
    %84 = tpu.matmul %81, %83, %cst_48 {dimension_numbers = #tpu.dot_dimension_numbers<[1], [0], [0], [1], [0, 0, 1, 1], [], []>} : vector<64x32xbf16>, vector<32x32xbf16>, vector<64x32xf32> -> vector<64x32xf32>
    %85 = arith.addf %79, %84 : vector<64x32xf32>
    %86 = vector.shape_cast %7 : vector<8x8x2xf32> to vector<64x2xf32>
    %87 = arith.truncf %86 : vector<64x2xf32> to vector<64x2xbf16>
    %c1_49 = arith.constant 1 : index
    %c0_50 = arith.constant 0 : index
    %c0_51 = arith.constant 0 : index
    %88 = vector.load %arg6[%c1_49, %c0_50, %c0_51] : memref<3x2x32xbf16, #tpu.memory_space<vmem>>, vector<1x2x32xbf16>
    %89 = vector.shape_cast %88 : vector<1x2x32xbf16> to vector<2x32xbf16>
    %cst_52 = arith.constant dense<0.000000e+00> : vector<64x32xf32>
    %90 = tpu.matmul %87, %89, %cst_52 {dimension_numbers = #tpu.dot_dimension_numbers<[1], [0], [0], [1], [0, 0, 1, 1], [], []>} : vector<64x2xbf16>, vector<2x32xbf16>, vector<64x32xf32> -> vector<64x32xf32>
    %91 = arith.addf %85, %90 : vector<64x32xf32>
    %92 = vector.shape_cast %69 : vector<8x8x32xf32> to vector<64x32xf32>
    %93 = arith.truncf %92 : vector<64x32xf32> to vector<64x32xbf16>
    %c1_53 = arith.constant 1 : index
    %c0_54 = arith.constant 0 : index
    %c0_55 = arith.constant 0 : index
    %94 = vector.load %arg7[%c1_53, %c0_54, %c0_55] : memref<3x32x32xbf16, #tpu.memory_space<vmem>>, vector<1x32x32xbf16>
    %95 = vector.shape_cast %94 : vector<1x32x32xbf16> to vector<32x32xbf16>
    %cst_56 = arith.constant dense<0.000000e+00> : vector<64x32xf32>
    %96 = tpu.matmul %93, %95, %cst_56 {dimension_numbers = #tpu.dot_dimension_numbers<[1], [0], [0], [1], [0, 0, 1, 1], [], []>} : vector<64x32xbf16>, vector<32x32xbf16>, vector<64x32xf32> -> vector<64x32xf32>
    %97 = arith.addf %91, %96 : vector<64x32xf32>
    %98 = vector.shape_cast %12 : vector<8x8x2xf32> to vector<64x2xf32>
    %99 = arith.truncf %98 : vector<64x2xf32> to vector<64x2xbf16>
    %c2_57 = arith.constant 2 : index
    %c0_58 = arith.constant 0 : index
    %c0_59 = arith.constant 0 : index
    %100 = vector.load %arg6[%c2_57, %c0_58, %c0_59] : memref<3x2x32xbf16, #tpu.memory_space<vmem>>, vector<1x2x32xbf16>
    %101 = vector.shape_cast %100 : vector<1x2x32xbf16> to vector<2x32xbf16>
    %cst_60 = arith.constant dense<0.000000e+00> : vector<64x32xf32>
    %102 = tpu.matmul %99, %101, %cst_60 {dimension_numbers = #tpu.dot_dimension_numbers<[1], [0], [0], [1], [0, 0, 1, 1], [], []>} : vector<64x2xbf16>, vector<2x32xbf16>, vector<64x32xf32> -> vector<64x32xf32>
    %103 = arith.addf %97, %102 : vector<64x32xf32>
    %104 = vector.shape_cast %74 : vector<8x8x32xf32> to vector<64x32xf32>
    %105 = arith.truncf %104 : vector<64x32xf32> to vector<64x32xbf16>
    %c2_61 = arith.constant 2 : index
    %c0_62 = arith.constant 0 : index
    %c0_63 = arith.constant 0 : index
    %106 = vector.load %arg7[%c2_61, %c0_62, %c0_63] : memref<3x32x32xbf16, #tpu.memory_space<vmem>>, vector<1x32x32xbf16>
    %107 = vector.shape_cast %106 : vector<1x32x32xbf16> to vector<32x32xbf16>
    %cst_64 = arith.constant dense<0.000000e+00> : vector<64x32xf32>
    %108 = tpu.matmul %105, %107, %cst_64 {dimension_numbers = #tpu.dot_dimension_numbers<[1], [0], [0], [1], [0, 0, 1, 1], [], []>} : vector<64x32xbf16>, vector<32x32xbf16>, vector<64x32xf32> -> vector<64x32xf32>
    %109 = arith.addf %103, %108 : vector<64x32xf32>
    %c0_65 = arith.constant 0 : index
    %c0_66 = arith.constant 0 : index
    %110 = vector.load %arg9[%c0_65, %c0_66] : memref<1x32xf32, #tpu.memory_space<vmem>>, vector<1x32xf32>
    %111 = vector.broadcast %110 : vector<1x32xf32> to vector<64x32xf32>
    %112 = arith.addf %109, %111 : vector<64x32xf32>
    %113 = math.tanh %112 : vector<64x32xf32>
    %114 = vector.shape_cast %113 : vector<64x32xf32> to vector<8x8x32xf32>
    %115 = arith.mulf %66, %5 : vector<8x8x32xf32>
    %cst_67 = arith.constant 1.000000e+00 : f32
    %116 = vector.broadcast %cst_67 : f32 to vector<8x8x32xf32>
    %117 = arith.subf %116, %66 : vector<8x8x32xf32>
    %118 = arith.mulf %117, %114 : vector<8x8x32xf32>
    %119 = arith.addf %115, %118 : vector<8x8x32xf32>
    %120 = tpu.transpose %119, [1, 0, 2] : vector<8x8x32xf32> -> vector<8x8x32xf32>
    %c0_68 = arith.constant 0 : index
    %c0_69 = arith.constant 0 : index
    %c0_70 = arith.constant 0 : index
    %c0_71 = arith.constant 0 : index
    %121 = vector.load %arg16[%c0_68, %c0_69, %c0_70, %c0_71] : memref<2x8x8x32xf32, #tpu.memory_space<vmem>>, vector<1x8x8x32xf32>
    %122 = vector.shape_cast %121 : vector<1x8x8x32xf32> to vector<8x8x32xf32>
    %123 = vector.shape_cast %120 : vector<8x8x32xf32> to vector<1x8x8x32xf32>
    tpu.vector_store %arg16[%c0_68, %c0_69, %c0_70, %c0_71], %123 {strides = array<i32>} : memref<2x8x8x32xf32, #tpu.memory_space<vmem>>, vector<1x8x8x32xf32>,
    %c1_72 = arith.constant 1 : index
    %c0_73 = arith.constant 0 : index
    %c0_74 = arith.constant 0 : index
    %c0_75 = arith.constant 0 : index
    %124 = vector.load %arg3[%c1_72, %c0_73, %c0_74, %c0_75] : memref<2x8x8x32xf32, #tpu.memory_space<vmem>>, vector<1x8x8x32xf32>
    %125 = vector.shape_cast %124 : vector<1x8x8x32xf32> to vector<8x8x32xf32>
    %126 = tpu.transpose %125, [1, 0, 2] : vector<8x8x32xf32> -> vector<8x8x32xf32>
    %127 = arith.truncf %119 : vector<8x8x32xf32> to vector<8x8x32xbf16>
    "tpu.trace_start"() <{level = 10 : i32, message = "nm,mbf->nbf"}> : () -> ()
    %cst_76 = arith.constant dense<0.000000e+00> : vector<8x8x32xf32>
    %128 = tpu.matmul %1, %127, %cst_76 {dimension_numbers = #tpu.dot_dimension_numbers<[1], [0], [0], [1, 2], [0, 0, 1, 1, 1, 2], [], []>} : vector<8x8xbf16>, vector<8x8x32xbf16>, vector<8x8x32xf32> -> vector<8x8x32xf32>
    "tpu.trace_stop"() : () -> ()
    %129 = arith.truncf %128 : vector<8x8x32xf32> to vector<8x8x32xbf16>
    "tpu.trace_start"() <{level = 10 : i32, message = "nm,mbf->nbf"}> : () -> ()
    %cst_77 = arith.constant dense<0.000000e+00> : vector<8x8x32xf32>
    %130 = tpu.matmul %1, %129, %cst_77 {dimension_numbers = #tpu.dot_dimension_numbers<[1], [0], [0], [1, 2], [0, 0, 1, 1, 1, 2], [], []>} : vector<8x8xbf16>, vector<8x8x32xbf16>, vector<8x8x32xf32> -> vector<8x8x32xf32>
    "tpu.trace_stop"() : () -> ()
    %cst_78 = arith.constant 2.000000e+00 : f32
    %131 = vector.broadcast %cst_78 : f32 to vector<8x8x32xf32>
    %132 = arith.mulf %131, %130 : vector<8x8x32xf32>
    %133 = arith.subf %132, %119 : vector<8x8x32xf32>
    %134 = arith.truncf %126 : vector<8x8x32xf32> to vector<8x8x32xbf16>
    "tpu.trace_start"() <{level = 10 : i32, message = "nm,mbf->nbf"}> : () -> ()
    %cst_79 = arith.constant dense<0.000000e+00> : vector<8x8x32xf32>
    %135 = tpu.matmul %1, %134, %cst_79 {dimension_numbers = #tpu.dot_dimension_numbers<[1], [0], [0], [1, 2], [0, 0, 1, 1, 1, 2], [], []>} : vector<8x8xbf16>, vector<8x8x32xbf16>, vector<8x8x32xf32> -> vector<8x8x32xf32>
    "tpu.trace_stop"() : () -> ()
    %136 = arith.truncf %135 : vector<8x8x32xf32> to vector<8x8x32xbf16>
    "tpu.trace_start"() <{level = 10 : i32, message = "nm,mbf->nbf"}> : () -> ()
    %cst_80 = arith.constant dense<0.000000e+00> : vector<8x8x32xf32>
    %137 = tpu.matmul %1, %136, %cst_80 {dimension_numbers = #tpu.dot_dimension_numbers<[1], [0], [0], [1, 2], [0, 0, 1, 1, 1, 2], [], []>} : vector<8x8xbf16>, vector<8x8x32xbf16>, vector<8x8x32xf32> -> vector<8x8x32xf32>
    "tpu.trace_stop"() : () -> ()
    %cst_81 = arith.constant 2.000000e+00 : f32
    %138 = vector.broadcast %cst_81 : f32 to vector<8x8x32xf32>
    %139 = arith.mulf %138, %137 : vector<8x8x32xf32>
    %140 = arith.subf %139, %126 : vector<8x8x32xf32>
    %141 = vector.shape_cast %119 : vector<8x8x32xf32> to vector<64x32xf32>
    %142 = arith.truncf %141 : vector<64x32xf32> to vector<64x32xbf16>
    %c0_82 = arith.constant 0 : index
    %c0_83 = arith.constant 0 : index
    %c0_84 = arith.constant 0 : index
    %143 = vector.load %arg10[%c0_82, %c0_83, %c0_84] : memref<3x32x64xbf16, #tpu.memory_space<vmem>>, vector<1x32x64xbf16>
    %144 = vector.shape_cast %143 : vector<1x32x64xbf16> to vector<32x64xbf16>
    %cst_85 = arith.constant dense<0.000000e+00> : vector<64x64xf32>
    %145 = tpu.matmul %142, %144, %cst_85 {dimension_numbers = #tpu.dot_dimension_numbers<[1], [0], [0], [1], [0, 0, 1, 1], [], []>} : vector<64x32xbf16>, vector<32x64xbf16>, vector<64x64xf32> -> vector<64x64xf32>
    %146 = vector.shape_cast %126 : vector<8x8x32xf32> to vector<64x32xf32>
    %147 = arith.truncf %146 : vector<64x32xf32> to vector<64x32xbf16>
    %c0_86 = arith.constant 0 : index
    %c0_87 = arith.constant 0 : index
    %c0_88 = arith.constant 0 : index
    %148 = vector.load %arg11[%c0_86, %c0_87, %c0_88] : memref<3x32x64xbf16, #tpu.memory_space<vmem>>, vector<1x32x64xbf16>
    %149 = vector.shape_cast %148 : vector<1x32x64xbf16> to vector<32x64xbf16>
    %cst_89 = arith.constant dense<0.000000e+00> : vector<64x64xf32>
    %150 = tpu.matmul %147, %149, %cst_89 {dimension_numbers = #tpu.dot_dimension_numbers<[1], [0], [0], [1], [0, 0, 1, 1], [], []>} : vector<64x32xbf16>, vector<32x64xbf16>, vector<64x64xf32> -> vector<64x64xf32>
    %151 = arith.addf %145, %150 : vector<64x64xf32>
    %152 = vector.shape_cast %128 : vector<8x8x32xf32> to vector<64x32xf32>
    %153 = arith.truncf %152 : vector<64x32xf32> to vector<64x32xbf16>
    %c1_90 = arith.constant 1 : index
    %c0_91 = arith.constant 0 : index
    %c0_92 = arith.constant 0 : index
    %154 = vector.load %arg10[%c1_90, %c0_91, %c0_92] : memref<3x32x64xbf16, #tpu.memory_space<vmem>>, vector<1x32x64xbf16>
    %155 = vector.shape_cast %154 : vector<1x32x64xbf16> to vector<32x64xbf16>
    %cst_93 = arith.constant dense<0.000000e+00> : vector<64x64xf32>
    %156 = tpu.matmul %153, %155, %cst_93 {dimension_numbers = #tpu.dot_dimension_numbers<[1], [0], [0], [1], [0, 0, 1, 1], [], []>} : vector<64x32xbf16>, vector<32x64xbf16>, vector<64x64xf32> -> vector<64x64xf32>
    %157 = arith.addf %151, %156 : vector<64x64xf32>
    %158 = vector.shape_cast %135 : vector<8x8x32xf32> to vector<64x32xf32>
    %159 = arith.truncf %158 : vector<64x32xf32> to vector<64x32xbf16>
    %c1_94 = arith.constant 1 : index
    %c0_95 = arith.constant 0 : index
    %c0_96 = arith.constant 0 : index
    %160 = vector.load %arg11[%c1_94, %c0_95, %c0_96] : memref<3x32x64xbf16, #tpu.memory_space<vmem>>, vector<1x32x64xbf16>
    %161 = vector.shape_cast %160 : vector<1x32x64xbf16> to vector<32x64xbf16>
    %cst_97 = arith.constant dense<0.000000e+00> : vector<64x64xf32>
    %162 = tpu.matmul %159, %161, %cst_97 {dimension_numbers = #tpu.dot_dimension_numbers<[1], [0], [0], [1], [0, 0, 1, 1], [], []>} : vector<64x32xbf16>, vector<32x64xbf16>, vector<64x64xf32> -> vector<64x64xf32>
    %163 = arith.addf %157, %162 : vector<64x64xf32>
    %164 = vector.shape_cast %133 : vector<8x8x32xf32> to vector<64x32xf32>
    %165 = arith.truncf %164 : vector<64x32xf32> to vector<64x32xbf16>
    %c2_98 = arith.constant 2 : index
    %c0_99 = arith.constant 0 : index
    %c0_100 = arith.constant 0 : index
    %166 = vector.load %arg10[%c2_98, %c0_99, %c0_100] : memref<3x32x64xbf16, #tpu.memory_space<vmem>>, vector<1x32x64xbf16>
    %167 = vector.shape_cast %166 : vector<1x32x64xbf16> to vector<32x64xbf16>
    %cst_101 = arith.constant dense<0.000000e+00> : vector<64x64xf32>
    %168 = tpu.matmul %165, %167, %cst_101 {dimension_numbers = #tpu.dot_dimension_numbers<[1], [0], [0], [1], [0, 0, 1, 1], [], []>} : vector<64x32xbf16>, vector<32x64xbf16>, vector<64x64xf32> -> vector<64x64xf32>
    %169 = arith.addf %163, %168 : vector<64x64xf32>
    %170 = vector.shape_cast %140 : vector<8x8x32xf32> to vector<64x32xf32>
    %171 = arith.truncf %170 : vector<64x32xf32> to vector<64x32xbf16>
    %c2_102 = arith.constant 2 : index
    %c0_103 = arith.constant 0 : index
    %c0_104 = arith.constant 0 : index
    %172 = vector.load %arg11[%c2_102, %c0_103, %c0_104] : memref<3x32x64xbf16, #tpu.memory_space<vmem>>, vector<1x32x64xbf16>
    %173 = vector.shape_cast %172 : vector<1x32x64xbf16> to vector<32x64xbf16>
    %cst_105 = arith.constant dense<0.000000e+00> : vector<64x64xf32>
    %174 = tpu.matmul %171, %173, %cst_105 {dimension_numbers = #tpu.dot_dimension_numbers<[1], [0], [0], [1], [0, 0, 1, 1], [], []>} : vector<64x32xbf16>, vector<32x64xbf16>, vector<64x64xf32> -> vector<64x64xf32>
    %175 = arith.addf %169, %174 : vector<64x64xf32>
    %c0_106 = arith.constant 0 : index
    %c0_107 = arith.constant 0 : index
    %176 = vector.load %arg14[%c0_106, %c0_107] : memref<1x64xf32, #tpu.memory_space<vmem>>, vector<1x64xf32>
    %177 = vector.broadcast %176 : vector<1x64xf32> to vector<64x64xf32>
    %178 = arith.addf %175, %177 : vector<64x64xf32>
    %179 = arith.negf %178 : vector<64x64xf32>
    %180 = math.exp %179 : vector<64x64xf32>
    %cst_108 = arith.constant 1.000000e+00 : f32
    %181 = vector.broadcast %cst_108 : f32 to vector<64x64xf32>
    %182 = arith.addf %181, %180 : vector<64x64xf32>
    %183 = arith.divf %181, %182 : vector<64x64xf32>
    %184 = vector.extract_strided_slice %183 {offsets = [0, 0], sizes = [64, 32], strides = [1, 1]} : vector<64x64xf32> to vector<64x32xf32>
    %185 = vector.shape_cast %184 : vector<64x32xf32> to vector<8x8x32xf32>
    %186 = vector.extract_strided_slice %183 {offsets = [0, 32], sizes = [64, 32], strides = [1, 1]} : vector<64x64xf32> to vector<64x32xf32>
    %187 = vector.shape_cast %186 : vector<64x32xf32> to vector<8x8x32xf32>
    %188 = arith.mulf %185, %126 : vector<8x8x32xf32>
    %189 = arith.truncf %188 : vector<8x8x32xf32> to vector<8x8x32xbf16>
    "tpu.trace_start"() <{level = 10 : i32, message = "nm,mbf->nbf"}> : () -> ()
    %cst_109 = arith.constant dense<0.000000e+00> : vector<8x8x32xf32>
    %190 = tpu.matmul %1, %189, %cst_109 {dimension_numbers = #tpu.dot_dimension_numbers<[1], [0], [0], [1, 2], [0, 0, 1, 1, 1, 2], [], []>} : vector<8x8xbf16>, vector<8x8x32xbf16>, vector<8x8x32xf32> -> vector<8x8x32xf32>
    "tpu.trace_stop"() : () -> ()
    %191 = arith.truncf %190 : vector<8x8x32xf32> to vector<8x8x32xbf16>
    "tpu.trace_start"() <{level = 10 : i32, message = "nm,mbf->nbf"}> : () -> ()
    %cst_110 = arith.constant dense<0.000000e+00> : vector<8x8x32xf32>
    %192 = tpu.matmul %1, %191, %cst_110 {dimension_numbers = #tpu.dot_dimension_numbers<[1], [0], [0], [1, 2], [0, 0, 1, 1, 1, 2], [], []>} : vector<8x8xbf16>, vector<8x8x32xbf16>, vector<8x8x32xf32> -> vector<8x8x32xf32>
    "tpu.trace_stop"() : () -> ()
    %cst_111 = arith.constant 2.000000e+00 : f32
    %193 = vector.broadcast %cst_111 : f32 to vector<8x8x32xf32>
    %194 = arith.mulf %193, %192 : vector<8x8x32xf32>
    %195 = arith.subf %194, %188 : vector<8x8x32xf32>
    %196 = vector.shape_cast %119 : vector<8x8x32xf32> to vector<64x32xf32>
    %197 = arith.truncf %196 : vector<64x32xf32> to vector<64x32xbf16>
    %c0_112 = arith.constant 0 : index
    %c0_113 = arith.constant 0 : index
    %c0_114 = arith.constant 0 : index
    %198 = vector.load %arg12[%c0_112, %c0_113, %c0_114] : memref<3x32x32xbf16, #tpu.memory_space<vmem>>, vector<1x32x32xbf16>
    %199 = vector.shape_cast %198 : vector<1x32x32xbf16> to vector<32x32xbf16>
    %cst_115 = arith.constant dense<0.000000e+00> : vector<64x32xf32>
    %200 = tpu.matmul %197, %199, %cst_115 {dimension_numbers = #tpu.dot_dimension_numbers<[1], [0], [0], [1], [0, 0, 1, 1], [], []>} : vector<64x32xbf16>, vector<32x32xbf16>, vector<64x32xf32> -> vector<64x32xf32>
    %201 = vector.shape_cast %188 : vector<8x8x32xf32> to vector<64x32xf32>
    %202 = arith.truncf %201 : vector<64x32xf32> to vector<64x32xbf16>
    %c0_116 = arith.constant 0 : index
    %c0_117 = arith.constant 0 : index
    %c0_118 = arith.constant 0 : index
    %203 = vector.load %arg13[%c0_116, %c0_117, %c0_118] : memref<3x32x32xbf16, #tpu.memory_space<vmem>>, vector<1x32x32xbf16>
    %204 = vector.shape_cast %203 : vector<1x32x32xbf16> to vector<32x32xbf16>
    %cst_119 = arith.constant dense<0.000000e+00> : vector<64x32xf32>
    %205 = tpu.matmul %202, %204, %cst_119 {dimension_numbers = #tpu.dot_dimension_numbers<[1], [0], [0], [1], [0, 0, 1, 1], [], []>} : vector<64x32xbf16>, vector<32x32xbf16>, vector<64x32xf32> -> vector<64x32xf32>
    %206 = arith.addf %200, %205 : vector<64x32xf32>
    %207 = vector.shape_cast %128 : vector<8x8x32xf32> to vector<64x32xf32>
    %208 = arith.truncf %207 : vector<64x32xf32> to vector<64x32xbf16>
    %c1_120 = arith.constant 1 : index
    %c0_121 = arith.constant 0 : index
    %c0_122 = arith.constant 0 : index
    %209 = vector.load %arg12[%c1_120, %c0_121, %c0_122] : memref<3x32x32xbf16, #tpu.memory_space<vmem>>, vector<1x32x32xbf16>
    %210 = vector.shape_cast %209 : vector<1x32x32xbf16> to vector<32x32xbf16>
    %cst_123 = arith.constant dense<0.000000e+00> : vector<64x32xf32>
    %211 = tpu.matmul %208, %210, %cst_123 {dimension_numbers = #tpu.dot_dimension_numbers<[1], [0], [0], [1], [0, 0, 1, 1], [], []>} : vector<64x32xbf16>, vector<32x32xbf16>, vector<64x32xf32> -> vector<64x32xf32>
    %212 = arith.addf %206, %211 : vector<64x32xf32>
    %213 = vector.shape_cast %190 : vector<8x8x32xf32> to vector<64x32xf32>
    %214 = arith.truncf %213 : vector<64x32xf32> to vector<64x32xbf16>
    %c1_124 = arith.constant 1 : index
    %c0_125 = arith.constant 0 : index
    %c0_126 = arith.constant 0 : index
    %215 = vector.load %arg13[%c1_124, %c0_125, %c0_126] : memref<3x32x32xbf16, #tpu.memory_space<vmem>>, vector<1x32x32xbf16>
    %216 = vector.shape_cast %215 : vector<1x32x32xbf16> to vector<32x32xbf16>
    %cst_127 = arith.constant dense<0.000000e+00> : vector<64x32xf32>
    %217 = tpu.matmul %214, %216, %cst_127 {dimension_numbers = #tpu.dot_dimension_numbers<[1], [0], [0], [1], [0, 0, 1, 1], [], []>} : vector<64x32xbf16>, vector<32x32xbf16>, vector<64x32xf32> -> vector<64x32xf32>
    %218 = arith.addf %212, %217 : vector<64x32xf32>
    %219 = vector.shape_cast %133 : vector<8x8x32xf32> to vector<64x32xf32>
    %220 = arith.truncf %219 : vector<64x32xf32> to vector<64x32xbf16>
    %c2_128 = arith.constant 2 : index
    %c0_129 = arith.constant 0 : index
    %c0_130 = arith.constant 0 : index
    %221 = vector.load %arg12[%c2_128, %c0_129, %c0_130] : memref<3x32x32xbf16, #tpu.memory_space<vmem>>, vector<1x32x32xbf16>
    %222 = vector.shape_cast %221 : vector<1x32x32xbf16> to vector<32x32xbf16>
    %cst_131 = arith.constant dense<0.000000e+00> : vector<64x32xf32>
    %223 = tpu.matmul %220, %222, %cst_131 {dimension_numbers = #tpu.dot_dimension_numbers<[1], [0], [0], [1], [0, 0, 1, 1], [], []>} : vector<64x32xbf16>, vector<32x32xbf16>, vector<64x32xf32> -> vector<64x32xf32>
    %224 = arith.addf %218, %223 : vector<64x32xf32>
    %225 = vector.shape_cast %195 : vector<8x8x32xf32> to vector<64x32xf32>
    %226 = arith.truncf %225 : vector<64x32xf32> to vector<64x32xbf16>
    %c2_132 = arith.constant 2 : index
    %c0_133 = arith.constant 0 : index
    %c0_134 = arith.constant 0 : index
    %227 = vector.load %arg13[%c2_132, %c0_133, %c0_134] : memref<3x32x32xbf16, #tpu.memory_space<vmem>>, vector<1x32x32xbf16>
    %228 = vector.shape_cast %227 : vector<1x32x32xbf16> to vector<32x32xbf16>
    %cst_135 = arith.constant dense<0.000000e+00> : vector<64x32xf32>
    %229 = tpu.matmul %226, %228, %cst_135 {dimension_numbers = #tpu.dot_dimension_numbers<[1], [0], [0], [1], [0, 0, 1, 1], [], []>} : vector<64x32xbf16>, vector<32x32xbf16>, vector<64x32xf32> -> vector<64x32xf32>
    %230 = arith.addf %224, %229 : vector<64x32xf32>
    %c0_136 = arith.constant 0 : index
    %c0_137 = arith.constant 0 : index
    %231 = vector.load %arg15[%c0_136, %c0_137] : memref<1x32xf32, #tpu.memory_space<vmem>>, vector<1x32xf32>
    %232 = vector.broadcast %231 : vector<1x32xf32> to vector<64x32xf32>
    %233 = arith.addf %230, %232 : vector<64x32xf32>
    %234 = math.tanh %233 : vector<64x32xf32>
    %235 = vector.shape_cast %234 : vector<64x32xf32> to vector<8x8x32xf32>
    %236 = arith.mulf %187, %126 : vector<8x8x32xf32>
    %cst_138 = arith.constant 1.000000e+00 : f32
    %237 = vector.broadcast %cst_138 : f32 to vector<8x8x32xf32>
    %238 = arith.subf %237, %187 : vector<8x8x32xf32>
    %239 = arith.mulf %238, %235 : vector<8x8x32xf32>
    %240 = arith.addf %236, %239 : vector<8x8x32xf32>
    %241 = tpu.transpose %240, [1, 0, 2] : vector<8x8x32xf32> -> vector<8x8x32xf32>
    %c1_139 = arith.constant 1 : index
    %c0_140 = arith.constant 0 : index
    %c0_141 = arith.constant 0 : index
    %c0_142 = arith.constant 0 : index
    %242 = vector.load %arg16[%c1_139, %c0_140, %c0_141, %c0_142] : memref<2x8x8x32xf32, #tpu.memory_space<vmem>>, vector<1x8x8x32xf32>
    %243 = vector.shape_cast %242 : vector<1x8x8x32xf32> to vector<8x8x32xf32>
    %244 = vector.shape_cast %241 : vector<8x8x32xf32> to vector<1x8x8x32xf32>
    tpu.vector_store %arg16[%c1_139, %c0_140, %c0_141, %c0_142], %244 {strides = array<i32>} : memref<2x8x8x32xf32, #tpu.memory_space<vmem>>, vector<1x8x8x32xf32>,
    return
  }
  func.func @transform_0(%arg0: i32) -> (i32, i32) {
    %c0_i32 = arith.constant 0 : i32
    %c0_i32_0 = arith.constant 0 : i32
    %c0_i32_1 = arith.constant 0 : i32
    return %c0_i32, %c0_i32_0 : i32, i32
  }
  func.func @transform_1(%arg0: i32) -> (i32, i32, i32) {
    %c0_i32 = arith.constant 0 : i32
    %c0_i32_0 = arith.constant 0 : i32
    %c0_i32_1 = arith.constant 0 : i32
    return %c0_i32, %arg0, %c0_i32_0 : i32, i32, i32
  }
  func.func @transform_2(%arg0: i32) -> (i32, i32, i32, i32) {
    %c0_i32 = arith.constant 0 : i32
    %c0_i32_0 = arith.constant 0 : i32
    %c0_i32_1 = arith.constant 0 : i32
    %c0_i32_2 = arith.constant 0 : i32
    return %c0_i32, %arg0, %c0_i32_0, %c0_i32_1 : i32, i32, i32, i32
  }
  func.func @transform_3(%arg0: i32) -> (i32, i32, i32) {
    %c0_i32 = arith.constant 0 : i32
    %c0_i32_0 = arith.constant 0 : i32
    %c0_i32_1 = arith.constant 0 : i32
    %c0_i32_2 = arith.constant 0 : i32
    return %c0_i32, %c0_i32_0, %c0_i32_1 : i32, i32, i32
  }
  func.func @transform_4(%arg0: i32) -> (i32, i32, i32) {
    %c0_i32 = arith.constant 0 : i32
    %c0_i32_0 = arith.constant 0 : i32
    %c0_i32_1 = arith.constant 0 : i32
    %c0_i32_2 = arith.constant 0 : i32
    return %c0_i32, %c0_i32_0, %c0_i32_1 : i32, i32, i32
  }
  func.func @transform_5(%arg0: i32) -> (i32, i32, i32) {
    %c0_i32 = arith.constant 0 : i32
    %c0_i32_0 = arith.constant 0 : i32
    %c0_i32_1 = arith.constant 0 : i32
    %c0_i32_2 = arith.constant 0 : i32
    return %c0_i32, %c0_i32_0, %c0_i32_1 : i32, i32, i32
  }
  func.func @transform_6(%arg0: i32) -> (i32, i32, i32) {
    %c0_i32 = arith.constant 0 : i32
    %c0_i32_0 = arith.constant 0 : i32
    %c0_i32_1 = arith.constant 0 : i32
    %c0_i32_2 = arith.constant 0 : i32
    return %c0_i32, %c0_i32_0, %c0_i32_1 : i32, i32, i32
  }
  func.func @transform_7(%arg0: i32) -> (i32, i32) {
    %c0_i32 = arith.constant 0 : i32
    %c0_i32_0 = arith.constant 0 : i32
    %c0_i32_1 = arith.constant 0 : i32
    return %c0_i32, %c0_i32_0 : i32, i32
  }
  func.func @transform_8(%arg0: i32) -> (i32, i32) {
    %c0_i32 = arith.constant 0 : i32
    %c0_i32_0 = arith.constant 0 : i32
    %c0_i32_1 = arith.constant 0 : i32
    return %c0_i32, %c0_i32_0 : i32, i32
  }
  func.func @transform_9(%arg0: i32) -> (i32, i32, i32) {
    %c0_i32 = arith.constant 0 : i32
    %c0_i32_0 = arith.constant 0 : i32
    %c0_i32_1 = arith.constant 0 : i32
    %c0_i32_2 = arith.constant 0 : i32
    return %c0_i32, %c0_i32_0, %c0_i32_1 : i32, i32, i32
  }
  func.func @transform_10(%arg0: i32) -> (i32, i32, i32) {
    %c0_i32 = arith.constant 0 : i32
    %c0_i32_0 = arith.constant 0 : i32
    %c0_i32_1 = arith.constant 0 : i32
    %c0_i32_2 = arith.constant 0 : i32
    return %c0_i32, %c0_i32_0, %c0_i32_1 : i32, i32, i32
  }
  func.func @transform_11(%arg0: i32) -> (i32, i32, i32) {
    %c0_i32 = arith.constant 0 : i32
    %c0_i32_0 = arith.constant 0 : i32
    %c0_i32_1 = arith.constant 0 : i32
    %c0_i32_2 = arith.constant 0 : i32
    return %c0_i32, %c0_i32_0, %c0_i32_1 : i32, i32, i32
  }
  func.func @transform_12(%arg0: i32) -> (i32, i32, i32) {
    %c0_i32 = arith.constant 0 : i32
    %c0_i32_0 = arith.constant 0 : i32
    %c0_i32_1 = arith.constant 0 : i32
    %c0_i32_2 = arith.constant 0 : i32
    return %c0_i32, %c0_i32_0, %c0_i32_1 : i32, i32, i32
  }
  func.func @transform_13(%arg0: i32) -> (i32, i32) {
    %c0_i32 = arith.constant 0 : i32
    %c0_i32_0 = arith.constant 0 : i32
    %c0_i32_1 = arith.constant 0 : i32
    return %c0_i32, %c0_i32_0 : i32, i32
  }
  func.func @transform_14(%arg0: i32) -> (i32, i32) {
    %c0_i32 = arith.constant 0 : i32
    %c0_i32_0 = arith.constant 0 : i32
    %c0_i32_1 = arith.constant 0 : i32
    return %c0_i32, %c0_i32_0 : i32, i32
  }
  func.func @transform_15(%arg0: i32) -> (i32, i32, i32, i32) {
    %c0_i32 = arith.constant 0 : i32
    %c0_i32_0 = arith.constant 0 : i32
    %c0_i32_1 = arith.constant 0 : i32
    %c0_i32_2 = arith.constant 0 : i32
    return %c0_i32, %arg0, %c0_i32_0, %c0_i32_1 : i32, i32, i32, i32
  }
}

</mosaic_0001>

<bundles_post_ra>
// kernel: tpu_custom_call.1
= control target key start
LH: loop header
LB: loop body
LE: loop exit
PB: predicated region body
PF: predicated region fallthrough
CT: control target
= control target key end

     0   :  { %s12022_s0 = inlined_call_operand.hbm [shape: f32[8,8], index: 0, kind: input, shape index: {}]   ;;  %s12023_s1 = inlined_call_operand.vmem [shape: f32[8,16,2], index: 1, kind: input, shape index: {}]   ;;  %s12024_s2 = inlined_call_operand.hbm [shape: f32[2,16,8,32], index: 2, kind: input, shape index: {}]   ;;  %s12025_s3 = inlined_call_operand.vmem [shape: bf16[3,2,64], index: 3, kind: input, shape index: {}]   ;;  %s12026_s4 = inlined_call_operand.vmem [shape: bf16[3,32,64], index: 4, kind: input, shape index: {}]   ;;  %s12027_s5 = inlined_call_operand.vmem [shape: bf16[3,2,32], index: 5, kind: input, shape index: {}]   ;;  %s12028_s6 = inlined_call_operand.vmem [shape: bf16[3,32,32], index: 6, kind: input, shape index: {}]   ;;  %s12029_s7 = inlined_call_operand.vmem [shape: f32[1,64], index: 7, kind: input, shape index: {}]   ;;  %s12030_s8 = inlined_call_operand.vmem [shape: f32[1,32], index: 8, kind: input, shape index: {}]   ;;  %s12031_s9 = inlined_call_operand.vmem [shape: bf16[3,32,64], index: 9, kind: input, shape index: {}]   ;;  %s12032_s10 = inlined_call_operand.hbm [shape: bf16[3,32,64], index: 10, kind: input, shape index: {}]   ;;  %s12033_s11 = inlined_call_operand.hbm [shape: bf16[3,32,32], index: 11, kind: input, shape index: {}]   ;;  %s12034_s12 = inlined_call_operand.hbm [shape: bf16[3,32,32], index: 12, kind: input, shape index: {}]   ;;  %s12035_s13 = inlined_call_operand.vmem [shape: f32[1,64], index: 13, kind: input, shape index: {}]   ;;  %s12036_s14 = inlined_call_operand.vmem [shape: f32[1,32], index: 14, kind: input, shape index: {}]   ;;  %s12037_s15 = inlined_call_operand.hbm [shape: f32[2,16,8,32], index: 15, kind: output, shape index: {}]  }
   0x1   :  { %12094 = sst [smem:[#allocation37_spill]] %s12027_s5 }
   0x2   :  { %12095 = sst [smem:[#allocation38_spill]] %s12028_s6 }
   0x3   :  { %12096 = sst [smem:[#allocation39_spill]] %s12030_s8 }
   0x4   :  { %12097 = sst [smem:[#allocation40_spill]] %s12031_s9 }
   0x5   :  { %12098 = sst [smem:[#allocation41_spill]] %s12035_s13 }
   0x6   :  { %12099 = sst [smem:[#allocation42_spill]] %s12036_s14 }
   0x7   :  { %12100 = sst [smem:[#allocation43_spill]] %s12037_s15 }
   0x8   :  { %20 = vsyncpa [#allocation3], 0 }
   0x9   :  { %21 = vsyncpa [#allocation7], 0 }
   0xa   :  { %23 = vsyncpa [#allocation7 + $0x1], 0 }
   0xb   :  { %24 = vsyncpa [#allocation10], 0 }
   0xc   :  { %25 = vsyncpa [#allocation4], 0 }
   0xd   :  { %27 = vsyncpa [#allocation4 + $0x1], 0  ;;  %s9851_s18 = smov 0   ;;  %s9853_s19 = smov 0  }
   0xe   :  { %s9855_s20 = smov 0   ;;  %s9857_s21 = smov 0  }
   0xf LB: > { %12101 = sst [smem:[#allocation23_spill]] %s9718_s18  ;;  %s9872_s22 = sadd.s32 4294967295, %s9730_s21   ;;  %s9730_s21 = sphi %s9857_s21, %s12187_s21   ;;  %s9726_s20 = sphi %s9855_s20, %s12191_s20   ;;  %s9722_s19 = sphi %s9853_s19, %s12190_s19   ;;  %s9718_s18 = sphi %s9851_s18, %s12189_s18  }
  0x10   : > { %s8387_s23 = sadd.s32 4294967294, %s9730_s21   ;;  %s9876_s24 = sadd.s32 1, %s9730_s21  }
  0x11   : > { %12102 = sst [smem:[#allocation24_spill]] %s9876_s24  ;;  %s61_s25 = sadd.s32 1, %s9726_s20 }
  0x12   : > { %s58_s26 = ssub.s32 %s9730_s21, %s9876_s24  ;;  %p68_p0 = scmp.ne.s32.totalorder %s9726_s20, %s9722_s19 }
  0x13   : > { %p59_p1 = scmp.eq.s32.totalorder %s58_s26, 0  ;;  %p69_p2 = scmp.eq.s32.totalorder %s9730_s21, 0 }
  0x14   : > { %p100_p3 = scmp.ne.s32.totalorder %s9722_s19, %s9718_s18  ;;  %p12044_p4 = scmp.eq.s32.totalorder %s9872_s22, 0 }
  0x15   : > { %s9888_s27 = scalar_select %p59_p1, %s9726_s20, %s61_s25  }
  0x16   : > { %p9890_p5 = por %p69_p2, %p68_p0  ;;  %p9896_p6 = por %p12044_p4, %p100_p3 }
  0x17   : > { %12103 = sst [smem:[#allocation25_spill]] %s9888_s27  ;;  %p376_p7 = scmp.eq.s32.totalorder %s9872_s22, 1 }
  0x18   : > { %s12104_s28 = scalar_select %p9890_p5, 1, 0 }
  0x19   : > { %s12105_s29 = scalar_select %p9896_p6, 1, 0 }
  0x1a   : > { %p382_p8 = scmp.eq.s32.totalorder %s8387_s23, 1  ;;  %p8388_p9 = scmp.ge.s32.totalorder %s9730_s21, 1 }
  0x1b   : > { %p389_p10 = scmp.lt.s32.totalorder %s9730_s21, 3  ;;  %p9903_p11 = por %p376_p7, %p68_p0 }
  0x1c   : > { %p9907_p12 = por %p382_p8, %p100_p3  ;;  %s9732_s25 = smov [#allocation9]  }
  0x1d   : > { %s12106_s30 = scalar_select %p9903_p11, 1, 0 }
  0x1e   : > { %s12108_s16 = scalar_select %p9907_p12, 1, 0 }
  0x1f   : > { %12107 = sst [smem:[#allocation26_spill]] %s12106_s30  ;;  %p9911_p13 = pnand %p8388_p9, %p389_p10 }
  0x20   : > { %12109 = sst [smem:[#allocation27_spill]] %s12108_s16  ;;  %s446_s26 = sshll.u32 %s9732_s25, 4  ;;  %s447_s26 = int_to_ptr.vmem [resolvable:$true] %s446_s26 }
  0x21   : > { %s12110_s17 = scalar_select %p9911_p13, 1, 0 }
  0x22   : > { %p9307_p1 = pneg %p9911_p13  ;;  %s9733_s27 = smov [#allocation2]  }
  0x23   : > { %s402_s24 = sshll.u32 %s9733_s27, 4  ;;  %s9568_s15 = scalar_lea.hbm %s12033_s11, 768  ;;  %s9923_s24 = int_to_ptr.vmem [resolvable:$true] %s402_s24 }
  0x24   : > { %p9919_p2 = pnand %p9307_p1, %p12044_p4  ;;  %p9569_p0 = scmp.ne.s32.totalorder %s12033_s11, %s9568_s15 }
  0x25   : > { %p9575_p9 = scmp.lt.u32.totalorder %s9568_s15, %s12033_s11 }
  0x26   : > { %p9933_p3 = pneg %p9919_p2 }
  0x28   : > { %p9571_p7 = pnand %p9933_p3, %p9569_p0 }
  0x2a   : > { %p9572_p8 = pneg %p9571_p7 }
  0x2c   : > { %p9577_p10 = pnand %p9575_p9, %p9572_p8 }
  0x2e   : > { %9580 = shalt.err (!%p9577_p10)
}
  0x2f   : > { %s9581_s18 = scalar_lea.vmem %s447_s26, 768  ;;  %p9589_p11 = scmp.lt.s32.totalorder %s447_s26, %s447_s26 }
  0x30   : > { %p9582_p1 = scmp.ne.s32.totalorder %s447_s26, %s9581_s18  ;;  %p9590_p6 = scmp.lt.s32.totalorder %s9581_s18, %s9581_s18 }
  0x32   : > { %p9584_p4 = pnand %p9582_p1, %p9933_p3  ;;  %p9591_p13 = por %p9590_p6, %p9589_p11 }
  0x34   : > { %p9585_p12 = pneg %p9584_p4 }
  0x36   : > { %p9592_p5 = pnand %p9591_p13, %p9585_p12 }
  0x38   : > { %9595 = shalt.err (!%p9592_p5)
}
  0x39   : > { %s12052_s14 = smov 64   ;;  %s12054_s30 = smov 4  }
  0x3a   : > { %9316 = dma.hbm_to_vmem [thread:$0]  (!%p9919_p2), %s12033_s11, 768, %s447_s26, [#allocation10], %s12052_s14, %s12052_s14, %s12054_s30  }
  0x3b   : > { %s9596_s9 = scalar_lea.hbm %s12022_s0, 128 }
  0x3c   : > { %p9597_p4 = scmp.ne.s32.totalorder %s12022_s0, %s9596_s9  ;;  %p9603_p11 = scmp.lt.u32.totalorder %s9596_s9, %s12022_s0 }
  0x3e   : > { %p9599_p5 = pnand %p9597_p4, %p9933_p3 }
  0x40   : > { %p9600_p6 = pneg %p9599_p5 }
  0x42   : > { %p9605_p12 = pnand %p9603_p11, %p9600_p6 }
  0x44   : > { %9608 = shalt.err (!%p9605_p12)
}
  0x45   : > { %s9609_s26 = scalar_lea.vmem %s9923_s24, 128  ;;  %p9617_p8 = scmp.lt.s32.totalorder %s9923_s24, %s9923_s24 }
  0x46   : > { %p9610_p13 = scmp.ne.s32.totalorder %s9923_s24, %s9609_s26  ;;  %p9618_p9 = scmp.lt.s32.totalorder %s9609_s26, %s9609_s26 }
  0x48   : > { %p9612_p0 = pnand %p9610_p13, %p9933_p3  ;;  %p9619_p10 = por %p9618_p9, %p9617_p8 }
  0x4a   : > { %p9613_p7 = pneg %p9612_p0 }
  0x4c   : > { %p9620_p1 = pnand %p9619_p10, %p9613_p7 }
  0x4e   : > { %9623 = shalt.err (!%p9620_p1)
}
  0x4f   : > { %9310 = dma.hbm_to_vmem [thread:$0]  (!%p9919_p2), %s12022_s0, 128, %s9923_s24, [#allocation3]  }
  0x50   : > { %s9736_s8 = smov [#allocation8]   ;;  %s9737_s13 = smov [#allocation11]  }
  0x51   : > { %s433_s9 = sshll.u32 %s9736_s8, 4  ;;  %s459_s15 = sshll.u32 %s9737_s13, 4  ;;  %s434_s9 = int_to_ptr.vmem [resolvable:$true] %s433_s9  ;;  %s460_s15 = int_to_ptr.vmem [resolvable:$true] %s459_s15 }
  0x52   : > { %s9624_s18 = scalar_lea.hbm %s12032_s10, 768 }
  0x53   : > { %p9625_p4 = scmp.ne.s32.totalorder %s12032_s10, %s9624_s18  ;;  %p9631_p11 = scmp.lt.u32.totalorder %s9624_s18, %s12032_s10 }
  0x55   : > { %p9627_p5 = pnand %p9625_p4, %p9933_p3 }
  0x57   : > { %p9628_p6 = pneg %p9627_p5 }
  0x59   : > { %p9633_p12 = pnand %p9631_p11, %p9628_p6 }
  0x5b   : > { %9636 = shalt.err (!%p9633_p12)
}
  0x5c   : > { %s9637_s24 = scalar_lea.vmem %s434_s9, 768  ;;  %p9645_p8 = scmp.lt.s32.totalorder %s434_s9, %s434_s9 }
  0x5d   : > { %p9638_p13 = scmp.ne.s32.totalorder %s434_s9, %s9637_s24  ;;  %p9646_p9 = scmp.lt.s32.totalorder %s9637_s24, %s9637_s24 }
  0x5f   : > { %p9640_p0 = pnand %p9638_p13, %p9933_p3  ;;  %p9647_p10 = por %p9646_p9, %p9645_p8 }
  0x61   : > { %p9641_p7 = pneg %p9640_p0 }
  0x63   : > { %p9648_p1 = pnand %p9647_p10, %p9641_p7 }
  0x65   : > { %9651 = shalt.err (!%p9648_p1)
}
  0x66   : > { %s12113_s14 = smov 4   ;;  %s12114_s6 = smov 64  }
  0x67   : > { %9313 = dma.hbm_to_vmem [thread:$0]  (!%p9919_p2), %s12032_s10, 768, %s434_s9, [#allocation7], %s12114_s6, %s12114_s6, %s12113_s14  }
  0x68   : > { %s9652_s27 = scalar_lea.hbm %s12034_s12, 768 }
  0x69   : > { %p9653_p4 = scmp.ne.s32.totalorder %s12034_s12, %s9652_s27  ;;  %p9659_p11 = scmp.lt.u32.totalorder %s9652_s27, %s12034_s12 }
  0x6b   : > { %p9655_p5 = pnand %p9653_p4, %p9933_p3 }
  0x6d   : > { %p9656_p6 = pneg %p9655_p5 }
  0x6f   : > { %p9661_p12 = pnand %p9659_p11, %p9656_p6 }
  0x71   : > { %9664 = shalt.err (!%p9661_p12)
}
  0x72   : > { %s9665_s30 = scalar_lea.vmem %s460_s15, 768  ;;  %p9673_p8 = scmp.lt.s32.totalorder %s460_s15, %s460_s15 }
  0x73   : > { %p9666_p13 = scmp.ne.s32.totalorder %s460_s15, %s9665_s30  ;;  %p9674_p9 = scmp.lt.s32.totalorder %s9665_s30, %s9665_s30 }
  0x75   : > { %p9668_p0 = pnand %p9666_p13, %p9933_p3  ;;  %p9675_p10 = por %p9674_p9, %p9673_p8 }
  0x77   : > { %p9669_p7 = pneg %p9668_p0 }
  0x79   : > { %p9676_p1 = pnand %p9675_p10, %p9669_p7 }
  0x7b   : > { %9679 = shalt.err (!%p9676_p1)
}
  0x7c   : > { %9319 = dma.hbm_to_vmem [thread:$0]  (!%p9919_p2), %s12034_s12, 768, %s460_s15, [#allocation10], %s12114_s6, %s12114_s6, %s12113_s14  }
  0x7d   : > { %p8393_p4 = scmp.ge.s32.totalorder %s9730_s21, 2 }
  0x7e   : > { %p12115_p3 = scmp.ne.s32.totalorder (!%p8393_p4), %s12104_s28, 0 }
  0x7f   : > { %475 = sbr.rel (%p8393_p4) target bundleno = 157 (0x9d), region = 68 }
  0x86   : > { %478 = sbr.rel (!%p12115_p3) target bundleno = 142 (0x8e), region = 72  ;;  %s480_s25 = sand.u32 (%p12115_p3), 1, %s9726_s20  }
  0x87   : > { %s8395_s13 = sshll.u32 (%p12115_p3), %s9730_s21, 3  ;;  %s8394_s23 = sshll.u32 (%p12115_p3), %s480_s25, 6 }
  0x88   : > { %s484_s18 = scalar_lea.vmem (%p12115_p3), %s12023_s1, %s8395_s13  ;;  %s482_s15 = scalar_lea.vmem (%p12115_p3), [#allocation5], %s8394_s23 }
  0x89   : > { %v526_v0 = vld [vmem:[%s484_s18] sm:$0xff] (%p12115_p3)  ;;  %v528_v1 = vld [vmem:[%s484_s18 + $0x10] sm:$0xff] (%p12115_p3) }
  0x8a   : > { %v530_v2 = vld [vmem:[%s484_s18 + $0x20] sm:$0xff] (%p12115_p3)  ;;  %527 = vst [vmem:[%s482_s15] sm:$0xff] (%p12115_p3), %v526_v0  ;;  %529 = vst [vmem:[%s482_s15 + $0x8] sm:$0xff] (%p12115_p3), %v528_v1  ;;  %v532_v3 = vld [vmem:[%s484_s18 + $0x30] sm:$0xff] (%p12115_p3) }
  0x8b   : > { %531 = vst [vmem:[%s482_s15 + $0x10] sm:$0xff] (%p12115_p3), %v530_v2  ;;  %v534_v4 = vld [vmem:[%s484_s18 + $0x40] sm:$0xff] (%p12115_p3)  ;;  %v536_v5 = vld [vmem:[%s484_s18 + $0x50] sm:$0xff] (%p12115_p3)  ;;  %533 = vst [vmem:[%s482_s15 + $0x18] sm:$0xff] (%p12115_p3), %v532_v3 }
  0x8c   : > { %535 = vst [vmem:[%s482_s15 + $0x20] sm:$0xff] (%p12115_p3), %v534_v4  ;;  %537 = vst [vmem:[%s482_s15 + $0x28] sm:$0xff] (%p12115_p3), %v536_v5  ;;  %v538_v6 = vld [vmem:[%s484_s18 + $0x60] sm:$0xff] (%p12115_p3)  ;;  %v540_v7 = vld [vmem:[%s484_s18 + $0x70] sm:$0xff] (%p12115_p3) }
  0x8d   : > { %539 = vst [vmem:[%s482_s15 + $0x30] sm:$0xff] %v538_v6  ;;  %541 = vst [vmem:[%s482_s15 + $0x38] sm:$0xff] %v540_v7 }
  0x8e PF: > { %s548_s14 = sand.u32 1, %s9730_s21   ;;  %s550_s6 = sand.u32 1, %s9726_s20  }
  0x8f   : > { %s8396_s26 = sshll.u32 %s550_s6, 7  ;;  %s8676_s5 = sshll.u32 %s9730_s21, 10 }
  0x90   : > { %p12116_p2 = scmp.ne.s32.totalorder %s12104_s28, 0  ;;  %s552_s30 = scalar_lea.vmem [#allocation6], %s8396_s26 }
  0x91   : > { %s571_s9 = sshll.u32 %s552_s30, 4  ;;  %s9738_s25 = smov 2048   ;;  %s572_s9 = int_to_ptr.vmem [resolvable:$true] %s571_s9 }
  0x92   : > { %s9282_s24 = scalar_select %p12116_p2, [#allocation0], [#allocation17] }
  0x93   : > { %9283 = sst [smem:[#allocation14]] (%p12116_p2), %s9738_s25  ;;  %s9739_s13 = smov 1024  }
  0x94   : > { %s563_s8 = sld [smem:[%s9282_s24]]   ;;  %s558_s27 = scalar_lea.hbm %s12024_s2, %s8676_s5 }
  0x95   : > { %9284 = sst [smem:[#allocation14 + $0x1]] (%p12116_p2), %s9739_s13  ;;  %s9740_s18 = smov 8  }
  0x96   : > { %9285 = sst [smem:[#allocation14 + $0x2]] (%p12116_p2), %s9740_s18  ;;  %s9741_s15 = smov 128  }
  0x97   : > { %9286 = sst [smem:[#allocation14 + $0x3]] (%p12116_p2), %s9741_s15  ;;  %s549_s24 = scalar_lea.sflag [#allocation7], %s548_s14 }
  0x98   : > { %9287 = sst [smem:[#allocation14 + $0x4]] (%p12116_p2), %s9741_s15  ;;  %s9742_s30 = smov [#allocation13]  }
  0x99   : > { %9288 = sst [smem:[#allocation14 + $0x5]] (%p12116_p2), %s9740_s18 }
  0x9a   : > { %s8399_s6 = sshll.u32 %s563_s8, 26 }
  0x9b   : > { %s8400_s26 = sadd.s32 134217728, %s8399_s6 }
  0x9c   : > { %9289 = dma.general (%p12116_p2), %s558_s27, 2048, %s572_s9, %s549_s24, %s9742_s30, [#allocation14], %s8400_s26, 0  }
  0x9d PF: > { %p12117_p5 = scmp.ne.s32.totalorder %s12110_s17, 0 }
  0x9f   : > { %596 = sbr.rel (%p12117_p5) target bundleno = 6615 (0x19d7), region = 114 }
  0xa6   : > { %p12118_p6 = scmp.eq.s32.totalorder %s9872_s22, 0 }
  0xa8   : > { %9697 = dma.done.wait (%p12118_p6), [#allocation3], 128   ;;  %p12119_p11 = pmov %p12118_p6 }
  0xa9   : > { %s10056_s5 = sand.u32 1, %s9722_s19   ;;  %s609_s28 = sand.u32 1, %s9872_s22  }
  0xaa   : > { %9699 = vsyncadd (%p12119_p11), [#allocation3], 4294967168  ;;  %s8403_s14 = sshll.u32 %s10056_s5, 6  ;;  %s8404_s9 = sshll.u32 %s10056_s5, 7 }
  0xab   : > { %s10061_s8 = scalar_lea.vmem [#allocation5], %s8403_s14  ;;  %s610_s17 = scalar_lea.sflag [#allocation7], %s609_s28 }
  0xac   : > { %s10065_s25 = scalar_lea.vmem [#allocation6], %s8404_s9  ;;  %p12120_p12 = scmp.ne.s32.totalorder %s12105_s29, 0 }
  0xae   : > { %9701 = dma.done.wait (%p12120_p12), %s610_s17, 2048  }
  0xaf   : > { %9703 = vsyncadd (%p12120_p12), %s610_s17, 4294965248  ;;  %p12121_p13 = pmov %p12118_p6 }
  0xb0   : > { %p12122_p0 = pmov %p12118_p6 }
  0xb1   : > { %9705 = dma.done.wait (%p12121_p13), [#allocation7], 768  }
  0xb2   : > { %9707 = vsyncadd (%p12122_p0), [#allocation7], 4294966528  ;;  %p12123_p7 = pmov %p12122_p0 }
  0xb3   : > { %p12124_p8 = pmov %p12122_p0 }
  0xb4   : > { %9709 = dma.done.wait (%p12123_p7), [#allocation10], 1536  }
  0xb5   : > { %9711 = vsyncadd (%p12124_p8), [#allocation10], 4294965760  ;;  %v702_v8 = vlaneseq  ;;  %v9743_v9 = vmov 1983009808   ;;  %v12056_v11 = vmov 0   ;;  %v10081_v16 = vld [vmem:[%s10061_s8] sm:$0xff] }
  0xb6   : > { %v700_v10 = vunpack.c.l.s4 %v9743_v9  ;;  %2125 = vmatprep.mubr.bf16.mxu1 %v12056_v11  ;;  %v9745_v14 = vmov 1934713408   ;;  %v10084_v17 = vld [vmem:[%s10061_s8 + $0x8] sm:$0xff]  ;;  %v10087_v18 = vld [vmem:[%s10061_s8 + $0x10] sm:$0xff]  ;;  %v10092_v20 = vld [vmem:[%s10061_s8 + $0x18] sm:$0xff]  ;;  %s9746_s29 = smov 8  }
  0xb7   : > { %v703_v13 = vshrl.u32 %v702_v8, 7  ;;  %v764_v15 = vunpack.c.l.s4 %v9745_v14  ;;  %v10095_v21 = vld [vmem:[%s10061_s8 + $0x20] sm:$0xff]  ;;  %v10098_v22 = vld [vmem:[%s10061_s8 + $0x28] sm:$0xff]  ;;  %v10101_v24 = vld [vmem:[%s10061_s8 + $0x30] sm:$0xff]  ;;  %s9747_s13 = smov 2   ;;  %v9748_v58 = vmov 0.0  }
  0xb8   : > { %v701_v12 = vunpack.c.0.s8 %v700_v10  ;;  %v10104_v25 = vld [vmem:[%s10061_s8 + $0x38] sm:$0xff]  ;;  %v8409_v26 = vpack.c.bf16 %v10095_v21, %v10081_v16  ;;  %v8411_v27 = vpack.c.bf16 %v10098_v22, %v10084_v17  ;;  %v8410_v28 = vpack.c.bf16 %v10101_v24, %v10087_v18  ;;  %8820 = vmatprep.subr.bf16.mxu0 %v9748_v58  ;;  %s9750_s23 = smov 6   ;;  %s9751_s16 = smov 4  }
  0xb9   : > { %v765_v23 = vunpack.c.0.s8 %v764_v15  ;;  %v8412_v29 = vpack.c.bf16 %v10104_v25, %v10092_v20  ;;  %vm9749_vm0 = vmmov 0   ;;  %v969_v63 = vcombine.low %v9748_v58, %v9748_v58  ;;  %s9752_s27 = smov 12   ;;  %s9753_s18 = smov 10  }
  0xba   : > { %v10089_v19 = vsub.s32 %v701_v12, %v703_v13  ;;  %8822 = vmatprep.mubr.msk.bf16.mxu0 %vm9749_vm0, %v9748_v58  ;;  %v970_v0 = vcombine.high %v9748_v58, %v9748_v58  ;;  %s9754_s15 = smov 14   ;;  %vm947_vm1 = vcmask 15360   ;;  %vm951_vm2 = vcmask 31744   ;;  %s9755_s6 = smov 124  }
  0xbb   : > { %v10116_v32 = vsub.s32 %v765_v23, %v703_v13  ;;  %vm954_vm3 = vcmask 48128   ;;  %vm957_vm4 = vcmask 64512   ;;  %vm960_vm5 = vcmask 80896   ;;  %s9756_s26 = smov 126   ;;  %s9757_s24 = smov 120  }
  0xbc   : > { %v848_v30 = vrot.slane %v8409_v26, %v10089_v19  ;;  %v882_v31 = vrot.slane %v8411_v27, %v10089_v19  ;;  %v856_v33 = vrot.slane %v8410_v28, %v10089_v19  ;;  %v890_v34 = vrot.slane %v8412_v29, %v10089_v19  ;;  %s9758_s30 = smov 122   ;;  %s9759_s28 = smov 116  }
  0xbd   : > { %12125 = vst [vmem:[#allocation28_spill] sm:$0xff] %v10116_v32  ;;  %v977_v1 = vrot.slane %v969_v63, %v10089_v19  ;;  %v984_v2 = vrot.slane %v970_v0, %v10089_v19  ;;  %vm963_vm6 = vcmask 97280   ;;  %vm966_vm7 = vcmask 113664   ;;  %s9760_s14 = smov 118   ;;  %s9761_s17 = smov 114  }
  0xbe   : > { %v857_v35 = vcombine.low %v848_v30, %v856_v33  ;;  %v891_v36 = vcombine.low %v882_v31, %v890_v34  ;;  %v858_v37 = vcombine.high %v848_v30, %v856_v33  ;;  %v892_v38 = vcombine.high %v882_v31, %v890_v34 }
  0xbf   : > { %v985_v4 = vcombine.low %v977_v1, %v977_v1  ;;  %v986_v5 = vcombine.high %v977_v1, %v977_v1  ;;  %v1001_v6 = vcombine.low %v984_v2, %v984_v2  ;;  %v1002_v13 = vcombine.high %v984_v2, %v984_v2 }
  0xc0   : > { %v10121_v39 = vrot.slane %v857_v35, %v10116_v32  ;;  %v10124_v40 = vrot.slane %v891_v36, %v10116_v32  ;;  %v872_v41 = vrot.slane %v858_v37, %v10116_v32  ;;  %v906_v42 = vrot.slane %v892_v38, %v10116_v32 }
  0xc1   : > { %v993_v7 = vrot.slane %v985_v4, %v10116_v32  ;;  %v1000_v8 = vrot.slane %v986_v5, %v10116_v32  ;;  %v1009_v12 = vrot.slane %v1001_v6, %v10116_v32  ;;  %v1016_v23 = vrot.slane %v1002_v13, %v10116_v32  ;;  %v9407_v4 = vld [vmem:[%s10065_s25 + $0x8] ss:$16 sps:$4 sm:$0xff]   ;;  %v9410_v5 = vld [vmem:[%s10065_s25 + $0x20] ss:$16 sps:$4 sm:$0xff]   ;;  %v9415_v13 = vld [vmem:[%s10065_s25 + $0x2c] ss:$16 sps:$4 sm:$0xff]  }
  0xc2   : > { %v912_v43 = vshrl.u32 %v10121_v39, 16  ;;  %v913_v44 = vshrl.u32 %v10124_v40, 16  ;;  %v923_v45 = vpack.i.b16 %v906_v42, %v872_v41  ;;  %v873_v46 = vcombine.high %v10121_v39, %v12056_v11  ;;  %v9413_v6 = vld [vmem:[%s10065_s25 + $0x28] ss:$16 sps:$4 sm:$0xff]  }
  0xc3   : > { %v907_v47 = vcombine.high %v10124_v40, %v12056_v11  ;;  %v874_v48 = vcombine.high %v872_v41, %v12056_v11  ;;  %v908_v51 = vcombine.high %v906_v42, %v12056_v11  ;;  %v911_v52 = vpack.i.b16 %v10124_v40, %v10121_v39 }
  0xc4   : > { %v914_v49 = vpack.i.b16 %v913_v44, %v912_v43  ;;  %939 = vrot.lane.b32.xlu1 %v923_v45, %s9746_s29  ;;  %v918_v50 = vshrl.u32 %v873_v46, 16  ;;  %v924_v55 = vshrl.u32 %v872_v41, 16  ;;  %v925_v56 = vshrl.u32 %v906_v42, 16  ;;  %v679_v41 = vld [vmem:[#allocation2] sm:$0xff] }
  0xc5   : > { %v919_v53 = vshrl.u32 %v907_v47, 16  ;;  %v917_v54 = vpack.i.b16 %v907_v47, %v873_v46  ;;  %v930_v59 = vshrl.u32 %v874_v48, 16  ;;  %v931_v60 = vshrl.u32 %v908_v51, 16 }
  0xc6   : > { %933 = vrot.lane.b32.xlu0 %v914_v49, %s9747_s13  ;;  %v929_v61 = vpack.i.b16 %v908_v51, %v874_v48  ;;  %v926_v62 = vpack.i.b16 %v925_v56, %v924_v55  ;;  %v10156_v9 = vcombine.high %v993_v7, %v993_v7  ;;  %v10158_v10 = vcombine.low %v1000_v8, %v1000_v8 }
  0xc7   : > { %v920_v57 = vpack.i.b16 %v919_v53, %v918_v50  ;;  %v932_v3 = vpack.i.b16 %v931_v60, %v930_v59  ;;  %v10163_v14 = vcombine.high %v1000_v8, %v1000_v8  ;;  %v10167_v15 = vcombine.low %v1009_v12, %v1009_v12  ;;  %v9409_v8 = vld [vmem:[%s10065_s25 + $0xc] ss:$16 sps:$4 sm:$0xff]  }
  0xc8   : > { %v10172_v26 = vcombine.high %v1009_v12, %v1009_v12  ;;  %v10176_v27 = vcombine.low %v1016_v23, %v1016_v23  ;;  %v10180_v28 = vcombine.high %v1016_v23, %v1016_v23  ;;  %vm1063_vm8 = vcmask 1043456   ;;  %v9412_v12 = vld [vmem:[%s10065_s25 + $0x24] ss:$16 sps:$4 sm:$0xff]  }
  0xc9   : > { %937 = vrot.lane.b32.xlu1 %v920_v57, %s9750_s23  ;;  %v10194_v46 = vpack.c.bf16 %v679_v41, %v679_v41  ;;  %v10201_v47 = vcombine.low %v993_v7, %v993_v7  ;;  %v9406_v7 = vld [vmem:[%s10065_s25 + $0x4] ss:$16 sps:$4 sm:$0xff]   ;;  %vm1721_vm9 = vcmask 261120   ;;  %vm1725_vm10 = vcmask 523264  }
  0xca   : > { %935 = vrot.lane.b32.xlu0 %v917_v54, %s9751_s16  ;;  %vm1728_vm11 = vcmask 785408   ;;  %vm2420_vm12 = vcmask 1040384  }
  0xcd   : > { %943 = vrot.lane.b32.xlu1 %v929_v61, %s9752_s27 }
  0xce   : > { %941 = vrot.lane.b32.xlu0 %v926_v62, %s9753_s18 }
  0xd1   : > { %1026 = vrot.lane.b32.xlu1 %v10156_v9, %s9747_s13 }
  0xd2   : > { %945 = vrot.lane.b32.xlu0 %v932_v3, %s9754_s15  ;;  %v9404_v3 = vld [vmem:[%s10065_s25] ss:$16 sps:$4 sm:$0xff]  }
  0xd3   : > { %v705_v23 = vrot.slane %v9404_v3, %v10089_v19 }
  0xd5   : > { %1034 = vrot.lane.b32.xlu1 %v10163_v14, %s9750_s23 }
  0xd6   : > { %1030 = vrot.lane.b32.xlu0 %v10158_v10, %s9751_s16 }
  0xd9   : > { %1042 = vrot.lane.b32.xlu1 %v10172_v26, %s9753_s18 }
  0xda   : > { %1038 = vrot.lane.b32.xlu0 %v10167_v15, %s9746_s29 }
  0xdd   : > { %1050 = vrot.lane.b32.xlu1 %v10180_v28, %s9754_s15 }
  0xde   : > { %1046 = vrot.lane.b32.xlu0 %v10176_v27, %s9752_s27 }
 0x136   : > { %v940_v29 = vpop.permute.xlu1 %939 }
 0x138   : > { %v934_v30 = vpop.permute.xlu0 %933 }
 0x139   : > { %v950_v33 = vsel %vm947_vm1, %v911_v52, %v934_v30  ;;  %v737_v30 = vrot.slane %v9410_v5, %v10089_v19 }
 0x13b   : > { %v938_v31 = vpop.permute.xlu1 %937 }
 0x13c   : > { %v936_v34 = vpop.permute.xlu0 %935 }
 0x13d   : > { %v953_v35 = vsel %vm951_vm2, %v950_v33, %v936_v34  ;;  %v712_v33 = vrot.slane %v9406_v7, %v10089_v19  ;;  %v728_v34 = vrot.slane %v9409_v8, %v10089_v19 }
 0x13e   : > { %v956_v36 = vsel %vm954_vm3, %v953_v35, %v938_v31  ;;  %v753_v31 = vrot.slane %v9413_v6, %v10089_v19 }
 0x13f   : > { %v959_v37 = vsel %vm957_vm4, %v956_v36, %v940_v29  ;;  %v944_v40 = vpop.permute.xlu1 %943  ;;  %v721_v29 = vrot.slane %v9407_v4, %v10089_v19 }
 0x140   : > { %v942_v38 = vpop.permute.xlu0 %941 }
 0x141   : > { %v962_v39 = vsel %vm960_vm5, %v959_v37, %v942_v38  ;;  %v744_v37 = vrot.slane %v9412_v12, %v10089_v19  ;;  %v760_v38 = vrot.slane %v9415_v13, %v10089_v19  ;;  %v762_v41 = vcombine.high %v705_v23, %v721_v29 }
 0x142   : > { %v965_v42 = vsel %vm963_vm6, %v962_v39, %v944_v40  ;;  %v761_v39 = vcombine.low %v705_v23, %v721_v29  ;;  %v793_v40 = vcombine.low %v737_v30, %v753_v31 }
 0x143   : > { %v1027_v48 = vpop.permute.xlu1 %1026 }
 0x144   : > { %v946_v43 = vpop.permute.xlu0 %945  ;;  %v1053_v49 = vsel %vm947_vm1, %v10201_v47, %v1027_v48 }
 0x145   : > { %v968_v44 = vsel %vm966_vm7, %v965_v42, %v946_v43  ;;  %v777_v42 = vcombine.low %v712_v33, %v728_v34  ;;  %v778_v43 = vcombine.high %v712_v33, %v728_v34 }
 0x146   : > { %v1064_v45 = vsel %vm1063_vm8, %v968_v44, 0  ;;  %v794_v44 = vcombine.high %v737_v30, %v753_v31 }
 0x147   : > { %8821 = vmatpush3.bf16.msra.mxu0 %v1064_v45  ;;  %v1035_v52 = vpop.permute.xlu1 %1034 }
 0x148   : > { %8826 = vmatprep.subr.bf16.mxu0 %v9748_v58  ;;  %v1031_v50 = vpop.permute.xlu0 %1030 }
 0x149   : > { %v1054_v51 = vsel %vm951_vm2, %v1053_v49, %v1031_v50  ;;  %v809_v49 = vcombine.low %v744_v37, %v760_v38  ;;  %v810_v50 = vcombine.high %v744_v37, %v760_v38 }
 0x14a   : > { %8823 = vmatmul.mubr.msk.bf16.vlgmr.msra.gmra.mrb[0].mxu0 %vm957_vm4, %v10194_v46  ;;  %v1055_v53 = vsel %vm954_vm3, %v1054_v51, %v1035_v52  ;;  %v769_v52 = vrot.slane %v761_v39, %v10116_v32 }
 0x14b   : > { %8828 = vmatprep.mubr.msk.bf16.mxu0 %vm9749_vm0, %v9748_v58  ;;  %v1043_v56 = vpop.permute.xlu1 %1042 }
 0x14c   : > { %v1039_v54 = vpop.permute.xlu0 %1038 }
 0x14d   : > { %v1056_v55 = vsel %vm957_vm4, %v1055_v53, %v1039_v54  ;;  %v801_v53 = vrot.slane %v793_v40, %v10116_v32  ;;  %v776_v54 = vrot.slane %v762_v41, %v10116_v32 }
 0x14e   : > { %v1057_v57 = vsel %vm960_vm5, %v1056_v55, %v1043_v56  ;;  %v785_v55 = vrot.slane %v777_v42, %v10116_v32  ;;  %v792_v56 = vrot.slane %v778_v43, %v10116_v32 }
 0x14f   : > { %v1051_v60 = vpop.permute.xlu1 %1050  ;;  %v10257_v4 = vcombine.low %v769_v52, %v801_v53  ;;  %v10259_v7 = vcombine.high %v769_v52, %v801_v53 }
 0x150   : > { %v1047_v59 = vpop.permute.xlu0 %1046 }
 0x151   : > { %v1058_v58 = vsel %vm963_vm6, %v1057_v57, %v1047_v59  ;;  %v808_v57 = vrot.slane %v794_v44, %v10116_v32 }
 0x152   : > { %v10211_v61 = vsel %vm966_vm7, %v1058_v58, %v1051_v60 }
 0x153   : > { %v10261_v8 = vcombine.low %v776_v54, %v808_v57  ;;  %v10269_v33 = vcombine.high %v776_v54, %v808_v57 }
 0x21d   : > { %v1100_v62 = vpop.f32.mrb[0].mxu0 }
 0x21e   : > { %v10214_v63 = vadd.f32 %v1100_v62, %v10211_v61  ;;  %v8824_v0 = vpop.f32.mrb[1].mxu0 }
 0x21f   : > { %v1103_v1 = vpop.f32.mrb[2].mxu0  ;;  %v817_v0 = vrot.slane %v809_v49, %v10116_v32 }
 0x220   : > { %1110 = vrot.lane.b32.xlu1 %v10214_v63, %s9755_s6  ;;  %1107 = vrot.lane.b32.xlu0 %v10214_v63, %s9756_s26  ;;  %v8825_v2 = vpop.f32.mrb[3].mxu0  ;;  %v824_v1 = vrot.slane %v810_v50, %v10116_v32 }
 0x221   : > { %v10265_v29 = vcombine.low %v785_v55, %v817_v0  ;;  %v10271_v34 = vcombine.high %v785_v55, %v817_v0 }
 0x222   : > { %v10267_v30 = vcombine.low %v792_v56, %v824_v1  ;;  %v10274_v38 = vcombine.high %v792_v56, %v824_v1 }
 0x223   : > { %v8421_v55 = vpack.c.bf16 %v10271_v34, %v10259_v7 }
 0x224   : > { %1116 = vrot.lane.b32.xlu1 %v10214_v63, %s9757_s24  ;;  %1113 = vrot.lane.b32.xlu0 %v10214_v63, %s9758_s30  ;;  %v8422_v56 = vpack.c.bf16 %v10274_v38, %v10269_v33 }
 0x228   : > { %1122 = vrot.lane.b32.xlu1 %v10214_v63, %s9759_s28  ;;  %1119 = vrot.lane.b32.xlu0 %v10214_v63, %s9760_s14 }
 0x22c   : > { %1125 = vrot.lane.b32.xlu0 %v10214_v63, %s9761_s17 }
 0x292   : > { %v1111_v35 = vpop.permute.xlu1 %1110  ;;  %v1108_v36 = vpop.permute.xlu0 %1107 }
 0x293   : > { %v1128_v59 = vcombine.low %v10214_v63, %v1111_v35  ;;  %v1129_v2 = vcombine.high %v10214_v63, %v1111_v35 }
 0x295   : > { %v1136_v12 = vrot.slane %v1128_v59, %v10089_v19  ;;  %v1143_v35 = vrot.slane %v1129_v2, %v10089_v19 }
 0x296   : > { %v1117_v45 = vpop.permute.xlu1 %1116  ;;  %v1114_v48 = vpop.permute.xlu0 %1113 }
 0x297   : > { %v1144_v51 = vcombine.low %v1108_v36, %v1114_v48  ;;  %v1145_v58 = vcombine.high %v1108_v36, %v1114_v48  ;;  %v8420_v48 = vpack.c.bf16 %v10267_v30, %v10261_v8 }
 0x299   : > { %v1152_v3 = vrot.slane %v1144_v51, %v10089_v19  ;;  %v1159_v13 = vrot.slane %v1145_v58, %v10089_v19  ;;  %v1632_v2 = vrot.slane %v8420_v48, %v10089_v19 }
 0x29a   : > { %v1123_v60 = vpop.permute.xlu1 %1122  ;;  %v1120_v62 = vpop.permute.xlu0 %1119 }
 0x29b   : > { %v1160_v5 = vcombine.low %v1117_v45, %v1123_v60  ;;  %v1161_v6 = vcombine.high %v1117_v45, %v1123_v60  ;;  %v1192_v36 = vcombine.low %v1136_v12, %v1152_v3  ;;  %v1193_v37 = vcombine.high %v1136_v12, %v1152_v3 }
 0x29c   : > { %v1208_v43 = vcombine.low %v1143_v35, %v1159_v13  ;;  %v1209_v44 = vcombine.high %v1143_v35, %v1159_v13  ;;  %v8419_v45 = vpack.c.bf16 %v10265_v29, %v10257_v4 }
 0x29d   : > { %v1168_v39 = vrot.slane %v1160_v5, %v10089_v19  ;;  %v1175_v40 = vrot.slane %v1161_v6, %v10089_v19  ;;  %v1200_v53 = vrot.slane %v1192_v36, %v10116_v32  ;;  %v1207_v54 = vrot.slane %v1193_v37, %v10116_v32 }
 0x29e   : > { %v1126_v23 = vpop.permute.xlu0 %1125  ;;  %v1223_v0 = vrot.slane %v1209_v44, %v10116_v32  ;;  %v1624_v1 = vrot.slane %v8419_v45, %v10089_v19  ;;  %v1658_v36 = vrot.slane %v8421_v55, %v10089_v19  ;;  %v1666_v37 = vrot.slane %v8422_v56, %v10089_v19 }
 0x29f   : > { %v1176_v63 = vcombine.low %v1120_v62, %v1126_v23  ;;  %v1177_v31 = vcombine.high %v1120_v62, %v1126_v23  ;;  %v1216_v62 = vrot.slane %v1208_v43, %v10116_v32 }
 0x2a1   : > { %v1184_v41 = vrot.slane %v1176_v63, %v10089_v19  ;;  %v1191_v42 = vrot.slane %v1177_v31, %v10089_v19 }
 0x2a3   : > { %v1224_v49 = vcombine.low %v1168_v39, %v1184_v41  ;;  %v1225_v50 = vcombine.high %v1168_v39, %v1184_v41  ;;  %v1240_v51 = vcombine.low %v1175_v40, %v1191_v42  ;;  %v1241_v52 = vcombine.high %v1175_v40, %v1191_v42 }
 0x2a5   : > { %v1232_v57 = vrot.slane %v1224_v49, %v10116_v32  ;;  %v1239_v59 = vrot.slane %v1225_v50, %v10116_v32  ;;  %v1248_v58 = vrot.slane %v1240_v51, %v10116_v32  ;;  %v1255_v60 = vrot.slane %v1241_v52, %v10116_v32 }
 0x2a6   : > { %v1634_v52 = vcombine.high %v1624_v1, %v1632_v2 }
 0x2a7   : > { %v1256_v3 = vcombine.low %v1200_v53, %v1232_v57  ;;  %v1257_v5 = vcombine.high %v1200_v53, %v1232_v57  ;;  %v1258_v6 = vcombine.low %v1207_v54, %v1239_v59  ;;  %v1259_v12 = vcombine.high %v1207_v54, %v1239_v59 }
 0x2a8   : > { %v1260_v13 = vcombine.low %v1216_v62, %v1248_v58  ;;  %v1261_v23 = vcombine.high %v1216_v62, %v1248_v58  ;;  %v1262_v63 = vcombine.low %v1223_v0, %v1255_v60  ;;  %v1263_v31 = vcombine.high %v1223_v0, %v1255_v60 }
 0x2a9   : > { %v10298_v35 = vpack.c.bf16 %v1259_v12, %v1258_v6  ;;  %v10302_v39 = vpack.c.bf16 %v1257_v5, %v1256_v3  ;;  %v1668_v53 = vcombine.high %v1658_v36, %v1666_v37  ;;  %v1633_v59 = vcombine.low %v1624_v1, %v1632_v2 }
 0x2aa   : > { %v8414_v40 = vpack.c.bf16 %v1260_v13, %v1256_v3  ;;  %v8415_v41 = vpack.c.bf16 %v1262_v63, %v1258_v6  ;;  %v8416_v42 = vpack.c.bf16 %v1261_v23, %v1257_v5  ;;  %v8417_v43 = vpack.c.bf16 %v1263_v31, %v1259_v12 }
 0x2ab   : > { %v10304_v44 = vpack.c.bf16 %v1261_v23, %v1260_v13  ;;  %v10306_v45 = vpack.c.bf16 %v1263_v31, %v1262_v63  ;;  %v1667_v58 = vcombine.low %v1658_v36, %v1666_v37  ;;  %v10321_v5 = vrot.slane %v1634_v52, %v10116_v32 }
 0x2ac   : > { %v1279_v48 = vrot.slane %v8414_v40, %v10089_v19  ;;  %v1287_v49 = vrot.slane %v8415_v41, %v10089_v19  ;;  %v1313_v50 = vrot.slane %v8416_v42, %v10089_v19  ;;  %v1321_v51 = vrot.slane %v8417_v43, %v10089_v19 }
 0x2ad   : > { %v10324_v6 = vrot.slane %v1668_v53, %v10116_v32  ;;  %v10333_v63 = vrot.slane %v1633_v59, %v10116_v32  ;;  %v10336_v31 = vrot.slane %v1667_v58, %v10116_v32  ;;  %v1700_v42 = vshrl.u32 %v10321_v5, 16 }
 0x2ae   : > { %v1289_v54 = vcombine.high %v1279_v48, %v1287_v49  ;;  %v1323_v55 = vcombine.high %v1313_v50, %v1321_v51  ;;  %v1288_v56 = vcombine.low %v1279_v48, %v1287_v49  ;;  %v1322_v57 = vcombine.low %v1313_v50, %v1321_v51 }
 0x2af   : > { %v1701_v50 = vshrl.u32 %v10324_v6, 16  ;;  %v1688_v52 = vshrl.u32 %v10333_v63, 16  ;;  %v1689_v53 = vshrl.u32 %v10336_v31, 16 }
 0x2b0   : > { %v1303_v60 = vrot.slane %v1289_v54, %v10116_v32  ;;  %v1337_v62 = vrot.slane %v1323_v55, %v10116_v32  ;;  %v10315_v0 = vrot.slane %v1288_v56, %v10116_v32  ;;  %v10318_v3 = vrot.slane %v1322_v57, %v10116_v32 }
 0x2b1   : > { %v1702_v55 = vpack.i.b16 %v1701_v50, %v1700_v42  ;;  %v1649_v56 = vcombine.high %v10333_v63, %v12056_v11  ;;  %v1683_v57 = vcombine.high %v10336_v31, %v12056_v11  ;;  %v1690_v59 = vpack.i.b16 %v1689_v53, %v1688_v52 }
 0x2b2   : > { %v1354_v12 = vpack.i.b16 %v1337_v62, %v1303_v60  ;;  %v1343_v1 = vshrl.u32 %v10315_v0, 16  ;;  %v1344_v2 = vshrl.u32 %v10318_v3, 16  ;;  %v1304_v13 = vcombine.high %v10315_v0, %v12056_v11 }
 0x2b3   : > { %v1338_v23 = vcombine.high %v10318_v3, %v12056_v11  ;;  %v1355_v37 = vshrl.u32 %v1303_v60, 16  ;;  %v1356_v40 = vshrl.u32 %v1337_v62, 16  ;;  %v1342_v41 = vpack.i.b16 %v10318_v3, %v10315_v0 }
 0x2b4   : > { %1370 = vrot.lane.b32.xlu0 %v1354_v12, %s9746_s29  ;;  %v1345_v36 = vpack.i.b16 %v1344_v2, %v1343_v1  ;;  %v1305_v48 = vcombine.high %v1303_v60, %v12056_v11  ;;  %v1339_v49 = vcombine.high %v1337_v62, %v12056_v11  ;;  %v1349_v58 = vshrl.u32 %v1304_v13, 16  ;;  %s9762_s29 = smov 32  }
 0x2b5   : > { %v1348_v43 = vpack.i.b16 %v1338_v23, %v1304_v13  ;;  %v1357_v51 = vpack.i.b16 %v1356_v40, %v1355_v37  ;;  %v1350_v60 = vshrl.u32 %v1338_v23, 16  ;;  %v1693_v62 = vpack.i.b16 %v1683_v57, %v1649_v56 }
 0x2b6   : > { %1364 = vrot.lane.b32.xlu1 %v1345_v36, %s9747_s13  ;;  %v1360_v54 = vpack.i.b16 %v1339_v49, %v1305_v48  ;;  %v1694_v0 = vshrl.u32 %v1649_v56, 16  ;;  %v1361_v12 = vshrl.u32 %v1305_v48, 16  ;;  %v1362_v1 = vshrl.u32 %v1339_v49, 16  ;;  %s9763_s13 = smov 64  }
 0x2b7   : > { %v1351_v3 = vpack.i.b16 %v1350_v60, %v1349_v58  ;;  %v1695_v2 = vshrl.u32 %v1683_v57, 16  ;;  %v1650_v36 = vcombine.high %v10321_v5, %v12056_v11  ;;  %v1684_v13 = vcombine.high %v10324_v6, %v12056_v11 }
 0x2b8   : > { %1366 = vrot.lane.b32.xlu0 %v1348_v43, %s9751_s16  ;;  %v1363_v23 = vpack.i.b16 %v1362_v1, %v1361_v12  ;;  %s9764_s16 = smov 96  }
 0x2b9   : > { %v1696_v37 = vpack.i.b16 %v1695_v2, %v1694_v0  ;;  %v1705_v40 = vpack.i.b16 %v1684_v13, %v1650_v36  ;;  %v1706_v42 = vshrl.u32 %v1650_v36, 16  ;;  %v1707_v43 = vshrl.u32 %v1684_v13, 16 }
 0x2ba   : > { %1372 = vrot.lane.b32.xlu1 %v1357_v51, %s9753_s18  ;;  %s12135_s18 = sld [smem:[#allocation38_spill]] }
 0x2bb   : > { %v1708_v48 = vpack.i.b16 %v1707_v43, %v1706_v42  ;;  %v2312_v42 = vpack.c.bf16 %v10269_v33, %v10261_v8  ;;  %v2313_v43 = vpack.c.bf16 %v10271_v34, %v10265_v29 }
 0x2bc   : > { %1374 = vrot.lane.b32.xlu0 %v1360_v54, %s9752_s27  ;;  %s11618_s27 = scalar_lea.vmem [#allocation12], %s8404_s9 }
 0x2be   : > { %1715 = vrot.lane.b32.xlu1 %v1702_v55, %s9762_s29 }
 0x2c0   : > { %1709 = vrot.lane.b32.xlu0 %v1690_v59, %s9762_s29 }
 0x2c2   : > { %1368 = vrot.lane.b32.xlu1 %v1351_v3, %s9750_s23  ;;  %s12153_s23 = sld [smem:[#allocation40_spill]] }
 0x2c4   : > { %1711 = vrot.lane.b32.xlu0 %v1693_v62, %s9763_s13 }
 0x2c6   : > { %1376 = vrot.lane.b32.xlu1 %v1363_v23, %s9754_s15  ;;  %v2311_v23 = vpack.c.bf16 %v10259_v7, %v10257_v4  ;;  %s12136_s15 = smov %s12135_s18 }
 0x2c8   : > { %1713 = vrot.lane.b32.xlu0 %v1696_v37, %s9764_s16  ;;  %v9417_v37 = vld [vmem:[%s12026_s4 + $0x8] sm:$0xff]  }
 0x2ca   : > { %1717 = vrot.lane.b32.xlu1 %v1705_v40, %s9763_s13  ;;  %v2310_v40 = vld [vmem:[%s12025_s3] sm:$0x1] }
 0x2cc   : > { %1738 = vrot.lane.b32.xlu0 %v10156_v9, %s9762_s29 }
 0x2ce   : > { %1719 = vrot.lane.b32.xlu1 %v1708_v48, %s9764_s16  ;;  %v2422_v48 = vsel %vm2420_vm12, %v2310_v40, 0 }
 0x2d0   : > { %1741 = vrot.lane.b32.xlu0 %v10158_v10, %s9763_s13 }
 0x2d2   : > { %1747 = vrot.lane.b32.xlu1 %v10172_v26, %s9762_s29 }
 0x2d4   : > { %1744 = vrot.lane.b32.xlu0 %v10163_v14, %s9764_s16  ;;  %v1687_v14 = vpack.i.b16 %v10336_v31, %v10333_v63  ;;  %v1699_v63 = vpack.i.b16 %v10324_v6, %v10321_v5  ;;  %v9416_v5 = vld [vmem:[%s12026_s4] sm:$0xff]  }
 0x2d6   : > { %1750 = vrot.lane.b32.xlu1 %v10176_v27, %s9763_s13 }
 0x2da   : > { %1753 = vrot.lane.b32.xlu1 %v10180_v28, %s9764_s16 }
 0x326   : > { %v1371_v49 = vpop.permute.xlu0 %1370 }
 0x328   : > { %v1365_v50 = vpop.permute.xlu1 %1364 }
 0x329   : > { %v1380_v10 = vsel %vm947_vm1, %v1342_v41, %v1365_v50  ;;  %v2314_v50 = vpack.c.bf16 %v10274_v38, %v10267_v30 }
 0x32a   : > { %v1367_v9 = vpop.permute.xlu0 %1366 }
 0x32b   : > { %v1382_v26 = vsel %vm951_vm2, %v1380_v10, %v1367_v9  ;;  %v10432_v9 = vpack.c.bf16 %v10084_v17, %v10081_v16  ;;  %v10452_v16 = vpack.c.bf16 %v10104_v25, %v10101_v24 }
 0x32c   : > { %v1373_v51 = vpop.permute.xlu1 %1372 }
 0x32e   : > { %v1375_v52 = vpop.permute.xlu0 %1374 }
 0x330   : > { %v1716_v53 = vpop.permute.xlu1 %1715 }
 0x331   : > { %v1733_v12 = vsel %vm1721_vm9, %v1699_v63, %v1716_v53  ;;  %v9419_v63 = vld [vmem:[%s12026_s4 + $0x18] sm:$0xff]  }
 0x332   : > { %v1710_v54 = vpop.permute.xlu0 %1709 }
 0x333   : > { %v1724_v41 = vsel %vm1721_vm9, %v1687_v14, %v1710_v54 }
 0x334   : > { %v1369_v55 = vpop.permute.xlu1 %1368 }
 0x335   : > { %v1384_v27 = vsel %vm954_vm3, %v1382_v26, %v1369_v55 }
 0x336   : > { %v1386_v56 = vsel %vm957_vm4, %v1384_v27, %v1371_v49  ;;  %v1712_v28 = vpop.permute.xlu0 %1711  ;;  %v8441_v49 = vld [vmem:[%s12025_s3 + $0x1] sm:$0x1] }
 0x337   : > { %v1388_v57 = vsel %vm960_vm5, %v1386_v56, %v1373_v51  ;;  %v1727_v31 = vsel %vm1725_vm10, %v1724_v41, %v1712_v28  ;;  %v10439_v51 = vpack.c.bf16 %v10092_v20, %v10087_v18  ;;  %v2508_v53 = vsel %vm2420_vm12, %v8441_v49, 0 }
 0x338   : > { %v1377_v59 = vpop.permute.xlu1 %1376  ;;  %v1390_v58 = vsel %vm963_vm6, %v1388_v57, %v1375_v52  ;;  %v10443_v52 = vpack.c.bf16 %v10098_v22, %v10095_v21 }
 0x339   : > { %v1392_v60 = vsel %vm966_vm7, %v1390_v58, %v1377_v59 }
 0x33a   : > { %v1393_v62 = vsel %vm1063_vm8, %v1392_v60, 0  ;;  %v1714_v0 = vpop.permute.xlu0 %1713 }
 0x33b   : > { %8827 = vmatpush3.bf16.msra.mxu0 %v1393_v62  ;;  %v1730_v1 = vsel %vm1728_vm11, %v1727_v31, %v1714_v0 }
 0x33c   : > { %v1718_v3 = vpop.permute.xlu1 %1717  ;;  %v1762_v13 = vsel %vm1063_vm8, %v1730_v1, 0 }
 0x33d   : > { %v1735_v2 = vsel %vm1725_vm10, %v1733_v12, %v1718_v3 }
 0x33e   : > { %8829 = vmatmul.mubr.msk.bf16.vlgmr.msra.gmra.mrb[4].mxu0 %vm957_vm4, %v10194_v46  ;;  %v1739_v17 = vpop.permute.xlu0 %1738 }
 0x33f   : > { %1798 = vmatprep.mubr.bf16.mxu0 %v12056_v11  ;;  %v1756_v24 = vsel %vm1721_vm9, %v10201_v47, %v1739_v17 }
 0x340   : > { %v1720_v36 = vpop.permute.xlu1 %1719 }
 0x341   : > { %v1737_v6 = vsel %vm1728_vm11, %v1735_v2, %v1720_v36 }
 0x342   : > { %8423 = vmatprep.subr.msk.bf16.mxu0 %vm1063_vm8, %v1737_v6  ;;  %v1742_v20 = vpop.permute.xlu0 %1741 }
 0x343   : > { %1767 = vmatpush1.bf16.msra.mxu0 %v1762_v13  ;;  %v1757_v26 = vsel %vm1725_vm10, %v1756_v24, %v1742_v20 }
 0x344   : > { %8832 = vmatprep.subr.bf16.mxu0 %v9416_v5  ;;  %v1748_v18 = vpop.permute.xlu1 %1747 }
 0x345   : > { %v1759_v14 = vsel %vm1721_vm9, %v10167_v15, %v1748_v18  ;;  %v9418_v15 = vld [vmem:[%s12026_s4 + $0x10] sm:$0xff]  }
 0x346   : > { %8424 = vmatmul.mubr.msk.bf16.vlgmr.msra.gmra.mrb[8].mxu0 %vm957_vm4, %v10194_v46  ;;  %v1745_v55 = vpop.permute.xlu0 %1744 }
 0x347   : > { %8833 = vmatpush3.bf16.msra.mxu0 %v9416_v5  ;;  %8836 = vmatprep.mubr.msk.bf16.mxu0 %vm1721_vm9, %v2311_v23  ;;  %v10472_v27 = vsel %vm1728_vm11, %v1757_v26, %v1745_v55 }
 0x348   : > { %8834 = vmatprep.subr.bf16.mxu0 %v9417_v37  ;;  %v1751_v10 = vpop.permute.xlu1 %1750 }
 0x349   : > { %v1760_v28 = vsel %vm1725_vm10, %v1759_v14, %v1751_v10 }
 0x34b   : > { %8835 = vmatpush3.bf16.msra.mxu0 %v9417_v37 }
 0x34c   : > { %9268 = vmatprep.subr.msk.bf16.mxu0 %vm2420_vm12, %v2310_v40  ;;  %v1754_v57 = vpop.permute.xlu1 %1753 }
 0x34d   : > { %v10482_v60 = vsel %vm1728_vm11, %v1760_v28, %v1754_v57 }
 0x34e   : > { %8837 = vmatmul.mubr.msk.bf16.vlgmr.msra.gmra.mrb[12].mxu0 %vm1721_vm9, %v2312_v42 }
 0x34f   : > { %8840 = vmatprep.mubr.msk.bf16.mxu0 %vm1721_vm9, %v2313_v43  ;;  %8845 = vmatpush3.bf16.msra.mxu0 %v2422_v48 }
 0x350   : > { %9269 = vmatprep.subr.msk.bf16.mxu0 %vm2420_vm12, %v8441_v49 }
 0x356   : > { %8841 = vmatmul.mubr.msk.bf16.gmra.mrb[16].mxu0 %vm1721_vm9, %v2314_v50 }
 0x357   : > { %8846 = vmatprep.mubr.msk.bf16.mxu0 %vm947_vm1, %v10432_v9 }
 0x35e   : > { %8847 = vmatmul.mubr.msk.bf16.vlgmr.msra.gmra.mrb[12].mxu0 %vm947_vm1, %v10439_v51 }
 0x35f   : > { %8850 = vmatprep.mubr.msk.bf16.mxu0 %vm947_vm1, %v10443_v52  ;;  %8855 = vmatpush3.bf16.msra.mxu0 %v2508_v53 }
 0x360   : > { %8864 = vmatprep.subr.bf16.mxu0 %v9418_v15 }
 0x366   : > { %8851 = vmatmul.mubr.msk.bf16.gmra.mrb[16].mxu0 %vm947_vm1, %v10452_v16 }
 0x367   : > { %8856 = vmatprep.mubr.msk.bf16.mxu0 %vm947_vm1, %v10302_v39 }
 0x36e   : > { %8857 = vmatmul.mubr.msk.bf16.vlgmr.msra.gmra.mrb[12].mxu0 %vm947_vm1, %v10298_v35 }
 0x36f   : > { %8860 = vmatprep.mubr.msk.bf16.mxu0 %vm947_vm1, %v10304_v44  ;;  %8865 = vmatpush3.bf16.msra.mxu0 %v9418_v15 }
 0x370   : > { %8866 = vmatprep.subr.bf16.mxu0 %v9419_v63 }
 0x373   : > { %8867 = vmatpush3.bf16.msra.mxu0 %v9419_v63 }
 0x376   : > { %8861 = vmatmul.mubr.msk.bf16.gmra.mrb[16].mxu0 %vm947_vm1, %v10306_v45 }
 0x411   : > { %v10464_v21 = vpop.f32.mrb[4].mxu0 }
 0x412   : > { %v8830_v22 = vpop.f32.mrb[5].mxu0 }
 0x413   : > { %v1432_v25 = vpop.f32.mrb[6].mxu0 }
 0x414   : > { %v8831_v54 = vpop.f32.mrb[7].mxu0 }
 0x419   : > { %v1800_v56 = vpop.f32.mrb[8].mxu0 }
 0x41a   : > { %v1801_v59 = vadd.f32 %v1800_v56, %v10472_v27  ;;  %v1802_v58 = vpop.f32.mrb[9].mxu0 }
 0x41b   : > { %v1804_v47 = vpop.f32.mrb[10].mxu0  ;;  %v1803_v62 = vadd.f32 %v1802_v58, %v10482_v60 }
 0x41c   : > { %v1805_v41 = vpop.f32.mrb[11].mxu0  ;;  %1811 = vrot.lane.b32.xlu1 %v1801_v59, %s9763_s13  ;;  %1808 = vrot.lane.b32.xlu0 %v1801_v59, %s9764_s16 }
 0x420   : > { %1818 = vrot.lane.b32.xlu1 %v1803_v62, %s9764_s16  ;;  %1814 = vrot.lane.b32.xlu0 %v1801_v59, %s9762_s29 }
 0x424   : > { %1824 = vrot.lane.b32.xlu1 %v1803_v62, %s9762_s29  ;;  %1821 = vrot.lane.b32.xlu0 %v1803_v62, %s9763_s13 }
 0x48e   : > { %v1812_v31 = vpop.permute.xlu1 %1811  ;;  %v1809_v0 = vpop.permute.xlu0 %1808 }
 0x48f   : > { %v1827_v1 = vcombine.low %v1801_v59, %v1812_v31  ;;  %v1828_v5 = vcombine.high %v1801_v59, %v1812_v31 }
 0x491   : > { %v1835_v37 = vrot.slane %v1827_v1, %v10089_v19  ;;  %v1842_v50 = vrot.slane %v1828_v5, %v10089_v19 }
 0x492   : > { %v1819_v3 = vpop.permute.xlu1 %1818  ;;  %v1815_v12 = vpop.permute.xlu0 %1814 }
 0x493   : > { %v1843_v2 = vcombine.low %v1809_v0, %v1815_v12  ;;  %v1844_v36 = vcombine.high %v1809_v0, %v1815_v12 }
 0x495   : > { %v1851_v6 = vrot.slane %v1843_v2, %v10089_v19  ;;  %v1858_v40 = vrot.slane %v1844_v36, %v10089_v19 }
 0x496   : > { %v1825_v13 = vpop.permute.xlu1 %1824  ;;  %v1822_v23 = vpop.permute.xlu0 %1821 }
 0x497   : > { %v1875_v42 = vcombine.low %v1819_v3, %v1825_v13  ;;  %v1876_v43 = vcombine.high %v1819_v3, %v1825_v13  ;;  %v1859_v48 = vcombine.low %v1803_v62, %v1822_v23  ;;  %v1860_v49 = vcombine.high %v1803_v62, %v1822_v23 }
 0x498   : > { %v1891_v53 = vcombine.low %v1835_v37, %v1851_v6  ;;  %v1892_v17 = vcombine.high %v1835_v37, %v1851_v6  ;;  %v1907_v25 = vcombine.low %v1842_v50, %v1858_v40  ;;  %v1908_v10 = vcombine.high %v1842_v50, %v1858_v40 }
 0x499   : > { %v1883_v18 = vrot.slane %v1875_v42, %v10089_v19  ;;  %v1890_v20 = vrot.slane %v1876_v43, %v10089_v19  ;;  %v1867_v22 = vrot.slane %v1859_v48, %v10089_v19  ;;  %v1874_v24 = vrot.slane %v1860_v49, %v10089_v19 }
 0x49a   : > { %v1899_v56 = vrot.slane %v1891_v53, %v10116_v32  ;;  %v1906_v28 = vrot.slane %v1892_v17, %v10116_v32  ;;  %v1915_v41 = vrot.slane %v1907_v25, %v10116_v32  ;;  %v1922_v15 = vrot.slane %v1908_v10, %v10116_v32 }
 0x49b   : > { %v1923_v54 = vcombine.low %v1867_v22, %v1883_v18  ;;  %v1924_v26 = vcombine.high %v1867_v22, %v1883_v18  ;;  %v1939_v55 = vcombine.low %v1874_v24, %v1890_v20  ;;  %v1940_v14 = vcombine.high %v1874_v24, %v1890_v20 }
 0x49d   : > { %v1931_v57 = vrot.slane %v1923_v54, %v10116_v32  ;;  %v1938_v59 = vrot.slane %v1924_v26, %v10116_v32  ;;  %v1947_v58 = vrot.slane %v1939_v55, %v10116_v32  ;;  %v1954_v47 = vrot.slane %v1940_v14, %v10116_v32 }
 0x49f   : > { %v1957_v62 = vcombine.low %v1906_v28, %v1938_v59  ;;  %v1958_v63 = vcombine.high %v1906_v28, %v1938_v59  ;;  %v1955_v31 = vcombine.low %v1899_v56, %v1931_v57  ;;  %v1956_v0 = vcombine.high %v1899_v56, %v1931_v57 }
 0x4a0   : > { %v1959_v3 = vcombine.low %v1915_v41, %v1947_v58  ;;  %v1960_v12 = vcombine.high %v1915_v41, %v1947_v58  ;;  %v1961_v1 = vcombine.low %v1922_v15, %v1954_v47  ;;  %v1962_v2 = vcombine.high %v1922_v15, %v1954_v47 }
 0x4a1   : > { %v2584_v36 = vpack.c.bf16 %v1958_v63, %v1957_v62  ;;  %v2583_v5 = vpack.c.bf16 %v1956_v0, %v1955_v31 }
 0x4a2   : > { %v8425_v6 = vpack.c.bf16 %v1959_v3, %v1955_v31  ;;  %v8427_v13 = vpack.c.bf16 %v1960_v12, %v1956_v0  ;;  %v8426_v23 = vpack.c.bf16 %v1961_v1, %v1957_v62  ;;  %v2585_v37 = vpack.c.bf16 %v1960_v12, %v1959_v3 }
 0x4a3   : > { %8868 = vmatprep.mubr.msk.bf16.mxu0 %vm1721_vm9, %v2583_v5  ;;  %v8428_v40 = vpack.c.bf16 %v1962_v2, %v1958_v63  ;;  %v2586_v10 = vpack.c.bf16 %v1962_v2, %v1961_v1  ;;  %v8456_v5 = vld [vmem:[%s12025_s3 + $0x2] sm:$0x1] }
 0x4a4   : > { %8869 = vmatmul.mubr.msk.bf16.vlgmr.msra.gmra.mrb[12].mxu0 %vm1721_vm9, %v2584_v36  ;;  %v1978_v42 = vrot.slane %v8425_v6, %v10089_v19  ;;  %v2012_v43 = vrot.slane %v8427_v13, %v10089_v19  ;;  %v1986_v48 = vrot.slane %v8426_v23, %v10089_v19  ;;  %v1430_v36 = vadd.f32 %v10464_v21, %v10211_v61 }
 0x4a5   : > { %8872 = vmatprep.mubr.msk.bf16.mxu0 %vm1721_vm9, %v2585_v37  ;;  %v2020_v49 = vrot.slane %v8428_v40, %v10089_v19  ;;  %9270 = vmatprep.subr.msk.bf16.mxu0 %vm2420_vm12, %v8456_v5  ;;  %v2708_v61 = vsel %vm2420_vm12, %v8456_v5, 0 }
 0x4a6   : > { %v1988_v50 = vcombine.high %v1978_v42, %v1986_v48  ;;  %v1987_v53 = vcombine.low %v1978_v42, %v1986_v48  ;;  %8877 = vmatpush3.bf16.msra.mxu0 %v2708_v61 }
 0x4a7   : > { %v2022_v17 = vcombine.high %v2012_v43, %v2020_v49  ;;  %v2021_v18 = vcombine.low %v2012_v43, %v2020_v49 }
 0x4a8   : > { %v2002_v20 = vrot.slane %v1988_v50, %v10116_v32  ;;  %v1995_v22 = vrot.slane %v1987_v53, %v10116_v32 }
 0x4a9   : > { %v2036_v24 = vrot.slane %v2022_v17, %v10116_v32  ;;  %v2029_v25 = vrot.slane %v2021_v18, %v10116_v32 }
 0x4aa   : > { %v2054_v54 = vshrl.u32 %v2002_v20, 16  ;;  %v2042_v26 = vshrl.u32 %v1995_v22, 16  ;;  %v2004_v56 = vcombine.high %v2002_v20, %v12056_v11  ;;  %v2003_v28 = vcombine.high %v1995_v22, %v12056_v11 }
 0x4ab   : > { %v2055_v55 = vshrl.u32 %v2036_v24, 16  ;;  %v2043_v14 = vshrl.u32 %v2029_v25, 16  ;;  %v2053_v57 = vpack.i.b16 %v2036_v24, %v2002_v20  ;;  %v2041_v59 = vpack.i.b16 %v2029_v25, %v1995_v22 }
 0x4ac   : > { %8873 = vmatmul.mubr.msk.bf16.gmra.mrb[16].mxu0 %vm1721_vm9, %v2586_v10  ;;  %v2038_v41 = vcombine.high %v2036_v24, %v12056_v11  ;;  %v2037_v15 = vcombine.high %v2029_v25, %v12056_v11  ;;  %v2060_v62 = vshrl.u32 %v2004_v56, 16  ;;  %v2048_v63 = vshrl.u32 %v2003_v28, 16 }
 0x4ad   : > { %v2056_v58 = vpack.i.b16 %v2055_v55, %v2054_v54  ;;  %v2044_v47 = vpack.i.b16 %v2043_v14, %v2042_v26 }
 0x4ae   : > { %v2059_v31 = vpack.i.b16 %v2038_v41, %v2004_v56  ;;  %v2047_v0 = vpack.i.b16 %v2037_v15, %v2003_v28  ;;  %v2061_v3 = vshrl.u32 %v2038_v41, 16  ;;  %v2049_v12 = vshrl.u32 %v2037_v15, 16 }
 0x4af   : > { %2069 = vrot.lane.b32.xlu1 %v2056_v58, %s9762_s29  ;;  %2063 = vrot.lane.b32.xlu0 %v2044_v47, %s9762_s29 }
 0x4b0   : > { %v2062_v1 = vpack.i.b16 %v2061_v3, %v2060_v62  ;;  %v2050_v2 = vpack.i.b16 %v2049_v12, %v2048_v63 }
 0x4b3   : > { %2071 = vrot.lane.b32.xlu1 %v2059_v31, %s9763_s13  ;;  %2065 = vrot.lane.b32.xlu0 %v2047_v0, %s9763_s13 }
 0x4b7   : > { %2073 = vrot.lane.b32.xlu1 %v2062_v1, %s9764_s16  ;;  %2067 = vrot.lane.b32.xlu0 %v2050_v2, %s9764_s16 }
 0x4bb   : > { %1439 = vrot.lane.b32.xlu1 %v1430_v36, %s9755_s6  ;;  %1436 = vrot.lane.b32.xlu0 %v1430_v36, %s9756_s26  ;;  %s12137_s26 = sld [smem:[#allocation37_spill]]  ;;  %s12158_s6 = sld [smem:[#allocation41_spill]] }
 0x4bf   : > { %1445 = vrot.lane.b32.xlu1 %v1430_v36, %s9757_s24  ;;  %1442 = vrot.lane.b32.xlu0 %v1430_v36, %s9758_s30  ;;  %s12172_s30 = sld [smem:[#allocation42_spill]] }
 0x4c3   : > { %1451 = vrot.lane.b32.xlu1 %v1430_v36, %s9759_s28  ;;  %1448 = vrot.lane.b32.xlu0 %v1430_v36, %s9760_s14 }
 0x4c7   : > { %1454 = vrot.lane.b32.xlu0 %v1430_v36, %s9761_s17  ;;  %s12144_s17 = sld [smem:[#allocation39_spill]] }
 0x521   : > { %v2070_v21 = vpop.permute.xlu1 %2069  ;;  %v2064_v6 = vpop.permute.xlu0 %2063 }
 0x522   : > { %v2084_v37 = vsel %vm1721_vm9, %v2053_v57, %v2070_v21  ;;  %v2077_v40 = vsel %vm1721_vm9, %v2041_v59, %v2064_v6 }
 0x525   : > { %v2072_v13 = vpop.permute.xlu1 %2071  ;;  %v2066_v23 = vpop.permute.xlu0 %2065 }
 0x526   : > { %v2086_v42 = vsel %vm1725_vm10, %v2084_v37, %v2072_v13  ;;  %v2079_v43 = vsel %vm1725_vm10, %v2077_v40, %v2066_v23 }
 0x529   : > { %v2074_v48 = vpop.permute.xlu1 %2073  ;;  %v2068_v49 = vpop.permute.xlu0 %2067 }
 0x52a   : > { %v2088_v50 = vsel %vm1728_vm11, %v2086_v42, %v2074_v48  ;;  %v2081_v53 = vsel %vm1728_vm11, %v2079_v43, %v2068_v49 }
 0x52b   : > { %8429 = vmatprep.subr.msk.bf16.mxu1 %vm1063_vm8, %v2088_v50  ;;  %v2089_v17 = vsel %vm1063_vm8, %v2081_v53, 0 }
 0x52c   : > { %2094 = vmatpush1.bf16.msra.mxu1 %v2089_v17 }
 0x52d   : > { %v1440_v18 = vpop.permute.xlu1 %1439  ;;  %v1437_v20 = vpop.permute.xlu0 %1436 }
 0x52e   : > { %v1457_v10 = vcombine.low %v1430_v36, %v1440_v18  ;;  %v1458_v14 = vcombine.high %v1430_v36, %v1440_v18 }
 0x52f   : > { %8430 = vmatmul.mubr.msk.bf16.vlgmr.msra.gmra.mrb[0].mxu1 %vm957_vm4, %v10194_v46 }
 0x530   : > { %3122 = vmatprep.mubr.bf16.mxu1 %v12056_v11  ;;  %v1465_v59 = vrot.slane %v1457_v10, %v10089_v19  ;;  %v1472_v62 = vrot.slane %v1458_v14, %v10089_v19 }
 0x531   : > { %v1446_v22 = vpop.permute.xlu1 %1445  ;;  %v1443_v24 = vpop.permute.xlu0 %1442 }
 0x532   : > { %v1473_v25 = vcombine.low %v1437_v20, %v1443_v24  ;;  %v1474_v54 = vcombine.high %v1437_v20, %v1443_v24 }
 0x534   : > { %v1481_v56 = vrot.slane %v1473_v25, %v10089_v19  ;;  %v1488_v58 = vrot.slane %v1474_v54, %v10089_v19 }
 0x535   : > { %v1452_v26 = vpop.permute.xlu1 %1451  ;;  %v1449_v55 = vpop.permute.xlu0 %1448 }
 0x536   : > { %v1489_v28 = vcombine.low %v1446_v22, %v1452_v26  ;;  %v1490_v57 = vcombine.high %v1446_v22, %v1452_v26  ;;  %v1521_v63 = vcombine.low %v1465_v59, %v1481_v56  ;;  %v1522_v31 = vcombine.high %v1465_v59, %v1481_v56  ;;  %v9561_v59 = vld [vmem:[%s10061_s8 + $0x18] sm:$0xff] }
 0x537   : > { %v1537_v2 = vcombine.low %v1472_v62, %v1488_v58  ;;  %v1538_v13 = vcombine.high %v1472_v62, %v1488_v58 }
 0x538   : > { %v1497_v0 = vrot.slane %v1489_v28, %v10089_v19  ;;  %v1504_v3 = vrot.slane %v1490_v57, %v10089_v19  ;;  %v1529_v6 = vrot.slane %v1521_v63, %v10116_v32  ;;  %v1536_v23 = vrot.slane %v1522_v31, %v10116_v32  ;;  %v9560_v28 = vld [vmem:[%s10061_s8 + $0x10] sm:$0xff]  ;;  %v9564_v63 = vld [vmem:[%s10061_s8 + $0x20] sm:$0xff] }
 0x539   : > { %v1455_v47 = vpop.permute.xlu0 %1454  ;;  %v1545_v43 = vrot.slane %v1537_v2, %v10116_v32  ;;  %v1552_v18 = vrot.slane %v1538_v13, %v10116_v32 }
 0x53a   : > { %v1505_v41 = vcombine.low %v1449_v55, %v1455_v47  ;;  %v1506_v15 = vcombine.high %v1449_v55, %v1455_v47  ;;  %v9562_v47 = vld [vmem:[%s10061_s8] sm:$0xff] }
 0x53c   : > { %v1513_v12 = vrot.slane %v1505_v41, %v10089_v19  ;;  %v1520_v1 = vrot.slane %v1506_v15, %v10089_v19  ;;  %v9563_v15 = vld [vmem:[%s10061_s8 + $0x8] sm:$0xff] }
 0x53e   : > { %v1553_v36 = vcombine.low %v1497_v0, %v1513_v12  ;;  %v1554_v5 = vcombine.high %v1497_v0, %v1513_v12  ;;  %v1569_v61 = vcombine.low %v1504_v3, %v1520_v1  ;;  %v1570_v21 = vcombine.high %v1504_v3, %v1520_v1  ;;  %v9565_v0 = vld [vmem:[%s10061_s8 + $0x28] sm:$0xff] }
 0x540   : > { %v1561_v37 = vrot.slane %v1553_v36, %v10116_v32  ;;  %v1568_v40 = vrot.slane %v1554_v5, %v10116_v32  ;;  %v1577_v42 = vrot.slane %v1569_v61, %v10116_v32  ;;  %v1584_v48 = vrot.slane %v1570_v21, %v10116_v32  ;;  %v9566_v61 = vld [vmem:[%s10061_s8 + $0x30] sm:$0xff] }
 0x542   : > { %v1585_v49 = vcombine.low %v1529_v6, %v1561_v37  ;;  %v1586_v50 = vcombine.high %v1529_v6, %v1561_v37  ;;  %v1587_v53 = vcombine.low %v1536_v23, %v1568_v40  ;;  %v1588_v17 = vcombine.high %v1536_v23, %v1568_v40  ;;  %v9567_v6 = vld [vmem:[%s10061_s8 + $0x38] sm:$0xff] }
 0x543   : > { %v1589_v20 = vcombine.low %v1545_v43, %v1577_v42  ;;  %v1590_v22 = vcombine.high %v1545_v43, %v1577_v42  ;;  %v1591_v26 = vcombine.low %v1552_v18, %v1584_v48  ;;  %v1592_v55 = vcombine.high %v1552_v18, %v1584_v48 }
 0x544   : > { %v1595_v24 = vmul.f32 2.0, %v1587_v53  ;;  %v1596_v25 = vmul.f32 2.0, %v1588_v17  ;;  %v1593_v10 = vmul.f32 2.0, %v1585_v49  ;;  %v1594_v54 = vmul.f32 2.0, %v1586_v50  ;;  %v9420_v50 = vld [vmem:[%s12026_s4 + $0x20] sm:$0xff]   ;;  %v9421_v53 = vld [vmem:[%s12026_s4 + $0x28] sm:$0xff]  }
 0x545   : > { %v1597_v14 = vmul.f32 2.0, %v1589_v20  ;;  %v1598_v56 = vmul.f32 2.0, %v1590_v22  ;;  %v1599_v2 = vmul.f32 2.0, %v1591_v26  ;;  %v1600_v36 = vmul.f32 2.0, %v1592_v55  ;;  %8886 = vmatprep.subr.bf16.mxu0 %v9420_v50 }
 0x546   : > { %v1603_v57 = vsub.f32 %v1595_v24, %v9560_v28  ;;  %v1604_v58 = vsub.f32 %v1596_v25, %v9561_v59  ;;  %v1601_v41 = vsub.f32 %v1593_v10, %v9562_v47  ;;  %v1602_v62 = vsub.f32 %v1594_v54, %v9563_v15 }
 0x547   : > { %v1605_v31 = vsub.f32 %v1597_v14, %v9564_v63  ;;  %v1606_v3 = vsub.f32 %v1598_v56, %v9565_v0  ;;  %v1607_v21 = vsub.f32 %v1599_v2, %v9566_v61  ;;  %v1608_v13 = vsub.f32 %v1600_v36, %v9567_v6 }
 0x548   : > { %v10577_v12 = vpack.c.bf16 %v1604_v58, %v1603_v57  ;;  %v10579_v1 = vpack.c.bf16 %v1602_v62, %v1601_v41 }
 0x549   : > { %v10583_v5 = vpack.c.bf16 %v1606_v3, %v1605_v31  ;;  %v10591_v23 = vpack.c.bf16 %v1608_v13, %v1607_v21 }
 0x54a   : > { %8878 = vmatprep.mubr.msk.bf16.mxu0 %vm947_vm1, %v10579_v1 }
 0x54b   : > { %8879 = vmatmul.mubr.msk.bf16.vlgmr.msra.gmra.mrb[12].mxu0 %vm947_vm1, %v10577_v12 }
 0x54c   : > { %8882 = vmatprep.mubr.msk.bf16.mxu0 %vm947_vm1, %v10583_v5  ;;  %8887 = vmatpush3.bf16.msra.mxu0 %v9420_v50 }
 0x54d   : > { %8888 = vmatprep.subr.bf16.mxu0 %v9421_v53 }
 0x550   : > { %8889 = vmatpush3.bf16.msra.mxu0 %v9421_v53 }
 0x553   : > { %8883 = vmatmul.mubr.msk.bf16.gmra.mrb[16].mxu0 %vm947_vm1, %v10591_v23 }
 0x602   : > { %v2127_v37 = vpop.f32.mrb[0].mxu1 }
 0x603   : > { %v2128_v40 = vadd.f32 %v2127_v37, %v10472_v27  ;;  %v2129_v42 = vpop.f32.mrb[1].mxu1 }
 0x604   : > { %v2131_v43 = vpop.f32.mrb[2].mxu1  ;;  %v2130_v49 = vadd.f32 %v2129_v42, %v10482_v60 }
 0x605   : > { %v2132_v48 = vpop.f32.mrb[3].mxu1  ;;  %2138 = vrot.lane.b32.xlu0 %v2128_v40, %s9763_s13  ;;  %2135 = vrot.lane.b32.xlu1 %v2128_v40, %s9764_s16 }
 0x609   : > { %2145 = vrot.lane.b32.xlu0 %v2130_v49, %s9764_s16  ;;  %2141 = vrot.lane.b32.xlu1 %v2128_v40, %s9762_s29 }
 0x60d   : > { %2151 = vrot.lane.b32.xlu0 %v2130_v49, %s9762_s29  ;;  %2148 = vrot.lane.b32.xlu1 %v2130_v49, %s9763_s13 }
 0x677   : > { %v2136_v17 = vpop.permute.xlu1 %2135  ;;  %v2139_v18 = vpop.permute.xlu0 %2138 }
 0x678   : > { %v2154_v24 = vcombine.low %v2128_v40, %v2139_v18  ;;  %v2155_v54 = vcombine.high %v2128_v40, %v2139_v18 }
 0x67a   : > { %v2162_v56 = vrot.slane %v2154_v24, %v10089_v19  ;;  %v2169_v41 = vrot.slane %v2155_v54, %v10089_v19 }
 0x67b   : > { %v2142_v20 = vpop.permute.xlu1 %2141  ;;  %v2146_v22 = vpop.permute.xlu0 %2145 }
 0x67c   : > { %v2170_v25 = vcombine.low %v2136_v17, %v2142_v20  ;;  %v2171_v10 = vcombine.high %v2136_v17, %v2142_v20 }
 0x67e   : > { %v2178_v26 = vrot.slane %v2170_v25, %v10089_v19  ;;  %v2185_v28 = vrot.slane %v2171_v10, %v10089_v19 }
 0x67f   : > { %v2149_v55 = vpop.permute.xlu1 %2148  ;;  %v2152_v14 = vpop.permute.xlu0 %2151 }
 0x680   : > { %v2186_v57 = vcombine.low %v2130_v49, %v2149_v55  ;;  %v2187_v59 = vcombine.high %v2130_v49, %v2149_v55  ;;  %v2202_v58 = vcombine.low %v2146_v22, %v2152_v14  ;;  %v2203_v47 = vcombine.high %v2146_v22, %v2152_v14 }
 0x681   : > { %v2218_v15 = vcombine.low %v2162_v56, %v2178_v26  ;;  %v2219_v62 = vcombine.high %v2162_v56, %v2178_v26  ;;  %v2234_v2 = vcombine.low %v2169_v41, %v2185_v28  ;;  %v2235_v37 = vcombine.high %v2169_v41, %v2185_v28 }
 0x682   : > { %v2194_v63 = vrot.slane %v2186_v57, %v10089_v19  ;;  %v2201_v31 = vrot.slane %v2187_v59, %v10089_v19  ;;  %v2210_v0 = vrot.slane %v2202_v58, %v10089_v19  ;;  %v2217_v3 = vrot.slane %v2203_v47, %v10089_v19 }
 0x683   : > { %v2226_v13 = vrot.slane %v2218_v15, %v10116_v32  ;;  %v2233_v40 = vrot.slane %v2219_v62, %v10116_v32  ;;  %v2242_v49 = vrot.slane %v2234_v2, %v10116_v32  ;;  %v2249_v22 = vrot.slane %v2235_v37, %v10116_v32 }
 0x684   : > { %v2250_v36 = vcombine.low %v2194_v63, %v2210_v0  ;;  %v2251_v61 = vcombine.high %v2194_v63, %v2210_v0  ;;  %v2266_v21 = vcombine.low %v2201_v31, %v2217_v3  ;;  %v2267_v6 = vcombine.high %v2201_v31, %v2217_v3 }
 0x686   : > { %v2258_v42 = vrot.slane %v2250_v36, %v10116_v32  ;;  %v2265_v43 = vrot.slane %v2251_v61, %v10116_v32  ;;  %v2274_v48 = vrot.slane %v2266_v21, %v10116_v32  ;;  %v2281_v50 = vrot.slane %v2267_v6, %v10116_v32  ;;  %v8471_v6 = vld [vmem:[%s12029_s7] ss:$0 sm:$0xff] }
 0x688   : > { %v2282_v53 = vcombine.low %v2226_v13, %v2258_v42  ;;  %v2283_v17 = vcombine.high %v2226_v13, %v2258_v42  ;;  %v2284_v18 = vcombine.low %v2233_v40, %v2265_v43  ;;  %v2285_v20 = vcombine.high %v2233_v40, %v2265_v43 }
 0x689   : > { %v2286_v24 = vcombine.low %v2242_v49, %v2274_v48  ;;  %v2287_v25 = vcombine.high %v2242_v49, %v2274_v48  ;;  %v2288_v14 = vcombine.low %v2249_v22, %v2281_v50  ;;  %v2289_v56 = vcombine.high %v2249_v22, %v2281_v50 }
 0x68a   : > { %v2292_v10 = vmul.f32 2.0, %v2284_v18  ;;  %v2293_v54 = vmul.f32 2.0, %v2285_v20  ;;  %v2290_v26 = vmul.f32 2.0, %v2282_v53  ;;  %v2291_v55 = vmul.f32 2.0, %v2283_v17 }
 0x68b   : > { %v2294_v28 = vmul.f32 2.0, %v2286_v24  ;;  %v2295_v57 = vmul.f32 2.0, %v2287_v25  ;;  %v2296_v0 = vmul.f32 2.0, %v2288_v14  ;;  %v2297_v3 = vmul.f32 2.0, %v2289_v56 }
 0x68c   : > { %v2300_v59 = vsub.f32 %v2292_v10, %v10261_v8  ;;  %v2301_v58 = vsub.f32 %v2293_v54, %v10269_v33  ;;  %v2298_v47 = vsub.f32 %v2290_v26, %v10257_v4  ;;  %v2299_v41 = vsub.f32 %v2291_v55, %v10259_v7 }
 0x68d   : > { %v2302_v15 = vsub.f32 %v2294_v28, %v10265_v29  ;;  %v2303_v62 = vsub.f32 %v2295_v57, %v10271_v34  ;;  %v2304_v36 = vsub.f32 %v2296_v0, %v10267_v30  ;;  %v2305_v61 = vsub.f32 %v2297_v3, %v10274_v38 }
 0x68e   : > { %v2784_v63 = vpack.c.bf16 %v2301_v58, %v2300_v59  ;;  %v2783_v31 = vpack.c.bf16 %v2299_v41, %v2298_v47 }
 0x68f   : > { %v2785_v2 = vpack.c.bf16 %v2303_v62, %v2302_v15  ;;  %v2786_v21 = vpack.c.bf16 %v2305_v61, %v2304_v36 }
 0x690   : > { %8890 = vmatprep.mubr.msk.bf16.mxu0 %vm1721_vm9, %v2783_v31 }
 0x691   : > { %8891 = vmatmul.mubr.msk.bf16.vlgmr.msra.gmra.mrb[12].mxu0 %vm1721_vm9, %v2784_v63 }
 0x692   : > { %8894 = vmatprep.mubr.msk.bf16.mxu0 %vm1721_vm9, %v2785_v2 }
 0x699   : > { %8895 = vmatmul.mubr.msk.bf16.gmra.mrb[16].mxu0 %vm1721_vm9, %v2786_v21 }
 0x69a   : > { %4798 = vmatprep.mubr.bf16.mxu0 %v12056_v11 }
 0x764   : > { %v8892_v13 = vpop.f32.mrb[12].mxu0 }
 0x765   : > { %v2898_v37 = vadd.f32 %v8892_v13, %v8471_v6  ;;  %v2850_v40 = vpop.f32.mrb[13].mxu0 }
 0x766   : > { %v2896_v42 = vadd.f32 %v8471_v6, %v2850_v40  ;;  %v8893_v43 = vpop.f32.mrb[14].mxu0 }
 0x767   : > { %v8474_v48 = vmul.f32 -1.442695, %v2898_v37  ;;  %v2899_v49 = vadd.f32 %v8893_v43, %v8471_v6  ;;  %v2853_v50 = vpop.f32.mrb[15].mxu0 }
 0x768   : > { %v8472_v53 = vmul.f32 -1.442695, %v2896_v42  ;;  %v2897_v17 = vadd.f32 %v8471_v6, %v2853_v50 }
 0x769   : > { %9464 = vpow2.f32 %v8474_v48  ;;  %v8475_v18 = vmul.f32 -1.442695, %v2899_v49 }
 0x76a   : > { %9466 = vpow2.f32 %v8472_v53  ;;  %v8473_v20 = vmul.f32 -1.442695, %v2897_v17 }
 0x76b   : > { %9468 = vpow2.f32 %v8475_v18 }
 0x76c   : > { %9470 = vpow2.f32 %v8473_v20  ;;  %v8896_v22 = vpop.f32.mrb[16].mxu0 }
 0x76d   : > { %v2902_v24 = vadd.f32 %v8896_v22, %v8471_v6  ;;  %v2866_v25 = vpop.f32.mrb[17].mxu0 }
 0x76e   : > { %v2900_v10 = vadd.f32 %v8471_v6, %v2866_v25  ;;  %v8897_v54 = vpop.f32.mrb[18].mxu0 }
 0x76f   : > { %v8478_v26 = vmul.f32 -1.442695, %v2902_v24  ;;  %v2903_v55 = vadd.f32 %v8897_v54, %v8471_v6  ;;  %v2869_v14 = vpop.f32.mrb[19].mxu0 }
 0x770   : > { %v8476_v56 = vmul.f32 -1.442695, %v2900_v10  ;;  %v2901_v28 = vadd.f32 %v8471_v6, %v2869_v14 }
 0x771   : > { %9472 = vpow2.f32 %v8478_v26  ;;  %v8479_v57 = vmul.f32 -1.442695, %v2903_v55 }
 0x772   : > { %9474 = vpow2.f32 %v8476_v56  ;;  %v8477_v59 = vmul.f32 -1.442695, %v2901_v28 }
 0x773   : > { %v9465_v58 = vpop.eup %9464  ;;  %9476 = vpow2.f32 %v8479_v57 }
 0x774   : > { %v9467_v47 = vpop.eup %9466  ;;  %9478 = vpow2.f32 %v8477_v59  ;;  %v2930_v62 = vadd.f32 1.0, %v9465_v58 }
 0x775   : > { %v9469_v41 = vpop.eup %9468  ;;  %v2928_v63 = vadd.f32 1.0, %v9467_v47 }
 0x776   : > { %v9471_v15 = vpop.eup %9470  ;;  %v2931_v31 = vadd.f32 1.0, %v9469_v41  ;;  %9480 = vrcp.f32 %v2930_v62 }
 0x777   : > { %v2929_v0 = vadd.f32 1.0, %v9471_v15  ;;  %9482 = vrcp.f32 %v2928_v63 }
 0x778   : > { %9484 = vrcp.f32 %v2931_v31 }
 0x779   : > { %9486 = vrcp.f32 %v2929_v0 }
 0x77b   : > { %v9473_v3 = vpop.eup %9472 }
 0x77c   : > { %v9475_v2 = vpop.eup %9474  ;;  %v2934_v36 = vadd.f32 1.0, %v9473_v3 }
 0x77d   : > { %v9477_v61 = vpop.eup %9476  ;;  %v2932_v21 = vadd.f32 1.0, %v9475_v2 }
 0x77e   : > { %v9479_v6 = vpop.eup %9478  ;;  %9488 = vrcp.f32 %v2934_v36  ;;  %v2935_v13 = vadd.f32 1.0, %v9477_v61 }
 0x77f   : > { %9490 = vrcp.f32 %v2932_v21  ;;  %v2933_v37 = vadd.f32 1.0, %v9479_v6 }
 0x780   : > { %9492 = vrcp.f32 %v2935_v13  ;;  %v10641_v40 = vpop.eup %9480 }
 0x781   : > { %9494 = vrcp.f32 %v2933_v37  ;;  %12126 = vst [vmem:[#allocation29_spill] sm:$0xff] %v10641_v40  ;;  %v10643_v42 = vpop.eup %9482  ;;  %v10655_v53 = vmul.f32 %v10641_v40, %v10261_v8 }
 0x782   : > { %12127 = vst [vmem:[#allocation30_spill] sm:$0xff] %v10643_v42  ;;  %v10645_v43 = vpop.eup %9484  ;;  %v10665_v20 = vmul.f32 %v10643_v42, %v10257_v4 }
 0x783   : > { %12128 = vst [vmem:[#allocation31_spill] sm:$0xff] %v10645_v43  ;;  %v10647_v48 = vpop.eup %9486  ;;  %v10675_v25 = vmul.f32 %v10645_v43, %v10269_v33 }
 0x784   : > { %12129 = vst [vmem:[#allocation32_spill] sm:$0xff] %v10647_v48  ;;  %v10685_v26 = vmul.f32 %v10647_v48, %v10259_v7 }
 0x788   : > { %v10649_v49 = vpop.eup %9488 }
 0x789   : > { %12130 = vst [vmem:[#allocation33_spill] sm:$0xff] %v10649_v49  ;;  %v10651_v50 = vpop.eup %9490  ;;  %v10659_v17 = vmul.f32 %v10649_v49, %v10267_v30 }
 0x78a   : > { %12131 = vst [vmem:[#allocation34_spill] sm:$0xff] %v10651_v50  ;;  %v10661_v18 = vpop.eup %9492  ;;  %v10669_v22 = vmul.f32 %v10651_v50, %v10265_v29  ;;  %v12134_v50 = vmov 0  }
 0x78b   : > { %12132 = vst [vmem:[#allocation35_spill] sm:$0xff] %v10661_v18  ;;  %v10671_v24 = vpop.eup %9494  ;;  %v10679_v10 = vmul.f32 %v10661_v18, %v10274_v38  ;;  %v8481_v54 = vpack.c.bf16 %v10659_v17, %v10655_v53 }
 0x78c   : > { %12133 = vst [vmem:[#allocation36_spill] sm:$0xff] %v10671_v24  ;;  %v10689_v55 = vmul.f32 %v10671_v24, %v10271_v34  ;;  %v8480_v14 = vpack.c.bf16 %v10669_v22, %v10665_v20 }
 0x78d   : > { %v2983_v56 = vrot.slane %v8481_v54, %v10089_v19  ;;  %v8483_v28 = vpack.c.bf16 %v10679_v10, %v10675_v25 }
 0x78e   : > { %v2975_v57 = vrot.slane %v8480_v14, %v10089_v19  ;;  %v8482_v59 = vpack.c.bf16 %v10689_v55, %v10685_v26 }
 0x78f   : > { %v3017_v58 = vrot.slane %v8483_v28, %v10089_v19 }
 0x790   : > { %v2985_v47 = vcombine.high %v2975_v57, %v2983_v56  ;;  %v3009_v41 = vrot.slane %v8482_v59, %v10089_v19  ;;  %v2984_v15 = vcombine.low %v2975_v57, %v2983_v56 }
 0x792   : > { %v2999_v62 = vrot.slane %v2985_v47, %v10116_v32  ;;  %v3019_v63 = vcombine.high %v3009_v41, %v3017_v58  ;;  %v2992_v31 = vrot.slane %v2984_v15, %v10116_v32  ;;  %v3018_v0 = vcombine.low %v3009_v41, %v3017_v58 }
 0x794   : > { %v3033_v3 = vrot.slane %v3019_v63, %v10116_v32  ;;  %v3026_v2 = vrot.slane %v3018_v0, %v10116_v32  ;;  %v3051_v36 = vshrl.u32 %v2999_v62, 16  ;;  %v3039_v21 = vshrl.u32 %v2992_v31, 16 }
 0x795   : > { %v3001_v57 = vcombine.high %v2999_v62, %v12056_v11  ;;  %v3000_v59 = vcombine.high %v2992_v31, %v12056_v11 }
 0x796   : > { %v3052_v61 = vshrl.u32 %v3033_v3, 16  ;;  %v3040_v6 = vshrl.u32 %v3026_v2, 16  ;;  %v3050_v13 = vpack.i.b16 %v3033_v3, %v2999_v62  ;;  %v3038_v37 = vpack.i.b16 %v3026_v2, %v2992_v31 }
 0x797   : > { %v3035_v56 = vcombine.high %v3033_v3, %v12056_v11  ;;  %v3034_v28 = vcombine.high %v3026_v2, %v12056_v11  ;;  %v3057_v63 = vshrl.u32 %v3001_v57, 16  ;;  %v3045_v0 = vshrl.u32 %v3000_v59, 16 }
 0x798   : > { %v3053_v54 = vpack.i.b16 %v3052_v61, %v3051_v36  ;;  %v3041_v14 = vpack.i.b16 %v3040_v6, %v3039_v21 }
 0x799   : > { %v3056_v58 = vpack.i.b16 %v3035_v56, %v3001_v57  ;;  %v3044_v47 = vpack.i.b16 %v3034_v28, %v3000_v59  ;;  %v3058_v41 = vshrl.u32 %v3035_v56, 16  ;;  %v3046_v15 = vshrl.u32 %v3034_v28, 16 }
 0x79a   : > { %3066 = vrot.lane.b32.xlu0 %v3053_v54, %s9762_s29  ;;  %3060 = vrot.lane.b32.xlu1 %v3041_v14, %s9762_s29 }
 0x79b   : > { %v3059_v3 = vpack.i.b16 %v3058_v41, %v3057_v63  ;;  %v3047_v2 = vpack.i.b16 %v3046_v15, %v3045_v0 }
 0x79e   : > { %3068 = vrot.lane.b32.xlu0 %v3056_v58, %s9763_s13  ;;  %3062 = vrot.lane.b32.xlu1 %v3044_v47, %s9763_s13 }
 0x7a2   : > { %3070 = vrot.lane.b32.xlu0 %v3059_v3, %s9764_s16  ;;  %3064 = vrot.lane.b32.xlu1 %v3047_v2, %s9764_s16 }
 0x80c   : > { %v3067_v36 = vpop.permute.xlu0 %3066  ;;  %v3061_v62 = vpop.permute.xlu1 %3060 }
 0x80d   : > { %v3081_v21 = vsel %vm1721_vm9, %v3050_v13, %v3067_v36  ;;  %v3074_v6 = vsel %vm1721_vm9, %v3038_v37, %v3061_v62 }
 0x810   : > { %v3069_v61 = vpop.permute.xlu0 %3068  ;;  %v3063_v31 = vpop.permute.xlu1 %3062 }
 0x811   : > { %v3083_v54 = vsel %vm1725_vm10, %v3081_v21, %v3069_v61  ;;  %v3076_v14 = vsel %vm1725_vm10, %v3074_v6, %v3063_v31 }
 0x814   : > { %v3071_v56 = vpop.permute.xlu0 %3070  ;;  %v3065_v28 = vpop.permute.xlu1 %3064 }
 0x815   : > { %v3085_v57 = vsel %vm1728_vm11, %v3083_v54, %v3071_v56  ;;  %v3078_v59 = vsel %vm1728_vm11, %v3076_v14, %v3065_v28 }
 0x816   : > { %v3086_v58 = vsel %vm1063_vm8, %v3078_v59, 0  ;;  %8484 = vmatprep.subr.msk.bf16.mxu1 %vm1063_vm8, %v3085_v57 }
 0x817   : > { %3091 = vmatpush1.bf16.msra.mxu1 %v3086_v58 }
 0x81a   : > { %8485 = vmatmul.mubr.msk.bf16.vlgmr.msra.gmra.mrb[4].mxu1 %vm957_vm4, %v10194_v46 }
 0x81b   : > { %3449 = vmatprep.mubr.bf16.mxu1 %v12056_v11 }
 0x8ed   : > { %v3124_v13 = vpop.f32.mrb[4].mxu1 }
 0x8ee   : > { %v3125_v37 = vadd.f32 %v3124_v13, %v10472_v27  ;;  %v3126_v47 = vpop.f32.mrb[5].mxu1 }
 0x8ef   : > { %v3128_v41 = vpop.f32.mrb[6].mxu1  ;;  %v3127_v63 = vadd.f32 %v3126_v47, %v10482_v60 }
 0x8f0   : > { %v3129_v15 = vpop.f32.mrb[7].mxu1  ;;  %3135 = vrot.lane.b32.xlu0 %v3125_v37, %s9763_s13  ;;  %3132 = vrot.lane.b32.xlu1 %v3125_v37, %s9764_s16 }
 0x8f4   : > { %3142 = vrot.lane.b32.xlu0 %v3127_v63, %s9764_s16  ;;  %3138 = vrot.lane.b32.xlu1 %v3125_v37, %s9762_s29 }
 0x8f8   : > { %3148 = vrot.lane.b32.xlu0 %v3127_v63, %s9762_s29  ;;  %3145 = vrot.lane.b32.xlu1 %v3127_v63, %s9763_s13 }
 0x962   : > { %v3136_v0 = vpop.permute.xlu0 %3135  ;;  %v3133_v3 = vpop.permute.xlu1 %3132 }
 0x963   : > { %v3151_v62 = vcombine.low %v3125_v37, %v3136_v0  ;;  %v3152_v21 = vcombine.high %v3125_v37, %v3136_v0 }
 0x965   : > { %v3159_v56 = vrot.slane %v3151_v62, %v10089_v19  ;;  %v3166_v47 = vrot.slane %v3152_v21, %v10089_v19 }
 0x966   : > { %v3143_v2 = vpop.permute.xlu0 %3142  ;;  %v3139_v36 = vpop.permute.xlu1 %3138 }
 0x967   : > { %v3167_v61 = vcombine.low %v3133_v3, %v3139_v36  ;;  %v3168_v31 = vcombine.high %v3133_v3, %v3139_v36 }
 0x969   : > { %v3175_v6 = vrot.slane %v3167_v61, %v10089_v19  ;;  %v3182_v28 = vrot.slane %v3168_v31, %v10089_v19 }
 0x96a   : > { %v3149_v54 = vpop.permute.xlu0 %3148  ;;  %v3146_v14 = vpop.permute.xlu1 %3145 }
 0x96b   : > { %v3199_v57 = vcombine.low %v3143_v2, %v3149_v54  ;;  %v3200_v59 = vcombine.high %v3143_v2, %v3149_v54  ;;  %v3183_v58 = vcombine.low %v3127_v63, %v3146_v14  ;;  %v3184_v13 = vcombine.high %v3127_v63, %v3146_v14 }
 0x96c   : > { %v3215_v41 = vcombine.low %v3159_v56, %v3175_v6  ;;  %v3216_v15 = vcombine.high %v3159_v56, %v3175_v6  ;;  %v3231_v36 = vcombine.low %v3166_v47, %v3182_v28  ;;  %v3232_v62 = vcombine.high %v3166_v47, %v3182_v28 }
 0x96d   : > { %v3207_v11 = vrot.slane %v3199_v57, %v10089_v19  ;;  %v3214_v37 = vrot.slane %v3200_v59, %v10089_v19  ;;  %v3191_v0 = vrot.slane %v3183_v58, %v10089_v19  ;;  %v3198_v3 = vrot.slane %v3184_v13, %v10089_v19 }
 0x96e   : > { %v3223_v63 = vrot.slane %v3215_v41, %v10116_v32  ;;  %v3230_v21 = vrot.slane %v3216_v15, %v10116_v32  ;;  %v3239_v57 = vrot.slane %v3231_v36, %v10116_v32  ;;  %v3246_v28 = vrot.slane %v3232_v62, %v10116_v32 }
 0x96f   : > { %v3247_v61 = vcombine.low %v3191_v0, %v3207_v11  ;;  %v3248_v31 = vcombine.high %v3191_v0, %v3207_v11  ;;  %v3263_v18 = vcombine.low %v3198_v3, %v3214_v37  ;;  %v3264_v2 = vcombine.high %v3198_v3, %v3214_v37 }
 0x971   : > { %v3255_v6 = vrot.slane %v3247_v61, %v10116_v32  ;;  %v3262_v54 = vrot.slane %v3248_v31, %v10116_v32  ;;  %v3271_v14 = vrot.slane %v3263_v18, %v10116_v32  ;;  %v3278_v56 = vrot.slane %v3264_v2, %v10116_v32 }
 0x973   : > { %v10750_v59 = vcombine.low %v3223_v63, %v3255_v6  ;;  %v10752_v11 = vcombine.high %v3223_v63, %v3255_v6  ;;  %v10754_v58 = vcombine.low %v3230_v21, %v3262_v54  ;;  %v10756_v13 = vcombine.high %v3230_v21, %v3262_v54 }
 0x974   : > { %v10758_v47 = vcombine.low %v3239_v57, %v3271_v14  ;;  %v10760_v41 = vcombine.high %v3239_v57, %v3271_v14  ;;  %v10762_v15 = vcombine.low %v3246_v28, %v3278_v56  ;;  %v10764_v18 = vcombine.high %v3246_v28, %v3278_v56 }
 0x976   : > { %v8486_v3 = vpack.c.bf16 %v10758_v47, %v10750_v59  ;;  %v8487_v36 = vpack.c.bf16 %v10762_v15, %v10754_v58  ;;  %v8488_v62 = vpack.c.bf16 %v10760_v41, %v10752_v11  ;;  %v8489_v61 = vpack.c.bf16 %v10764_v18, %v10756_v13 }
 0x978   : > { %v3302_v63 = vrot.slane %v8486_v3, %v10089_v19  ;;  %v3310_v21 = vrot.slane %v8487_v36, %v10089_v19  ;;  %v3336_v6 = vrot.slane %v8488_v62, %v10089_v19  ;;  %v3344_v54 = vrot.slane %v8489_v61, %v10089_v19 }
 0x97a   : > { %v3312_v14 = vcombine.high %v3302_v63, %v3310_v21  ;;  %v3346_v56 = vcombine.high %v3336_v6, %v3344_v54  ;;  %v3311_v57 = vcombine.low %v3302_v63, %v3310_v21  ;;  %v3345_v28 = vcombine.low %v3336_v6, %v3344_v54 }
 0x97c   : > { %v3326_v37 = vrot.slane %v3312_v14, %v10116_v32  ;;  %v3360_v0 = vrot.slane %v3346_v56, %v10116_v32  ;;  %v3319_v31 = vrot.slane %v3311_v57, %v10116_v32  ;;  %v3353_v2 = vrot.slane %v3345_v28, %v10116_v32 }
 0x97e   : > { %v3378_v49 = vshrl.u32 %v3326_v37, 16  ;;  %v3379_v3 = vshrl.u32 %v3360_v0, 16  ;;  %v3366_v24 = vshrl.u32 %v3319_v31, 16  ;;  %v3367_v36 = vshrl.u32 %v3353_v2, 16 }
 0x97f   : > { %v3328_v62 = vcombine.high %v3326_v37, %v12134_v50  ;;  %v3362_v61 = vcombine.high %v3360_v0, %v12134_v50  ;;  %v3327_v48 = vcombine.high %v3319_v31, %v12134_v50  ;;  %v3361_v63 = vcombine.high %v3353_v2, %v12134_v50 }
 0x980   : > { %v3380_v21 = vpack.i.b16 %v3379_v3, %v3378_v49  ;;  %v3368_v6 = vpack.i.b16 %v3367_v36, %v3366_v24  ;;  %v3377_v54 = vpack.i.b16 %v3360_v0, %v3326_v37  ;;  %v3365_v14 = vpack.i.b16 %v3353_v2, %v3319_v31 }
 0x981   : > { %v3383_v56 = vpack.i.b16 %v3362_v61, %v3328_v62  ;;  %v3371_v57 = vpack.i.b16 %v3361_v63, %v3327_v48  ;;  %v3384_v28 = vshrl.u32 %v3328_v62, 16  ;;  %v3385_v42 = vshrl.u32 %v3362_v61, 16 }
 0x982   : > { %3393 = vrot.lane.b32.xlu0 %v3380_v21, %s9762_s29  ;;  %3387 = vrot.lane.b32.xlu1 %v3368_v6, %s9762_s29  ;;  %v3372_v43 = vshrl.u32 %v3327_v48, 16  ;;  %v3373_v40 = vshrl.u32 %v3361_v63, 16  ;;  %v3631_v61 = vpack.c.bf16 %v10685_v26, %v10665_v20  ;;  %v3630_v63 = vld [vmem:[%s12137_s26] sm:$0x1]  ;;  %v3632_v21 = vpack.c.bf16 %v10675_v25, %v10655_v53 }
 0x983   : > { %v3386_v32 = vpack.i.b16 %v3385_v42, %v3384_v28  ;;  %v3729_v6 = vsel %vm2420_vm12, %v3630_v63, 0  ;;  %v9424_v28 = vld [vmem:[%s12136_s15 + $0x10] sm:$0xff]  }
 0x984   : > { %v3374_v50 = vpack.i.b16 %v3373_v40, %v3372_v43 }
 0x986   : > { %3395 = vrot.lane.b32.xlu0 %v3383_v56, %s9763_s13  ;;  %3389 = vrot.lane.b32.xlu1 %v3371_v57, %s9763_s13  ;;  %v3634_v56 = vpack.c.bf16 %v10679_v10, %v10659_v17 }
 0x98a   : > { %3397 = vrot.lane.b32.xlu0 %v3386_v32, %s9764_s16  ;;  %3391 = vrot.lane.b32.xlu1 %v3374_v50, %s9764_s16  ;;  %v9422_v32 = vld [vmem:[%s12135_s18] sm:$0xff]   ;;  %v9423_v50 = vld [vmem:[%s12136_s15 + $0x8] sm:$0xff]  }
 0x9f4   : > { %v3394_v49 = vpop.permute.xlu0 %3393  ;;  %v3388_v24 = vpop.permute.xlu1 %3387 }
 0x9f5   : > { %v3408_v31 = vsel %vm1721_vm9, %v3377_v54, %v3394_v49  ;;  %v3401_v2 = vsel %vm1721_vm9, %v3365_v14, %v3388_v24  ;;  %v3633_v54 = vpack.c.bf16 %v10689_v55, %v10669_v22  ;;  %v8502_v14 = vld [vmem:[%s12137_s26 + $0x1] sm:$0x1] }
 0x9f6   : > { %v3799_v57 = vsel %vm2420_vm12, %v8502_v14, 0 }
 0x9f8   : > { %v3396_v37 = vpop.permute.xlu0 %3395  ;;  %v3390_v0 = vpop.permute.xlu1 %3389 }
 0x9f9   : > { %v3410_v48 = vsel %vm1725_vm10, %v3408_v31, %v3396_v37  ;;  %v3403_v3 = vsel %vm1725_vm10, %v3401_v2, %v3390_v0 }
 0x9fc   : > { %v3398_v36 = vpop.permute.xlu0 %3397  ;;  %v3392_v62 = vpop.permute.xlu1 %3391 }
 0x9fd   : > { %v3412_v40 = vsel %vm1728_vm11, %v3410_v48, %v3398_v36  ;;  %v3405_v42 = vsel %vm1728_vm11, %v3403_v3, %v3392_v62 }
 0x9fe   : > { %v3413_v43 = vsel %vm1063_vm8, %v3405_v42, 0  ;;  %8490 = vmatprep.subr.msk.bf16.mxu1 %vm1063_vm8, %v3412_v40 }
 0x9ff   : > { %3418 = vmatpush1.bf16.msra.mxu1 %v3413_v43 }
 0xa00   : > { %8898 = vmatprep.subr.bf16.mxu1 %v9422_v32 }
 0xa02   : > { %8491 = vmatmul.mubr.msk.bf16.vlgmr.msra.gmra.mrb[8].mxu1 %vm957_vm4, %v10194_v46 }
 0xa03   : > { %8899 = vmatpush3.bf16.msra.mxu1 %v9422_v32  ;;  %8902 = vmatprep.mubr.msk.bf16.mxu1 %vm1721_vm9, %v3631_v61 }
 0xa04   : > { %8900 = vmatprep.subr.bf16.mxu1 %v9423_v50 }
 0xa07   : > { %8901 = vmatpush3.bf16.msra.mxu1 %v9423_v50 }
 0xa08   : > { %9271 = vmatprep.subr.msk.bf16.mxu1 %vm2420_vm12, %v3630_v63  ;;  %v12142_v63 = vld [vmem:[#allocation28_spill] sm:$0xff] }
 0xa0a   : > { %8903 = vmatmul.mubr.msk.bf16.vlgmr.msra.gmra.mrb[12].mxu1 %vm1721_vm9, %v3632_v21 }
 0xa0b   : > { %8906 = vmatprep.mubr.msk.bf16.mxu1 %vm1721_vm9, %v3633_v54  ;;  %8911 = vmatpush3.bf16.msra.mxu1 %v3729_v6 }
 0xa0c   : > { %9272 = vmatprep.subr.msk.bf16.mxu1 %vm2420_vm12, %v8502_v14 }
 0xa12   : > { %8907 = vmatmul.mubr.msk.bf16.gmra.mrb[16].mxu1 %vm1721_vm9, %v3634_v56 }
 0xa13   : > { %8912 = vmatprep.mubr.msk.bf16.mxu1 %vm947_vm1, %v10432_v9  ;;  %v9425_v9 = vld [vmem:[%s12136_s15 + $0x18] sm:$0xff]  }
 0xa1a   : > { %8913 = vmatmul.mubr.msk.bf16.vlgmr.msra.gmra.mrb[12].mxu1 %vm947_vm1, %v10439_v51  ;;  %v8517_v51 = vld [vmem:[%s12137_s26 + $0x2] sm:$0x1] }
 0xa1b   : > { %8916 = vmatprep.mubr.msk.bf16.mxu1 %vm947_vm1, %v10443_v52  ;;  %8921 = vmatpush3.bf16.msra.mxu1 %v3799_v57  ;;  %v12140_v52 = vpack.c.bf16 %v10760_v41, %v10758_v47 }
 0xa1c   : > { %8930 = vmatprep.subr.bf16.mxu1 %v9424_v28 }
 0xa22   : > { %8917 = vmatmul.mubr.msk.bf16.gmra.mrb[16].mxu1 %vm947_vm1, %v10452_v16 }
 0xa23   : > { %8922 = vmatprep.mubr.msk.bf16.mxu1 %vm947_vm1, %v10302_v39  ;;  %v12138_v39 = vpack.c.bf16 %v10752_v11, %v10750_v59 }
 0xa2a   : > { %8923 = vmatmul.mubr.msk.bf16.vlgmr.msra.gmra.mrb[12].mxu1 %vm947_vm1, %v10298_v35  ;;  %v3983_v35 = vsel %vm2420_vm12, %v8517_v51, 0 }
 0xa2b   : > { %8926 = vmatprep.mubr.msk.bf16.mxu1 %vm947_vm1, %v10304_v44  ;;  %8931 = vmatpush3.bf16.msra.mxu1 %v9424_v28  ;;  %v12139_v44 = vpack.c.bf16 %v10756_v13, %v10754_v58 }
 0xa2c   : > { %8932 = vmatprep.subr.bf16.mxu1 %v9425_v9 }
 0xa2f   : > { %8933 = vmatpush3.bf16.msra.mxu1 %v9425_v9 }
 0xa30   : > { %9273 = vmatprep.subr.msk.bf16.mxu1 %vm2420_vm12, %v8517_v51 }
 0xa32   : > { %8927 = vmatmul.mubr.msk.bf16.gmra.mrb[16].mxu1 %vm947_vm1, %v10306_v45  ;;  %v12141_v45 = vpack.c.bf16 %v10764_v18, %v10762_v15 }
 0xa33   : > { %8934 = vmatprep.mubr.msk.bf16.mxu1 %vm1721_vm9, %v12138_v39 }
 0xa3a   : > { %8935 = vmatmul.mubr.msk.bf16.vlgmr.msra.gmra.mrb[12].mxu1 %vm1721_vm9, %v12139_v44 }
 0xa3b   : > { %8938 = vmatprep.mubr.msk.bf16.mxu1 %vm1721_vm9, %v12140_v52  ;;  %8943 = vmatpush3.bf16.msra.mxu1 %v3983_v35 }
 0xa42   : > { %8939 = vmatmul.mubr.msk.bf16.gmra.mrb[16].mxu1 %vm1721_vm9, %v12141_v45 }
 0xa43   : > { %8944 = vmatprep.mubr.msk.bf16.mxu1 %vm947_vm1, %v10579_v1 }
 0xa4a   : > { %8945 = vmatmul.mubr.msk.bf16.vlgmr.msra.gmra.mrb[12].mxu1 %vm947_vm1, %v10577_v12  ;;  %v9426_v12 = vld [vmem:[%s12136_s15 + $0x20] sm:$0xff]  }
 0xa4b   : > { %8948 = vmatprep.mubr.msk.bf16.mxu1 %vm947_vm1, %v10583_v5  ;;  %8952 = vmatprep.subr.bf16.mxu1 %v9426_v12  ;;  %v9427_v5 = vld [vmem:[%s12136_s15 + $0x28] sm:$0xff]  }
 0xa4c   : > { %8953 = vmatpush3.bf16.msra.mxu1 %v9426_v12 }
 0xa4d   : > { %8954 = vmatprep.subr.bf16.mxu1 %v9427_v5 }
 0xa50   : > { %8955 = vmatpush3.bf16.msra.mxu1 %v9427_v5 }
 0xa52   : > { %8949 = vmatmul.mubr.msk.bf16.gmra.mrb[16].mxu1 %vm947_vm1, %v10591_v23 }
 0xad5   : > { %v3451_v16 = vpop.f32.mrb[8].mxu1 }
 0xad6   : > { %v3452_v59 = vadd.f32 %v3451_v16, %v10472_v27  ;;  %v3453_v11 = vpop.f32.mrb[9].mxu1 }
 0xad7   : > { %v3455_v58 = vpop.f32.mrb[10].mxu1  ;;  %v3454_v1 = vadd.f32 %v3453_v11, %v10482_v60 }
 0xad8   : > { %v3456_v13 = vpop.f32.mrb[11].mxu1  ;;  %3462 = vrot.lane.b32.xlu0 %v3452_v59, %s9763_s13  ;;  %3459 = vrot.lane.b32.xlu1 %v3452_v59, %s9764_s16 }
 0xadc   : > { %3469 = vrot.lane.b32.xlu0 %v3454_v1, %s9764_s16  ;;  %3465 = vrot.lane.b32.xlu1 %v3452_v59, %s9762_s29 }
 0xae0   : > { %3475 = vrot.lane.b32.xlu0 %v3454_v1, %s9762_s29  ;;  %3472 = vrot.lane.b32.xlu1 %v3454_v1, %s9763_s13 }
 0xae4   : > { %4197 = vrot.lane.b32.xlu0 %v10259_v7, %s9762_s29  ;;  %4195 = vrot.lane.b32.xlu1 %v10257_v4, %s9762_s29 }
 0xae8   : > { %4201 = vrot.lane.b32.xlu0 %v10269_v33, %s9762_s29  ;;  %4199 = vrot.lane.b32.xlu1 %v10261_v8, %s9762_s29 }
 0xaec   : > { %4205 = vrot.lane.b32.xlu0 %v10271_v34, %s9762_s29  ;;  %4203 = vrot.lane.b32.xlu1 %v10265_v29, %s9762_s29 }
 0xaf0   : > { %4209 = vrot.lane.b32.xlu0 %v10274_v38, %s9762_s29  ;;  %4207 = vrot.lane.b32.xlu1 %v10267_v30, %s9762_s29 }
 0xb4a   : > { %v3463_v7 = vpop.permute.xlu0 %3462  ;;  %v3460_v4 = vpop.permute.xlu1 %3459 }
 0xb4b   : > { %v3478_v33 = vcombine.low %v3452_v59, %v3463_v7  ;;  %v3479_v8 = vcombine.high %v3452_v59, %v3463_v7 }
 0xb4d   : > { %v3486_v29 = vrot.slane %v3478_v33, %v10089_v19  ;;  %v3493_v31 = vrot.slane %v3479_v8, %v10089_v19 }
 0xb4e   : > { %v3470_v23 = vpop.permute.xlu0 %3469  ;;  %v3466_v47 = vpop.permute.xlu1 %3465 }
 0xb4f   : > { %v3494_v41 = vcombine.low %v3460_v4, %v3466_v47  ;;  %v3495_v15 = vcombine.high %v3460_v4, %v3466_v47 }
 0xb51   : > { %v3502_v18 = vrot.slane %v3494_v41, %v10089_v19  ;;  %v3509_v24 = vrot.slane %v3495_v15, %v10089_v19 }
 0xb52   : > { %v3476_v34 = vpop.permute.xlu0 %3475  ;;  %v3473_v49 = vpop.permute.xlu1 %3472 }
 0xb53   : > { %v3526_v38 = vcombine.low %v3470_v23, %v3476_v34  ;;  %v3527_v37 = vcombine.high %v3470_v23, %v3476_v34  ;;  %v3510_v0 = vcombine.low %v3454_v1, %v3473_v49  ;;  %v3511_v30 = vcombine.high %v3454_v1, %v3473_v49 }
 0xb54   : > { %v3542_v2 = vcombine.low %v3486_v29, %v3502_v18  ;;  %v3543_v48 = vcombine.high %v3486_v29, %v3502_v18  ;;  %v3558_v40 = vcombine.low %v3493_v31, %v3509_v24  ;;  %v3559_v6 = vcombine.high %v3493_v31, %v3509_v24 }
 0xb55   : > { %v3534_v3 = vrot.slane %v3526_v38, %v10089_v19  ;;  %v3541_v36 = vrot.slane %v3527_v37, %v10089_v19  ;;  %v3518_v62 = vrot.slane %v3510_v0, %v10089_v19  ;;  %v3525_v32 = vrot.slane %v3511_v30, %v10089_v19 }
 0xb56   : > { %v3550_v21 = vrot.slane %v3542_v2, %v12142_v63  ;;  %v3557_v54 = vrot.slane %v3543_v48, %v12142_v63  ;;  %v3566_v28 = vrot.slane %v3558_v40, %v12142_v63  ;;  %v3573_v52 = vrot.slane %v3559_v6, %v12142_v63 }
 0xb57   : > { %v3574_v42 = vcombine.low %v3518_v62, %v3534_v3  ;;  %v3575_v43 = vcombine.high %v3518_v62, %v3534_v3  ;;  %v3590_v50 = vcombine.low %v3525_v32, %v3541_v36  ;;  %v3591_v61 = vcombine.high %v3525_v32, %v3541_v36 }
 0xb59   : > { %v3582_v14 = vrot.slane %v3574_v42, %v12142_v63  ;;  %v3589_v56 = vrot.slane %v3575_v43, %v12142_v63  ;;  %v3598_v57 = vrot.slane %v3590_v50, %v12142_v63  ;;  %v3605_v9 = vrot.slane %v3591_v61, %v12142_v63 }
 0xb5b   : > { %v3606_v51 = vcombine.low %v3550_v21, %v3582_v14  ;;  %v3607_v39 = vcombine.high %v3550_v21, %v3582_v14  ;;  %v3608_v35 = vcombine.low %v3557_v54, %v3589_v56  ;;  %v3609_v44 = vcombine.high %v3557_v54, %v3589_v56  ;;  %v4196_v56 = vpop.permute.xlu1 %4195 }
 0xb5c   : > { %v3610_v45 = vcombine.low %v3566_v28, %v3598_v57  ;;  %v3611_v16 = vcombine.high %v3566_v28, %v3598_v57  ;;  %v3612_v1 = vcombine.low %v3573_v52, %v3605_v9  ;;  %v3613_v12 = vcombine.high %v3573_v52, %v3605_v9  ;;  %v4198_v57 = vpop.permute.xlu0 %4197  ;;  %v12145_v52 = vld [vmem:[#allocation29_spill] sm:$0xff] }
 0xb5d   : > { %v3616_v59 = vmul.f32 2.0, %v3608_v35  ;;  %v3617_v11 = vmul.f32 2.0, %v3609_v44  ;;  %v3614_v58 = vmul.f32 2.0, %v3606_v51  ;;  %v3615_v13 = vmul.f32 2.0, %v3607_v39 }
 0xb5e   : > { %v3618_v5 = vmul.f32 2.0, %v3610_v45  ;;  %v3619_v7 = vmul.f32 2.0, %v3611_v16  ;;  %v3620_v34 = vmul.f32 2.0, %v3612_v1  ;;  %v3621_v49 = vmul.f32 2.0, %v3613_v12 }
 0xb5f   : > { %v3624_v4 = vsub.f32 %v3616_v59, %v10655_v53  ;;  %v3625_v23 = vsub.f32 %v3617_v11, %v10675_v25  ;;  %v3622_v47 = vsub.f32 %v3614_v58, %v10665_v20  ;;  %v3623_v33 = vsub.f32 %v3615_v13, %v10685_v26  ;;  %v8532_v26 = vld [vmem:[%s12144_s17] ss:$0 sm:$0xff]  ;;  %v4200_v28 = vpop.permute.xlu1 %4199  ;;  %v12146_v58 = vld [vmem:[#allocation31_spill] sm:$0xff] }
 0xb60   : > { %v3626_v41 = vsub.f32 %v3618_v5, %v10669_v22  ;;  %v3627_v15 = vsub.f32 %v3619_v7, %v10689_v55  ;;  %v3628_v53 = vsub.f32 %v3620_v34, %v10659_v17  ;;  %v3629_v20 = vsub.f32 %v3621_v49, %v10679_v10  ;;  %v4202_v9 = vpop.permute.xlu0 %4201 }
 0xb61   : > { %v4059_v8 = vpack.c.bf16 %v3625_v23, %v3624_v4  ;;  %v4058_v18 = vpack.c.bf16 %v3623_v33, %v3622_v47  ;;  %v12143_v22 = vmov 0   ;;  %v4229_v45 = vsub.f32 1.0, %v12145_v52  ;;  %v12147_v4 = vld [vmem:[#allocation30_spill] sm:$0xff]  ;;  %v12148_v33 = vld [vmem:[#allocation32_spill] sm:$0xff] }
 0xb62   : > { %v4060_v29 = vpack.c.bf16 %v3627_v15, %v3626_v41  ;;  %v4061_v25 = vpack.c.bf16 %v3629_v20, %v3628_v53  ;;  %v4221_v59 = vmul.f32 %v12145_v52, %v4200_v28  ;;  %v4230_v13 = vsub.f32 1.0, %v12146_v58 }
 0xb63   : > { %8956 = vmatprep.mubr.msk.bf16.mxu1 %vm1721_vm9, %v4058_v18  ;;  %v4204_v51 = vpop.permute.xlu1 %4203  ;;  %v4222_v12 = vmul.f32 %v12146_v58, %v4202_v9  ;;  %v4227_v23 = vsub.f32 1.0, %v12147_v4  ;;  %v4228_v41 = vsub.f32 1.0, %v12148_v33  ;;  %v4219_v15 = vmul.f32 %v12147_v4, %v4196_v56 }
 0xb64   : > { %8957 = vmatmul.mubr.msk.bf16.vlgmr.msra.gmra.mrb[12].mxu1 %vm1721_vm9, %v4059_v8  ;;  %v4206_v39 = vpop.permute.xlu0 %4205 }
 0xb65   : > { %8960 = vmatprep.mubr.msk.bf16.mxu1 %vm1721_vm9, %v4060_v29  ;;  %v4220_v29 = vmul.f32 %v12148_v33, %v4198_v57 }
 0xb67   : > { %v4208_v35 = vpop.permute.xlu1 %4207 }
 0xb68   : > { %v4210_v44 = vpop.permute.xlu0 %4209 }
 0xb6c   : > { %8961 = vmatmul.mubr.msk.bf16.gmra.mrb[16].mxu1 %vm1721_vm9, %v4061_v25 }
 0xb6d   : > { %5795 = vmatprep.mubr.bf16.mxu1 %v12143_v22 }
 0xc37   : > { %v8958_v55 = vpop.f32.mrb[12].mxu1 }
 0xc38   : > { %v4173_v24 = vadd.f32 %v8958_v55, %v8532_v26  ;;  %v4125_v38 = vpop.f32.mrb[13].mxu1 }
 0xc39   : > { %v8959_v37 = vpop.f32.mrb[14].mxu1  ;;  %v4171_v0 = vadd.f32 %v8532_v26, %v4125_v38 }
 0xc3a   : > { %9496 = vtanh.f32 %v4173_v24  ;;  %v4174_v30 = vadd.f32 %v8959_v37, %v8532_v26  ;;  %v4128_v31 = vpop.f32.mrb[15].mxu1 }
 0xc3b   : > { %v4172_v17 = vadd.f32 %v8532_v26, %v4128_v31  ;;  %v12150_v31 = vld [vmem:[#allocation36_spill] sm:$0xff] }
 0xc3c   : > { %9498 = vtanh.f32 %v4174_v30 }
 0xc3d   : > { %9500 = vtanh.f32 %v4171_v0 }
 0xc3e   : > { %9502 = vtanh.f32 %v4172_v17  ;;  %v4232_v17 = vsub.f32 1.0, %v12150_v31 }
 0xc3f   : > { %v8962_v10 = vpop.f32.mrb[16].mxu1 }
 0xc40   : > { %v4141_v2 = vpop.f32.mrb[17].mxu1  ;;  %v4177_v62 = vadd.f32 %v8962_v10, %v8532_v26 }
 0xc41   : > { %v4175_v48 = vadd.f32 %v8532_v26, %v4141_v2  ;;  %v8963_v3 = vpop.f32.mrb[18].mxu1 }
 0xc42   : > { %v4144_v36 = vpop.f32.mrb[19].mxu1  ;;  %v4178_v42 = vadd.f32 %v8963_v3, %v8532_v26 }
 0xc43   : > { %9504 = vtanh.f32 %v4175_v48  ;;  %v4176_v32 = vadd.f32 %v8532_v26, %v4144_v36  ;;  %v12149_v26 = vld [vmem:[#allocation34_spill] sm:$0xff]  ;;  %v4224_v48 = vmul.f32 %v12150_v31, %v4206_v39 }
 0xc44   : > { %v9497_v40 = vpop.eup %9496  ;;  %v4231_v55 = vsub.f32 1.0, %v12149_v26  ;;  %v4223_v0 = vmul.f32 %v12149_v26, %v4204_v51 }
 0xc45   : > { %9506 = vtanh.f32 %v4176_v32  ;;  %4247 = vrot.lane.b32.xlu1 %v9497_v40, %s9762_s29 }
 0xc46   : > { %v9499_v43 = vpop.eup %9498  ;;  %9508 = vtanh.f32 %v4177_v62  ;;  %v12151_v62 = vld [vmem:[#allocation33_spill] sm:$0xff] }
 0xc47   : > { %4249 = vrot.lane.b32.xlu0 %v9499_v43, %s9762_s29  ;;  %v9501_v50 = vpop.eup %9500  ;;  %9510 = vtanh.f32 %v4178_v42  ;;  %v4233_v32 = vsub.f32 1.0, %v12151_v62  ;;  %v12152_v42 = vld [vmem:[#allocation35_spill] sm:$0xff] }
 0xc48   : > { %v9503_v61 = vpop.eup %9502  ;;  %v4234_v43 = vsub.f32 1.0, %v12152_v42 }
 0xc49   : > { %4243 = vrot.lane.b32.xlu1 %v9501_v50, %s9762_s29  ;;  %v4225_v50 = vmul.f32 %v12151_v62, %v4208_v35 }
 0xc4b   : > { %4245 = vrot.lane.b32.xlu0 %v9503_v61, %s9762_s29 }
 0xc4d   : > { %v9505_v21 = vpop.eup %9504 }
 0xc4e   : > { %4251 = vrot.lane.b32.xlu1 %v9505_v21, %s9762_s29 }
 0xc4f   : > { %v9507_v6 = vpop.eup %9506 }
 0xc50   : > { %4253 = vrot.lane.b32.xlu0 %v9507_v6, %s9762_s29  ;;  %v9509_v54 = vpop.eup %9508 }
 0xc51   : > { %v9511_v14 = vpop.eup %9510 }
 0xc52   : > { %4255 = vrot.lane.b32.xlu1 %v9509_v54, %s9762_s29 }
 0xc54   : > { %4257 = vrot.lane.b32.xlu0 %v9511_v14, %s9762_s29  ;;  %v4226_v14 = vmul.f32 %v12152_v42, %v4210_v44 }
 0xcb7   : > { %v4248_v16 = vpop.permute.xlu1 %4247 }
 0xcb8   : > { %v4269_v11 = vmul.f32 %v4248_v16, %v4229_v45 }
 0xcb9   : > { %v4250_v1 = vpop.permute.xlu0 %4249 }
 0xcba   : > { %v10963_v5 = vadd.f32 %v4269_v11, %v4221_v59  ;;  %v4270_v7 = vmul.f32 %v4250_v1, %v4230_v13 }
 0xcbb   : > { %v4244_v47 = vpop.permute.xlu1 %4243 }
 0xcbc   : > { %v10968_v8 = vadd.f32 %v4270_v7, %v4222_v12  ;;  %v4267_v18 = vmul.f32 %v4244_v47, %v4227_v23  ;;  %v4606_v34 = vpack.c.bf16 %v10963_v5, %v10963_v5 }
 0xcbd   : > { %v4246_v49 = vpop.permute.xlu0 %4245 }
 0xcbe   : > { %v10973_v53 = vadd.f32 %v4267_v18, %v4219_v15  ;;  %v4268_v20 = vmul.f32 %v4246_v49, %v4228_v41  ;;  %4624 = vrot.lane.b32.xlu1 %v4606_v34, %s9764_s16  ;;  %v4607_v25 = vpack.c.bf16 %v10968_v8, %v10968_v8 }
 0xcc0   : > { %v10979_v24 = vadd.f32 %v4268_v20, %v4220_v29  ;;  %4626 = vrot.lane.b32.xlu0 %v4607_v25, %s9764_s16  ;;  %v4252_v38 = vpop.permute.xlu1 %4251  ;;  %v4604_v37 = vpack.c.bf16 %v10973_v53, %v10973_v53 }
 0xcc1   : > { %v4271_v30 = vmul.f32 %v4252_v38, %v4231_v55 }
 0xcc2   : > { %v4254_v10 = vpop.permute.xlu0 %4253  ;;  %4620 = vrot.lane.b32.xlu1 %v4604_v37, %s9764_s16  ;;  %v4605_v2 = vpack.c.bf16 %v10979_v24, %v10979_v24 }
 0xcc3   : > { %v10990_v3 = vadd.f32 %v4271_v30, %v4223_v0  ;;  %v4272_v36 = vmul.f32 %v4254_v10, %v4232_v17 }
 0xcc4   : > { %4622 = vrot.lane.b32.xlu0 %v4605_v2, %s9764_s16  ;;  %v4256_v40 = vpop.permute.xlu1 %4255 }
 0xcc5   : > { %v10996_v61 = vadd.f32 %v4272_v36, %v4224_v48  ;;  %v4273_v21 = vmul.f32 %v4256_v40, %v4233_v32  ;;  %v4608_v6 = vpack.c.bf16 %v10990_v3, %v10990_v3 }
 0xcc6   : > { %v4258_v54 = vpop.permute.xlu0 %4257 }
 0xcc7   : > { %v11001_v56 = vadd.f32 %v4273_v21, %v4225_v50  ;;  %v4274_v57 = vmul.f32 %v4258_v54, %v4234_v43  ;;  %4628 = vrot.lane.b32.xlu1 %v4608_v6, %s9764_s16  ;;  %v4609_v28 = vpack.c.bf16 %v10996_v61, %v10996_v61 }
 0xcc9   : > { %v11006_v9 = vadd.f32 %v4274_v57, %v4226_v14  ;;  %4630 = vrot.lane.b32.xlu0 %v4609_v28, %s9764_s16  ;;  %v4610_v51 = vpack.c.bf16 %v11001_v56, %v11001_v56 }
 0xccb   : > { %4632 = vrot.lane.b32.xlu1 %v4610_v51, %s9764_s16  ;;  %v4611_v39 = vpack.c.bf16 %v11006_v9, %v11006_v9 }
 0xccd   : > { %4634 = vrot.lane.b32.xlu0 %v4611_v39, %s9764_s16 }
 0xd30   : > { %v4625_v35 = vpop.permute.xlu1 %4624 }
 0xd32   : > { %v4627_v44 = vpop.permute.xlu0 %4626 }
 0xd34   : > { %v4621_v52 = vpop.permute.xlu1 %4620 }
 0xd36   : > { %v4623_v45 = vpop.permute.xlu0 %4622 }
 0xd39   : > { %v4629_v16 = vpop.permute.xlu1 %4628 }
 0xd3a   : > { %v4644_v11 = vcombine.low %v4621_v52, %v4629_v16 }
 0xd3b   : > { %v4631_v59 = vpop.permute.xlu0 %4630 }
 0xd3c   : > { %v4678_v13 = vcombine.low %v4623_v45, %v4631_v59  ;;  %v4651_v7 = vrot.slane %v4644_v11, %v10089_v19 }
 0xd3d   : > { %v4633_v58 = vpop.permute.xlu1 %4632 }
 0xd3e   : > { %v4652_v1 = vcombine.low %v4625_v35, %v4633_v58  ;;  %v4685_v47 = vrot.slane %v4678_v13, %v10089_v19  ;;  %v9428_v58 = vld [vmem:[%s10065_s25 + $0x40] ss:$16 sps:$4 sm:$0xff]   ;;  %v9430_v13 = vld [vmem:[%s10065_s25 + $0x44] ss:$16 sps:$4 sm:$0xff]  }
 0xd3f   : > { %v4635_v12 = vpop.permute.xlu0 %4634 }
 0xd40   : > { %v4659_v4 = vrot.slane %v4652_v1, %v10089_v19  ;;  %v4686_v23 = vcombine.low %v4627_v44, %v4635_v12  ;;  %v9431_v1 = vld [vmem:[%s10065_s25 + $0x48] ss:$16 sps:$4 sm:$0xff]   ;;  %v9433_v12 = vld [vmem:[%s10065_s25 + $0x4c] ss:$16 sps:$4 sm:$0xff]  }
 0xd42   : > { %v4660_v33 = vcombine.low %v4651_v7, %v4659_v4  ;;  %v4661_v41 = vcombine.high %v4651_v7, %v4659_v4  ;;  %v4693_v15 = vrot.slane %v4686_v23, %v10089_v19  ;;  %v9434_v7 = vld [vmem:[%s10065_s25 + $0x60] ss:$16 sps:$4 sm:$0xff]   ;;  %v9436_v4 = vld [vmem:[%s10065_s25 + $0x64] ss:$16 sps:$4 sm:$0xff]  }
 0xd44   : > { %v4668_v18 = vrot.slane %v4660_v33, %v12142_v63  ;;  %v4675_v34 = vrot.slane %v4661_v41, %v12142_v63  ;;  %v4694_v49 = vcombine.low %v4685_v47, %v4693_v15  ;;  %v4695_v29 = vcombine.high %v4685_v47, %v4693_v15  ;;  %v9437_v15 = vld [vmem:[%s10065_s25 + $0x68] ss:$16 sps:$4 sm:$0xff]  }
 0xd45   : > { %v4476_v47 = vrot.slane %v9428_v58, %v10089_v19  ;;  %v4483_v33 = vrot.slane %v9430_v13, %v10089_v19  ;;  %v4492_v41 = vrot.slane %v9431_v1, %v10089_v19 }
 0xd46   : > { %v4702_v20 = vrot.slane %v4694_v49, %v12142_v63  ;;  %v4709_v25 = vrot.slane %v4695_v29, %v12142_v63  ;;  %v4727_v26 = vshrl.u32 %v4675_v34, 16  ;;  %v4715_v38 = vshrl.u32 %v4668_v18, 16 }
 0xd47   : > { %v4677_v48 = vcombine.high %v4675_v34, %v12143_v22  ;;  %v4676_v36 = vcombine.high %v4668_v18, %v12143_v22  ;;  %v4499_v29 = vrot.slane %v9433_v12, %v10089_v19 }
 0xd48   : > { %v4728_v55 = vshrl.u32 %v4709_v25, 16  ;;  %v4716_v37 = vshrl.u32 %v4702_v20, 16  ;;  %v4726_v0 = vpack.i.b16 %v4709_v25, %v4675_v34  ;;  %v4714_v30 = vpack.i.b16 %v4702_v20, %v4668_v18  ;;  %v9439_v18 = vld [vmem:[%s10065_s25 + $0x6c] ss:$16 sps:$4 sm:$0xff]  }
 0xd49   : > { %v4711_v10 = vcombine.high %v4709_v25, %v12143_v22  ;;  %v4710_v2 = vcombine.high %v4702_v20, %v12143_v22  ;;  %v4733_v43 = vshrl.u32 %v4677_v48, 16  ;;  %v4721_v50 = vshrl.u32 %v4676_v36, 16 }
 0xd4a   : > { %v4729_v31 = vpack.i.b16 %v4728_v55, %v4727_v26  ;;  %v4717_v17 = vpack.i.b16 %v4716_v37, %v4715_v38  ;;  %v4508_v20 = vrot.slane %v9434_v7, %v10089_v19  ;;  %v4515_v25 = vrot.slane %v9436_v4, %v10089_v19 }
 0xd4b   : > { %v4732_v62 = vpack.i.b16 %v4711_v10, %v4677_v48  ;;  %v4720_v32 = vpack.i.b16 %v4710_v2, %v4676_v36  ;;  %v4734_v40 = vshrl.u32 %v4711_v10, 16  ;;  %v4722_v42 = vshrl.u32 %v4710_v2, 16 }
 0xd4c   : > { %4742 = vrot.lane.b32.xlu0 %v4729_v31, %s9762_s29  ;;  %4736 = vrot.lane.b32.xlu1 %v4717_v17, %s9762_s29  ;;  %v4524_v38 = vrot.slane %v9437_v15, %v10089_v19  ;;  %v4531_v37 = vrot.slane %v9439_v18, %v10089_v19  ;;  %v4533_v31 = vcombine.high %v4476_v47, %v4492_v41 }
 0xd4d   : > { %v4735_v21 = vpack.i.b16 %v4734_v40, %v4733_v43  ;;  %v4723_v6 = vpack.i.b16 %v4722_v42, %v4721_v50  ;;  %v4548_v17 = vcombine.low %v4483_v33, %v4499_v29  ;;  %v4549_v10 = vcombine.high %v4483_v33, %v4499_v29 }
 0xd4e   : > { %v4564_v48 = vcombine.low %v4508_v20, %v4524_v38  ;;  %v4565_v36 = vcombine.high %v4508_v20, %v4524_v38  ;;  %v4581_v43 = vcombine.high %v4515_v25, %v4531_v37 }
 0xd4f   : > { %v4556_v40 = vrot.slane %v4548_v17, %v12142_v63  ;;  %v4563_v42 = vrot.slane %v4549_v10, %v12142_v63 }
 0xd50   : > { %4744 = vrot.lane.b32.xlu0 %v4732_v62, %s9763_s13  ;;  %4738 = vrot.lane.b32.xlu1 %v4720_v32, %s9763_s13  ;;  %v4580_v62 = vcombine.low %v4515_v25, %v4531_v37  ;;  %v4547_v32 = vrot.slane %v4533_v31, %v12142_v63  ;;  %v4572_v50 = vrot.slane %v4564_v48, %v12142_v63 }
 0xd54   : > { %4746 = vrot.lane.b32.xlu0 %v4735_v21, %s9764_s16  ;;  %4740 = vrot.lane.b32.xlu1 %v4723_v6, %s9764_s16  ;;  %v4579_v21 = vrot.slane %v4565_v36, %v12142_v63  ;;  %v4588_v6 = vrot.slane %v4580_v62, %v12142_v63 }
 0xdbe   : > { %v4743_v54 = vpop.permute.xlu0 %4742  ;;  %v4737_v14 = vpop.permute.xlu1 %4736 }
 0xdbf   : > { %v4757_v51 = vsel %vm1721_vm9, %v4726_v0, %v4743_v54  ;;  %v4750_v39 = vsel %vm1721_vm9, %v4714_v30, %v4737_v14  ;;  %v4532_v0 = vcombine.low %v4476_v47, %v4492_v41  ;;  %v4595_v54 = vrot.slane %v4581_v43, %v12142_v63 }
 0xdc1   : > { %v4540_v2 = vrot.slane %v4532_v0, %v12142_v63 }
 0xdc2   : > { %v4745_v57 = vpop.permute.xlu0 %4744  ;;  %v4739_v28 = vpop.permute.xlu1 %4738 }
 0xdc3   : > { %v4759_v35 = vsel %vm1725_vm10, %v4757_v51, %v4745_v57  ;;  %v4752_v44 = vsel %vm1725_vm10, %v4750_v39, %v4739_v28  ;;  %v11082_v14 = vcombine.low %v4540_v2, %v4572_v50  ;;  %v11084_v57 = vcombine.high %v4540_v2, %v4572_v50 }
 0xdc4   : > { %v11086_v28 = vcombine.low %v4547_v32, %v4579_v21  ;;  %v11088_v51 = vcombine.high %v4547_v32, %v4579_v21  ;;  %v11090_v39 = vcombine.low %v4556_v40, %v4588_v6 }
 0xdc6   : > { %v4747_v52 = vpop.permute.xlu0 %4746  ;;  %v4741_v45 = vpop.permute.xlu1 %4740 }
 0xdc7   : > { %v4761_v16 = vsel %vm1728_vm11, %v4759_v35, %v4747_v52  ;;  %v4754_v59 = vsel %vm1728_vm11, %v4752_v44, %v4741_v45  ;;  %v11092_v35 = vcombine.high %v4556_v40, %v4588_v6  ;;  %v11094_v44 = vcombine.low %v4563_v42, %v4595_v54 }
 0xdc8   : > { %v4762_v11 = vsel %vm1063_vm8, %v4754_v59, 0  ;;  %8541 = vmatprep.subr.msk.bf16.mxu0 %vm1063_vm8, %v4761_v16  ;;  %v11096_v52 = vcombine.high %v4563_v42, %v4595_v54  ;;  %v8549_v45 = vpack.c.bf16 %v11090_v39, %v11082_v14 }
 0xdc9   : > { %4767 = vmatpush1.bf16.msra.mxu0 %v4762_v11  ;;  %v8550_v16 = vpack.c.bf16 %v11094_v44, %v11086_v28  ;;  %v8551_v59 = vpack.c.bf16 %v11092_v35, %v11084_v57 }
 0xdca   : > { %v8552_v11 = vpack.c.bf16 %v11096_v52, %v11088_v51  ;;  %v5321_v58 = vrot.slane %v8549_v45, %v10089_v19 }
 0xdcb   : > { %v5329_v13 = vrot.slane %v8550_v16, %v10089_v19  ;;  %v5355_v1 = vrot.slane %v8551_v59, %v10089_v19 }
 0xdcc   : > { %8542 = vmatmul.mubr.msk.bf16.vlgmr.msra.gmra.mrb[20].mxu0 %vm957_vm4, %v10194_v46  ;;  %v5363_v12 = vrot.slane %v8552_v11, %v10089_v19 }
 0xdcd   : > { %5125 = vmatprep.mubr.bf16.mxu0 %v12143_v22  ;;  %v5331_v7 = vcombine.high %v5321_v58, %v5329_v13  ;;  %v5330_v4 = vcombine.low %v5321_v58, %v5329_v13 }
 0xdce   : > { %v5364_v47 = vcombine.low %v5355_v1, %v5363_v12 }
 0xdcf   : > { %v11115_v33 = vrot.slane %v5331_v7, %v12142_v63  ;;  %v11118_v41 = vrot.slane %v5330_v4, %v12142_v63 }
 0xdd0   : > { %v11124_v18 = vrot.slane %v5364_v47, %v12142_v63 }
 0xdd1   : > { %v5385_v29 = vshrl.u32 %v11118_v41, 16  ;;  %v11134_v37 = vcombine.high %v11115_v33, %v12143_v22  ;;  %v11144_v31 = vcombine.high %v11118_v41, %v12143_v22 }
 0xdd2   : > { %v5386_v25 = vshrl.u32 %v11124_v18, 16  ;;  %v11148_v17 = vcombine.high %v11124_v18, %v12143_v22  ;;  %v5384_v43 = vpack.i.b16 %v11124_v18, %v11118_v41 }
 0xdd3   : > { %v5403_v2 = vshrl.u32 %v11134_v37, 16  ;;  %v5391_v62 = vshrl.u32 %v11144_v31, 16 }
 0xdd4   : > { %v5387_v38 = vpack.i.b16 %v5386_v25, %v5385_v29  ;;  %v5390_v10 = vpack.i.b16 %v11148_v17, %v11144_v31  ;;  %v5392_v32 = vshrl.u32 %v11148_v17, 16 }
 0xdd6   : > { %v11158_v40 = vpack.i.b16 %v5392_v32, %v5391_v62 }
 0xe9f   : > { %v4800_v23 = vpop.f32.mrb[20].mxu0 }
 0xea0   : > { %v11056_v34 = vadd.f32 %v4800_v23, %v10472_v27  ;;  %v4802_v49 = vpop.f32.mrb[21].mxu0  ;;  %v5365_v23 = vcombine.high %v5355_v1, %v5363_v12 }
 0xea1   : > { %v11062_v26 = vadd.f32 %v4802_v49, %v10482_v60  ;;  %v4804_v55 = vpop.f32.mrb[22].mxu0  ;;  %v5397_v49 = vshrl.u32 %v11115_v33, 16 }
 0xea2   : > { %v4805_v30 = vpop.f32.mrb[23].mxu0  ;;  %4811 = vrot.lane.b32.xlu0 %v11056_v34, %s9763_s13  ;;  %4808 = vrot.lane.b32.xlu1 %v11056_v34, %s9764_s16  ;;  %v11121_v15 = vrot.slane %v5365_v23, %v12142_v63 }
 0xea4   : > { %v5398_v20 = vshrl.u32 %v11121_v15, 16  ;;  %v11138_v0 = vcombine.high %v11121_v15, %v12143_v22  ;;  %v5396_v42 = vpack.i.b16 %v11121_v15, %v11115_v33 }
 0xea6   : > { %4818 = vrot.lane.b32.xlu0 %v11062_v26, %s9764_s16  ;;  %4814 = vrot.lane.b32.xlu1 %v11056_v34, %s9762_s29  ;;  %v5399_v55 = vpack.i.b16 %v5398_v20, %v5397_v49  ;;  %v5402_v30 = vpack.i.b16 %v11138_v0, %v11134_v37  ;;  %v5404_v48 = vshrl.u32 %v11138_v0, 16 }
 0xea8   : > { %v11154_v36 = vpack.i.b16 %v5404_v48, %v5403_v2 }
 0xeaa   : > { %4824 = vrot.lane.b32.xlu0 %v11062_v26, %s9762_s29  ;;  %4821 = vrot.lane.b32.xlu1 %v11062_v26, %s9763_s13 }
 0xeae   : > { %5412 = vrot.lane.b32.xlu0 %v5399_v55, %s9762_s29  ;;  %5406 = vrot.lane.b32.xlu1 %v5387_v38, %s9762_s29 }
 0xf14   : > { %v4812_v50 = vpop.permute.xlu0 %4811  ;;  %v4809_v21 = vpop.permute.xlu1 %4808 }
 0xf15   : > { %v4827_v45 = vcombine.low %v11056_v34, %v4812_v50  ;;  %v4828_v11 = vcombine.high %v11056_v34, %v4812_v50 }
 0xf17   : > { %v4835_v12 = vrot.slane %v4827_v45, %v10089_v19  ;;  %v4842_v29 = vrot.slane %v4828_v11, %v10089_v19 }
 0xf18   : > { %v4819_v6 = vpop.permute.xlu0 %4818  ;;  %v4815_v54 = vpop.permute.xlu1 %4814 }
 0xf19   : > { %v4843_v16 = vcombine.low %v4809_v21, %v4815_v54  ;;  %v4844_v59 = vcombine.high %v4809_v21, %v4815_v54 }
 0xf1b   : > { %v4851_v58 = vrot.slane %v4843_v16, %v10089_v19  ;;  %v4858_v7 = vrot.slane %v4844_v59, %v10089_v19 }
 0xf1c   : > { %v4825_v13 = vpop.permute.xlu0 %4824  ;;  %v4822_v1 = vpop.permute.xlu1 %4821 }
 0xf1d   : > { %v4875_v4 = vcombine.low %v4819_v6, %v4825_v13  ;;  %v4876_v23 = vcombine.high %v4819_v6, %v4825_v13  ;;  %v4859_v47 = vcombine.low %v11062_v26, %v4822_v1  ;;  %v4860_v49 = vcombine.high %v11062_v26, %v4822_v1 }
 0xf1e   : > { %v4891_v20 = vcombine.low %v4835_v12, %v4851_v58  ;;  %v4892_v25 = vcombine.high %v4835_v12, %v4851_v58  ;;  %v4907_v48 = vcombine.low %v4842_v29, %v4858_v7  ;;  %v4908_v62 = vcombine.high %v4842_v29, %v4858_v7 }
 0xf1f   : > { %v4883_v34 = vrot.slane %v4875_v4, %v10089_v19  ;;  %v4890_v55 = vrot.slane %v4876_v23, %v10089_v19  ;;  %v4867_v38 = vrot.slane %v4859_v47, %v10089_v19  ;;  %v4874_v2 = vrot.slane %v4860_v49, %v10089_v19 }
 0xf20   : > { %v4899_v26 = vrot.slane %v4891_v20, %v12142_v63  ;;  %v4906_v54 = vrot.slane %v4892_v25, %v12142_v63  ;;  %v4915_v58 = vrot.slane %v4907_v48, %v12142_v63  ;;  %v4922_v13 = vrot.slane %v4908_v62, %v12142_v63 }
 0xf21   : > { %v4923_v32 = vcombine.low %v4867_v38, %v4883_v34  ;;  %v4924_v50 = vcombine.high %v4867_v38, %v4883_v34  ;;  %v4939_v21 = vcombine.low %v4874_v2, %v4890_v55  ;;  %v4940_v6 = vcombine.high %v4874_v2, %v4890_v55 }
 0xf23   : > { %v4931_v45 = vrot.slane %v4923_v32, %v12142_v63  ;;  %v4938_v16 = vrot.slane %v4924_v50, %v12142_v63  ;;  %v4947_v59 = vrot.slane %v4939_v21, %v12142_v63  ;;  %v4954_v11 = vrot.slane %v4940_v6, %v12142_v63 }
 0xf25   : > { %v4955_v1 = vcombine.low %v4899_v26, %v4931_v45  ;;  %v4956_v12 = vcombine.high %v4899_v26, %v4931_v45  ;;  %v4957_v7 = vcombine.low %v4906_v54, %v4938_v16  ;;  %v4958_v4 = vcombine.high %v4906_v54, %v4938_v16 }
 0xf26   : > { %v4959_v23 = vcombine.low %v4915_v58, %v4947_v59  ;;  %v4960_v47 = vcombine.high %v4915_v58, %v4947_v59  ;;  %v4961_v49 = vcombine.low %v4922_v13, %v4954_v11  ;;  %v4962_v29 = vcombine.high %v4922_v13, %v4954_v11 }
 0xf27   : > { %v11184_v20 = vpack.c.bf16 %v4958_v4, %v4957_v7  ;;  %v11186_v25 = vpack.c.bf16 %v4956_v12, %v4955_v1 }
 0xf28   : > { %v8543_v34 = vpack.c.bf16 %v4959_v23, %v4955_v1  ;;  %v8544_v55 = vpack.c.bf16 %v4961_v49, %v4957_v7  ;;  %v8545_v38 = vpack.c.bf16 %v4960_v47, %v4956_v12  ;;  %v8546_v2 = vpack.c.bf16 %v4962_v29, %v4958_v4 }
 0xf29   : > { %v11188_v32 = vpack.c.bf16 %v4960_v47, %v4959_v23  ;;  %v11190_v48 = vpack.c.bf16 %v4962_v29, %v4961_v49 }
 0xf2a   : > { %v4978_v62 = vrot.slane %v8543_v34, %v10089_v19  ;;  %v4986_v50 = vrot.slane %v8544_v55, %v10089_v19  ;;  %v5012_v21 = vrot.slane %v8545_v38, %v10089_v19  ;;  %v5020_v6 = vrot.slane %v8546_v2, %v10089_v19 }
 0xf2c   : > { %v4987_v26 = vcombine.low %v4978_v62, %v4986_v50  ;;  %v4988_v54 = vcombine.high %v4978_v62, %v4986_v50  ;;  %v5021_v45 = vcombine.low %v5012_v21, %v5020_v6  ;;  %v5022_v16 = vcombine.high %v5012_v21, %v5020_v6 }
 0xf2e   : > { %v5002_v59 = vrot.slane %v4988_v54, %v12142_v63  ;;  %v5036_v11 = vrot.slane %v5022_v16, %v12142_v63  ;;  %v4995_v58 = vrot.slane %v4987_v26, %v12142_v63  ;;  %v5029_v13 = vrot.slane %v5021_v45, %v12142_v63 }
 0xf30   : > { %v5054_v1 = vshrl.u32 %v5002_v59, 16  ;;  %v5055_v12 = vshrl.u32 %v5036_v11, 16  ;;  %v5042_v7 = vshrl.u32 %v4995_v58, 16  ;;  %v5043_v4 = vshrl.u32 %v5029_v13, 16 }
 0xf31   : > { %v5004_v23 = vcombine.high %v5002_v59, %v12143_v22  ;;  %v5038_v47 = vcombine.high %v5036_v11, %v12143_v22  ;;  %v5003_v49 = vcombine.high %v4995_v58, %v12143_v22  ;;  %v5037_v29 = vcombine.high %v5029_v13, %v12143_v22 }
 0xf32   : > { %v5056_v34 = vpack.i.b16 %v5055_v12, %v5054_v1  ;;  %v5044_v55 = vpack.i.b16 %v5043_v4, %v5042_v7  ;;  %v5053_v38 = vpack.i.b16 %v5036_v11, %v5002_v59  ;;  %v5041_v2 = vpack.i.b16 %v5029_v13, %v4995_v58  ;;  %v5413_v59 = vpop.permute.xlu0 %5412  ;;  %v5407_v11 = vpop.permute.xlu1 %5406 }
 0xf33   : > { %v5059_v62 = vpack.i.b16 %v5038_v47, %v5004_v23  ;;  %v5047_v50 = vpack.i.b16 %v5037_v29, %v5003_v49  ;;  %v5060_v21 = vshrl.u32 %v5004_v23, 16  ;;  %v5061_v6 = vshrl.u32 %v5038_v47, 16 }
 0xf34   : > { %5069 = vrot.lane.b32.xlu0 %v5056_v34, %s9762_s29  ;;  %5063 = vrot.lane.b32.xlu1 %v5044_v55, %s9762_s29  ;;  %v5048_v26 = vshrl.u32 %v5003_v49, 16  ;;  %v5049_v54 = vshrl.u32 %v5037_v29, 16  ;;  %v5427_v47 = vsel %vm1721_vm9, %v5396_v42, %v5413_v59  ;;  %v5420_v49 = vsel %vm1721_vm9, %v5384_v43, %v5407_v11 }
 0xf35   : > { %v5062_v45 = vpack.i.b16 %v5061_v6, %v5060_v21  ;;  %v5984_v59 = vpack.c.bf16 %v11084_v57, %v11082_v14  ;;  %v5985_v11 = vpack.c.bf16 %v11088_v51, %v11086_v28 }
 0xf36   : > { %v5050_v16 = vpack.i.b16 %v5049_v54, %v5048_v26 }
 0xf38   : > { %5071 = vrot.lane.b32.xlu0 %v5059_v62, %s9763_s13  ;;  %5065 = vrot.lane.b32.xlu1 %v5047_v50, %s9763_s13 }
 0xf3c   : > { %5073 = vrot.lane.b32.xlu0 %v5062_v45, %s9764_s16  ;;  %5067 = vrot.lane.b32.xlu1 %v5050_v16, %s9764_s16  ;;  %v9440_v45 = vld [vmem:[#allocation8] sm:$0xff]   ;;  %v9441_v16 = vld [vmem:[#allocation8 + $0x8] sm:$0xff]  }
 0xf40   : > { %5414 = vrot.lane.b32.xlu0 %v5402_v30, %s9763_s13  ;;  %5408 = vrot.lane.b32.xlu1 %v5390_v10, %s9763_s13 }
 0xf44   : > { %5416 = vrot.lane.b32.xlu0 %v11154_v36, %s9764_s16  ;;  %5410 = vrot.lane.b32.xlu1 %v11158_v40, %s9764_s16 }
 0xfa6   : > { %v5070_v58 = vpop.permute.xlu0 %5069  ;;  %v5064_v13 = vpop.permute.xlu1 %5063 }
 0xfa7   : > { %v5084_v37 = vsel %vm1721_vm9, %v5053_v38, %v5070_v58  ;;  %v5077_v0 = vsel %vm1721_vm9, %v5041_v2, %v5064_v13 }
 0xfaa   : > { %v5072_v1 = vpop.permute.xlu0 %5071  ;;  %v5066_v12 = vpop.permute.xlu1 %5065 }
 0xfab   : > { %v5086_v30 = vsel %vm1725_vm10, %v5084_v37, %v5072_v1  ;;  %v5079_v31 = vsel %vm1725_vm10, %v5077_v0, %v5066_v12 }
 0xfae   : > { %v5074_v17 = vpop.permute.xlu0 %5073  ;;  %v5068_v10 = vpop.permute.xlu1 %5067 }
 0xfaf   : > { %v5088_v36 = vsel %vm1728_vm11, %v5086_v30, %v5074_v17  ;;  %v5081_v40 = vsel %vm1728_vm11, %v5079_v31, %v5068_v10 }
 0xfb0   : > { %v5089_v7 = vsel %vm1063_vm8, %v5081_v40, 0  ;;  %8547 = vmatprep.subr.msk.bf16.mxu0 %vm1063_vm8, %v5088_v36 }
 0xfb1   : > { %5094 = vmatpush1.bf16.msra.mxu0 %v5089_v7 }
 0xfb2   : > { %v5415_v4 = vpop.permute.xlu0 %5414  ;;  %v5409_v23 = vpop.permute.xlu1 %5408 }
 0xfb3   : > { %v5429_v29 = vsel %vm1725_vm10, %v5427_v47, %v5415_v4  ;;  %v5422_v34 = vsel %vm1725_vm10, %v5420_v49, %v5409_v23 }
 0xfb4   : > { %8548 = vmatmul.mubr.msk.bf16.vlgmr.msra.gmra.mrb[24].mxu0 %vm957_vm4, %v10194_v46 }
 0xfb5   : > { %5468 = vmatprep.mubr.bf16.mxu0 %v12143_v22 }
 0xfb6   : > { %v5417_v55 = vpop.permute.xlu0 %5416  ;;  %v5411_v38 = vpop.permute.xlu1 %5410 }
 0xfb7   : > { %v5431_v2 = vsel %vm1728_vm11, %v5429_v29, %v5417_v55  ;;  %v5424_v62 = vsel %vm1728_vm11, %v5422_v34, %v5411_v38 }
 0xfb8   : > { %v5432_v33 = vsel %vm1063_vm8, %v5424_v62, 0  ;;  %8553 = vmatprep.subr.msk.bf16.mxu0 %vm1063_vm8, %v5431_v2 }
 0xfb9   : > { %5437 = vmatpush1.bf16.msra.mxu0 %v5432_v33 }
 0xfba   : > { %8964 = vmatprep.subr.bf16.mxu0 %v9440_v45 }
 0xfbc   : > { %8554 = vmatmul.mubr.msk.bf16.vlgmr.msra.gmra.mrb[28].mxu0 %vm957_vm4, %v10194_v46 }
 0xfbd   : > { %8968 = vmatprep.mubr.msk.bf16.mxu0 %vm1721_vm9, %v5984_v59  ;;  %8965 = vmatpush3.bf16.msra.mxu0 %v9440_v45 }
 0xfbe   : > { %8966 = vmatprep.subr.bf16.mxu0 %v9441_v16 }
 0xfc1   : > { %8967 = vmatpush3.bf16.msra.mxu0 %v9441_v16 }
 0xfc4   : > { %8969 = vmatmul.mubr.msk.bf16.vlgmr.msra.gmra.mrb[32].mxu0 %vm1721_vm9, %v5985_v11 }
0x1087   : > { %v11249_v41 = vpop.f32.mrb[24].mxu0 }
0x1088   : > { %v11251_v15 = vpop.f32.mrb[25].mxu0 }
0x1089   : > { %v5131_v18 = vpop.f32.mrb[26].mxu0 }
0x108a   : > { %v5132_v42 = vpop.f32.mrb[27].mxu0 }
0x108f   : > { %v5470_v43 = vpop.f32.mrb[28].mxu0 }
0x1090   : > { %v5471_v50 = vadd.f32 %v5470_v43, %v10472_v27  ;;  %v5472_v21 = vpop.f32.mrb[29].mxu0 }
0x1091   : > { %v5474_v6 = vpop.f32.mrb[30].mxu0  ;;  %v5473_v54 = vadd.f32 %v5472_v21, %v10482_v60 }
0x1092   : > { %v5475_v26 = vpop.f32.mrb[31].mxu0  ;;  %5481 = vrot.lane.b32.xlu0 %v5471_v50, %s9763_s13  ;;  %5478 = vrot.lane.b32.xlu1 %v5471_v50, %s9764_s16 }
0x1096   : > { %5488 = vrot.lane.b32.xlu0 %v5473_v54, %s9764_s16  ;;  %5484 = vrot.lane.b32.xlu1 %v5471_v50, %s9762_s29 }
0x109a   : > { %5494 = vrot.lane.b32.xlu0 %v5473_v54, %s9762_s29  ;;  %5491 = vrot.lane.b32.xlu1 %v5473_v54, %s9763_s13 }
0x1104   : > { %v5482_v58 = vpop.permute.xlu0 %5481  ;;  %v5479_v13 = vpop.permute.xlu1 %5478 }
0x1105   : > { %v5497_v37 = vcombine.low %v5471_v50, %v5482_v58  ;;  %v5498_v31 = vcombine.high %v5471_v50, %v5482_v58 }
0x1107   : > { %v5505_v40 = vrot.slane %v5497_v37, %v10089_v19  ;;  %v5512_v29 = vrot.slane %v5498_v31, %v10089_v19 }
0x1108   : > { %v5489_v1 = vpop.permute.xlu0 %5488  ;;  %v5485_v12 = vpop.permute.xlu1 %5484 }
0x1109   : > { %v5513_v0 = vcombine.low %v5479_v13, %v5485_v12  ;;  %v5514_v30 = vcombine.high %v5479_v13, %v5485_v12 }
0x110b   : > { %v5521_v17 = vrot.slane %v5513_v0, %v10089_v19  ;;  %v5528_v7 = vrot.slane %v5514_v30, %v10089_v19 }
0x110c   : > { %v5495_v10 = vpop.permute.xlu0 %5494  ;;  %v5492_v36 = vpop.permute.xlu1 %5491 }
0x110d   : > { %v5545_v4 = vcombine.low %v5489_v1, %v5495_v10  ;;  %v5546_v23 = vcombine.high %v5489_v1, %v5495_v10  ;;  %v5529_v47 = vcombine.low %v5473_v54, %v5492_v36  ;;  %v5530_v49 = vcombine.high %v5473_v54, %v5492_v36 }
0x110e   : > { %v5561_v34 = vcombine.low %v5505_v40, %v5521_v17  ;;  %v5562_v55 = vcombine.high %v5505_v40, %v5521_v17  ;;  %v5577_v18 = vcombine.low %v5512_v29, %v5528_v7  ;;  %v5578_v42 = vcombine.high %v5512_v29, %v5528_v7 }
0x110f   : > { %v5553_v38 = vrot.slane %v5545_v4, %v10089_v19  ;;  %v5560_v2 = vrot.slane %v5546_v23, %v10089_v19  ;;  %v5537_v62 = vrot.slane %v5529_v47, %v10089_v19  ;;  %v5544_v33 = vrot.slane %v5530_v49, %v10089_v19 }
0x1110   : > { %v5569_v26 = vrot.slane %v5561_v34, %v12142_v63  ;;  %v5576_v54 = vrot.slane %v5562_v55, %v12142_v63  ;;  %v5585_v58 = vrot.slane %v5577_v18, %v12142_v63  ;;  %v5592_v13 = vrot.slane %v5578_v42, %v12142_v63  ;;  %v9442_v18 = vld [vmem:[%s12153_s23] sm:$0xff]  }
0x1111   : > { %v5593_v43 = vcombine.low %v5537_v62, %v5553_v38  ;;  %v5594_v50 = vcombine.high %v5537_v62, %v5553_v38  ;;  %v5609_v21 = vcombine.low %v5544_v33, %v5560_v2  ;;  %v5610_v6 = vcombine.high %v5544_v33, %v5560_v2  ;;  %8976 = vmatprep.subr.bf16.mxu0 %v9442_v18 }
0x1112   : > { %v5986_v62 = vpack.c.bf16 %v11092_v35, %v11090_v39  ;;  %v5987_v33 = vpack.c.bf16 %v11096_v52, %v11094_v44  ;;  %8977 = vmatpush3.bf16.msra.mxu0 %v9442_v18 }
0x1113   : > { %v5601_v45 = vrot.slane %v5593_v43, %v12142_v63  ;;  %v5608_v16 = vrot.slane %v5594_v50, %v12142_v63  ;;  %v5617_v59 = vrot.slane %v5609_v21, %v12142_v63  ;;  %v5624_v11 = vrot.slane %v5610_v6, %v12142_v63 }
0x1114   : > { %8972 = vmatprep.mubr.msk.bf16.mxu0 %vm1721_vm9, %v5986_v62 }
0x1115   : > { %v11283_v1 = vcombine.low %v5569_v26, %v5601_v45  ;;  %v11285_v12 = vcombine.high %v5569_v26, %v5601_v45  ;;  %v11287_v37 = vcombine.low %v5576_v54, %v5608_v16  ;;  %v11289_v0 = vcombine.high %v5576_v54, %v5608_v16  ;;  %8973 = vmatmul.mubr.msk.bf16.gmra.mrb[36].mxu0 %vm1721_vm9, %v5987_v33 }
0x1116   : > { %v11291_v30 = vcombine.low %v5585_v58, %v5617_v59  ;;  %v11293_v31 = vcombine.high %v5585_v58, %v5617_v59  ;;  %v11295_v17 = vcombine.low %v5592_v13, %v5624_v11  ;;  %v11297_v10 = vcombine.high %v5592_v13, %v5624_v11  ;;  %v9443_v13 = vld [vmem:[%s12153_s23 + $0x8] sm:$0xff]  }
0x1117   : > { %v6289_v36 = vpack.c.bf16 %v11289_v0, %v11287_v37  ;;  %v6288_v40 = vpack.c.bf16 %v11285_v12, %v11283_v1  ;;  %8978 = vmatprep.subr.bf16.mxu0 %v9443_v13 }
0x1118   : > { %v8555_v7 = vpack.c.bf16 %v11291_v30, %v11283_v1  ;;  %v8556_v4 = vpack.c.bf16 %v11295_v17, %v11287_v37  ;;  %v8557_v23 = vpack.c.bf16 %v11293_v31, %v11285_v12  ;;  %v8558_v47 = vpack.c.bf16 %v11297_v10, %v11289_v0  ;;  %8979 = vmatpush3.bf16.msra.mxu0 %v9443_v13 }
0x1119   : > { %v6290_v49 = vpack.c.bf16 %v11293_v31, %v11291_v30  ;;  %v6291_v29 = vpack.c.bf16 %v11297_v10, %v11295_v17 }
0x111a   : > { %v5648_v34 = vrot.slane %v8555_v7, %v10089_v19  ;;  %v5656_v55 = vrot.slane %v8556_v4, %v10089_v19  ;;  %v5682_v38 = vrot.slane %v8557_v23, %v10089_v19  ;;  %v5690_v2 = vrot.slane %v8558_v47, %v10089_v19 }
0x111c   : > { %v5657_v42 = vcombine.low %v5648_v34, %v5656_v55  ;;  %v5658_v43 = vcombine.high %v5648_v34, %v5656_v55  ;;  %v5691_v50 = vcombine.low %v5682_v38, %v5690_v2  ;;  %v5692_v21 = vcombine.high %v5682_v38, %v5690_v2 }
0x111e   : > { %v11328_v6 = vrot.slane %v5658_v43, %v12142_v63  ;;  %v5706_v26 = vrot.slane %v5692_v21, %v12142_v63  ;;  %v5665_v54 = vrot.slane %v5657_v42, %v12142_v63  ;;  %v5699_v45 = vrot.slane %v5691_v50, %v12142_v63 }
0x1120   : > { %v5724_v16 = vshrl.u32 %v11328_v6, 16  ;;  %v5725_v59 = vshrl.u32 %v5706_v26, 16  ;;  %v5712_v11 = vshrl.u32 %v5665_v54, 16  ;;  %v5713_v58 = vshrl.u32 %v5699_v45, 16 }
0x1121   : > { %v5674_v7 = vcombine.high %v11328_v6, %v12143_v22  ;;  %v5708_v4 = vcombine.high %v5706_v26, %v12143_v22  ;;  %v5673_v23 = vcombine.high %v5665_v54, %v12143_v22  ;;  %v5707_v47 = vcombine.high %v5699_v45, %v12143_v22 }
0x1122   : > { %v5726_v34 = vpack.i.b16 %v5725_v59, %v5724_v16  ;;  %v5714_v55 = vpack.i.b16 %v5713_v58, %v5712_v11  ;;  %v5723_v38 = vpack.i.b16 %v5706_v26, %v11328_v6  ;;  %v5711_v2 = vpack.i.b16 %v5699_v45, %v5665_v54  ;;  %v9444_v6 = vld [vmem:[%s12153_s23 + $0x10] sm:$0xff]  }
0x1123   : > { %v5729_v62 = vpack.i.b16 %v5708_v4, %v5674_v7  ;;  %v5717_v33 = vpack.i.b16 %v5707_v47, %v5673_v23  ;;  %v5730_v18 = vshrl.u32 %v5674_v7, 16  ;;  %v5731_v42 = vshrl.u32 %v5708_v4, 16  ;;  %8988 = vmatprep.subr.bf16.mxu0 %v9444_v6 }
0x1124   : > { %5739 = vrot.lane.b32.xlu0 %v5726_v34, %s9762_s29  ;;  %5733 = vrot.lane.b32.xlu1 %v5714_v55, %s9762_s29  ;;  %v5718_v43 = vshrl.u32 %v5673_v23, 16  ;;  %v5719_v50 = vshrl.u32 %v5707_v47, 16  ;;  %v5977_v26 = vpack.c.bf16 %v10968_v8, %v10963_v5  ;;  %v5976_v54 = vpack.c.bf16 %v10979_v24, %v10973_v53 }
0x1125   : > { %v5732_v21 = vpack.i.b16 %v5731_v42, %v5730_v18  ;;  %v5979_v45 = vpack.c.bf16 %v11006_v9, %v11001_v56  ;;  %v5978_v59 = vpack.c.bf16 %v10996_v61, %v10990_v3  ;;  %v11367_v11 = vadd.f32 %v11249_v41, %v10472_v27  ;;  %v9446_v42 = vld [vmem:[#allocation8 + $0x10] sm:$0xff]  }
0x1126   : > { %v5720_v16 = vpack.i.b16 %v5719_v50, %v5718_v43  ;;  %v11375_v58 = vadd.f32 %v11251_v15, %v10482_v60 }
0x1128   : > { %5741 = vrot.lane.b32.xlu0 %v5729_v62, %s9763_s13  ;;  %5735 = vrot.lane.b32.xlu1 %v5717_v33, %s9763_s13 }
0x112c   : > { %5743 = vrot.lane.b32.xlu0 %v5732_v21, %s9764_s16  ;;  %5737 = vrot.lane.b32.xlu1 %v5720_v16, %s9764_s16 }
0x1130   : > { %6087 = vrot.lane.b32.xlu0 %v5977_v26, %s9764_s16  ;;  %6085 = vrot.lane.b32.xlu1 %v5976_v54, %s9764_s16 }
0x1134   : > { %6091 = vrot.lane.b32.xlu0 %v5979_v45, %s9764_s16  ;;  %6089 = vrot.lane.b32.xlu1 %v5978_v59, %s9764_s16 }
0x1138   : > { %5138 = vrot.lane.b32.xlu0 %v11367_v11, %s9763_s13  ;;  %5135 = vrot.lane.b32.xlu1 %v11367_v11, %s9764_s16 }
0x113c   : > { %5145 = vrot.lane.b32.xlu0 %v11375_v58, %s9764_s16  ;;  %5141 = vrot.lane.b32.xlu1 %v11367_v11, %s9762_s29 }
0x1140   : > { %5151 = vrot.lane.b32.xlu0 %v11375_v58, %s9762_s29  ;;  %5148 = vrot.lane.b32.xlu1 %v11375_v58, %s9763_s13 }
0x1144   : > { %4293 = vrot.lane.b32.xlu0 %v10979_v24, %s9764_s16  ;;  %4291 = vrot.lane.b32.xlu1 %v10973_v53, %s9764_s16 }
0x1148   : > { %4297 = vrot.lane.b32.xlu0 %v10968_v8, %s9764_s16  ;;  %4295 = vrot.lane.b32.xlu1 %v10963_v5, %s9764_s16 }
0x1196   : > { %v5740_v41 = vpop.permute.xlu0 %5739  ;;  %v5734_v15 = vpop.permute.xlu1 %5733 }
0x1197   : > { %v5754_v4 = vsel %vm1721_vm9, %v5723_v38, %v5740_v41  ;;  %v5747_v23 = vsel %vm1721_vm9, %v5711_v2, %v5734_v15  ;;  %v9445_v2 = vld [vmem:[%s12153_s23 + $0x18] sm:$0xff]  }
0x119a   : > { %v5742_v13 = vpop.permute.xlu0 %5741  ;;  %v5736_v7 = vpop.permute.xlu1 %5735 }
0x119b   : > { %v5756_v47 = vsel %vm1725_vm10, %v5754_v4, %v5742_v13  ;;  %v5749_v24 = vsel %vm1725_vm10, %v5747_v23, %v5736_v7 }
0x119e   : > { %v5744_v34 = vpop.permute.xlu0 %5743  ;;  %v5738_v53 = vpop.permute.xlu1 %5737 }
0x119f   : > { %v5758_v55 = vsel %vm1728_vm11, %v5756_v47, %v5744_v34  ;;  %v5751_v8 = vsel %vm1728_vm11, %v5749_v24, %v5738_v53  ;;  %v9447_v47 = vld [vmem:[#allocation8 + $0x18] sm:$0xff]  }
0x11a0   : > { %v5759_v5 = vsel %vm1063_vm8, %v5751_v8, 0  ;;  %8559 = vmatprep.subr.msk.bf16.mxu1 %vm1063_vm8, %v5758_v55 }
0x11a1   : > { %5764 = vmatpush1.bf16.msra.mxu1 %v5759_v5 }
0x11a2   : > { %v11401_v62 = vpop.permute.xlu0 %6087  ;;  %v11403_v38 = vpop.permute.xlu1 %6085 }
0x11a3   : > { %8980 = vmatprep.mubr.msk.bf16.mxu0 %vm1721_vm9, %v11403_v38 }
0x11a4   : > { %8560 = vmatmul.mubr.msk.bf16.vlgmr.msra.gmra.mrb[20].mxu1 %vm957_vm4, %v10194_v46  ;;  %8981 = vmatmul.mubr.msk.bf16.vlgmr.msra.gmra.mrb[32].mxu0 %vm1721_vm9, %v11401_v62 }
0x11a5   : > { %8989 = vmatpush3.bf16.msra.mxu0 %v9444_v6  ;;  %6839 = vmatprep.mubr.bf16.mxu1 %v12143_v22 }
0x11a6   : > { %v11415_v33 = vpop.permute.xlu0 %6091  ;;  %v11417_v18 = vpop.permute.xlu1 %6089  ;;  %8990 = vmatprep.subr.bf16.mxu0 %v9445_v2 }
0x11a7   : > { %8984 = vmatprep.mubr.msk.bf16.mxu0 %vm1721_vm9, %v11417_v18 }
0x11a9   : > { %8991 = vmatpush3.bf16.msra.mxu0 %v9445_v2 }
0x11aa   : > { %v5139_v43 = vpop.permute.xlu0 %5138  ;;  %v5136_v50 = vpop.permute.xlu1 %5135  ;;  %9000 = vmatprep.subr.bf16.mxu0 %v9446_v42 }
0x11ab   : > { %v5155_v21 = vcombine.high %v11367_v11, %v5139_v43  ;;  %v5154_v45 = vcombine.low %v11367_v11, %v5139_v43 }
0x11ac   : > { %8985 = vmatmul.mubr.msk.bf16.gmra.mrb[36].mxu0 %vm1721_vm9, %v11415_v33 }
0x11ad   : > { %8992 = vmatprep.mubr.msk.bf16.mxu0 %vm1721_vm9, %v11186_v25  ;;  %v5169_v59 = vrot.slane %v5155_v21, %v10089_v19  ;;  %v5162_v11 = vrot.slane %v5154_v45, %v10089_v19 }
0x11ae   : > { %v5146_v16 = vpop.permute.xlu0 %5145  ;;  %v5142_v6 = vpop.permute.xlu1 %5141 }
0x11af   : > { %v5170_v26 = vcombine.low %v5136_v50, %v5142_v6  ;;  %v5171_v54 = vcombine.high %v5136_v50, %v5142_v6 }
0x11b1   : > { %v5185_v41 = vrot.slane %v5171_v54, %v10089_v19  ;;  %v5178_v7 = vrot.slane %v5170_v26, %v10089_v19 }
0x11b2   : > { %v5152_v15 = vpop.permute.xlu0 %5151  ;;  %v5149_v13 = vpop.permute.xlu1 %5148 }
0x11b3   : > { %v5234_v4 = vcombine.low %v5169_v59, %v5185_v41  ;;  %v5235_v23 = vcombine.high %v5169_v59, %v5185_v41  ;;  %v5202_v24 = vcombine.low %v5146_v16, %v5152_v15  ;;  %v5203_v34 = vcombine.high %v5146_v16, %v5152_v15 }
0x11b4   : > { %v5186_v53 = vcombine.low %v11375_v58, %v5149_v13  ;;  %v5187_v55 = vcombine.high %v11375_v58, %v5149_v13  ;;  %8993 = vmatmul.mubr.msk.bf16.vlgmr.msra.gmra.mrb[32].mxu0 %vm1721_vm9, %v11184_v20  ;;  %v9448_v58 = vld [vmem:[%s12153_s23 + $0x20] sm:$0xff]   ;;  %v5218_v16 = vcombine.low %v5162_v11, %v5178_v7  ;;  %v5219_v12 = vcombine.high %v5162_v11, %v5178_v7 }
0x11b5   : > { %8996 = vmatprep.mubr.msk.bf16.mxu0 %vm1721_vm9, %v11188_v32  ;;  %v5210_v8 = vrot.slane %v5202_v24, %v10089_v19  ;;  %v5217_v5 = vrot.slane %v5203_v34, %v10089_v19  ;;  %9001 = vmatpush3.bf16.msra.mxu0 %v9446_v42 }
0x11b6   : > { %v5194_v2 = vrot.slane %v5186_v53, %v10089_v19  ;;  %v5201_v43 = vrot.slane %v5187_v55, %v10089_v19  ;;  %v4294_v50 = vpop.permute.xlu0 %4293  ;;  %v4292_v21 = vpop.permute.xlu1 %4291  ;;  %9002 = vmatprep.subr.bf16.mxu0 %v9447_v47  ;;  %v5226_v42 = vrot.slane %v5218_v16, %v12142_v63  ;;  %v5233_v11 = vrot.slane %v5219_v12, %v12142_v63 }
0x11b8   : > { %v5250_v6 = vcombine.low %v5194_v2, %v5210_v8  ;;  %v5266_v26 = vcombine.low %v5201_v43, %v5217_v5  ;;  %v5267_v54 = vcombine.high %v5201_v43, %v5217_v5  ;;  %v5251_v53 = vcombine.high %v5194_v2, %v5210_v8 }
0x11b9   : > { %9003 = vmatpush3.bf16.msra.mxu0 %v9447_v47 }
0x11ba   : > { %v5258_v45 = vrot.slane %v5250_v6, %v12142_v63  ;;  %v4298_v59 = vpop.permute.xlu0 %4297  ;;  %v4296_v41 = vpop.permute.xlu1 %4295  ;;  %9012 = vmatprep.subr.bf16.mxu0 %v9448_v58  ;;  %v11465_v8 = vrot.slane %v5266_v26, %v12142_v63  ;;  %v11468_v2 = vrot.slane %v5267_v54, %v12142_v63  ;;  %v11482_v26 = vrot.slane %v5235_v23, %v12142_v63 }
0x11bb   : > { %v4331_v15 = vcombine.low %v4294_v50, %v4298_v59  ;;  %v4332_v13 = vcombine.high %v4294_v50, %v4298_v59  ;;  %v4315_v24 = vcombine.low %v4292_v21, %v4296_v41  ;;  %v4316_v34 = vcombine.high %v4292_v21, %v4296_v41 }
0x11bc   : > { %8997 = vmatmul.mubr.msk.bf16.gmra.mrb[36].mxu0 %vm1721_vm9, %v11190_v48  ;;  %v5283_v16 = vcombine.high %v5226_v42, %v5258_v45  ;;  %v5282_v6 = vcombine.low %v5226_v42, %v5258_v45  ;;  %v5265_v54 = vrot.slane %v5251_v53, %v12142_v63  ;;  %v9449_v45 = vld [vmem:[%s12153_s23 + $0x28] sm:$0xff]  }
0x11bd   : > { %v11449_v55 = vrot.slane %v4331_v15, %v10089_v19  ;;  %v11452_v5 = vrot.slane %v4332_v13, %v10089_v19  ;;  %v11455_v43 = vrot.slane %v4315_v24, %v10089_v19  ;;  %v11458_v47 = vrot.slane %v4316_v34, %v10089_v19  ;;  %9004 = vmatprep.mubr.msk.bf16.mxu0 %vm1721_vm9, %v6288_v40 }
0x11be   : > { %v11479_v40 = vrot.slane %v5234_v4, %v12142_v63  ;;  %v5291_v1 = vmul.f32 2.0, %v5283_v16  ;;  %v5290_v7 = vmul.f32 2.0, %v5282_v6  ;;  %v5285_v53 = vcombine.high %v5233_v11, %v5265_v54 }
0x11bf   : > { %v4379_v15 = vcombine.low %v11455_v43, %v11449_v55  ;;  %v4380_v13 = vcombine.high %v11455_v43, %v11449_v55  ;;  %v5284_v16 = vcombine.low %v5233_v11, %v5265_v54 }
0x11c0   : > { %v5287_v34 = vcombine.high %v11479_v40, %v11465_v8  ;;  %v5286_v42 = vcombine.low %v11479_v40, %v11465_v8  ;;  %v5299_v6 = vsub.f32 %v5291_v1, %v4294_v50  ;;  %v5298_v4 = vsub.f32 %v5290_v7, %v4292_v21  ;;  %v9451_v21 = vld [vmem:[#allocation8 + $0x28] sm:$0xff]  }
0x11c1   : > { %v5293_v23 = vmul.f32 2.0, %v5285_v53  ;;  %v5292_v24 = vmul.f32 2.0, %v5284_v16 }
0x11c2   : > { %v11505_v12 = vpack.c.bf16 %v5299_v6, %v5298_v4 }
0x11c3   : > { %v5301_v37 = vsub.f32 %v5293_v23, %v4298_v59  ;;  %v5300_v0 = vsub.f32 %v5292_v24, %v4296_v41 }
0x11c4   : > { %9005 = vmatmul.mubr.msk.bf16.vlgmr.msra.gmra.mrb[32].mxu0 %vm1721_vm9, %v6289_v36 }
0x11c5   : > { %9008 = vmatprep.mubr.msk.bf16.mxu0 %vm1721_vm9, %v6290_v49  ;;  %9013 = vmatpush3.bf16.msra.mxu0 %v9448_v58  ;;  %v11513_v30 = vpack.c.bf16 %v5301_v37, %v5300_v0  ;;  %v5295_v37 = vmul.f32 2.0, %v5287_v34  ;;  %v5294_v0 = vmul.f32 2.0, %v5286_v42  ;;  %v11556_v42 = vrot.slane %v4379_v15, %v12142_v63 }
0x11c6   : > { %9014 = vmatprep.subr.bf16.mxu0 %v9449_v45 }
0x11c9   : > { %9015 = vmatpush3.bf16.msra.mxu0 %v9449_v45 }
0x11cc   : > { %9009 = vmatmul.mubr.msk.bf16.gmra.mrb[36].mxu0 %vm1721_vm9, %v6291_v29  ;;  %v9450_v29 = vld [vmem:[#allocation8 + $0x20] sm:$0xff]  }
0x11cd   : > { %9016 = vmatprep.mubr.msk.bf16.mxu0 %vm1721_vm9, %v11505_v12  ;;  %9024 = vmatprep.subr.bf16.mxu0 %v9450_v29 }
0x11d4   : > { %9017 = vmatmul.mubr.msk.bf16.vlgmr.msra.gmra.mrb[32].mxu0 %vm1721_vm9, %v11513_v30 }
0x11d5   : > { %9025 = vmatpush3.bf16.msra.mxu0 %v9450_v29 }
0x11d6   : > { %9026 = vmatprep.subr.bf16.mxu0 %v9451_v21 }
0x11d9   : > { %9027 = vmatpush3.bf16.msra.mxu0 %v9451_v21 }
0x1277   : > { %v5797_v31 = vpop.f32.mrb[20].mxu1 }
0x1278   : > { %v5798_v36 = vadd.f32 %v5797_v31, %v10472_v27  ;;  %v5799_v49 = vpop.f32.mrb[21].mxu1 }
0x1279   : > { %v5801_v50 = vpop.f32.mrb[22].mxu1  ;;  %v5800_v10 = vadd.f32 %v5799_v49, %v10482_v60 }
0x127a   : > { %5808 = vrot.lane.b32.xlu0 %v5798_v36, %s9763_s13  ;;  %5805 = vrot.lane.b32.xlu1 %v5798_v36, %s9764_s16  ;;  %v5802_v17 = vpop.f32.mrb[23].mxu1 }
0x127e   : > { %5815 = vrot.lane.b32.xlu0 %v5800_v10, %s9764_s16  ;;  %5811 = vrot.lane.b32.xlu1 %v5798_v36, %s9762_s29 }
0x1282   : > { %5821 = vrot.lane.b32.xlu0 %v5800_v10, %s9762_s29  ;;  %5818 = vrot.lane.b32.xlu1 %v5800_v10, %s9763_s13 }
0x1286   : > { %4301 = vrot.lane.b32.xlu0 %v10996_v61, %s9764_s16  ;;  %4299 = vrot.lane.b32.xlu1 %v10990_v3, %s9764_s16 }
0x128a   : > { %4305 = vrot.lane.b32.xlu0 %v11006_v9, %s9764_s16  ;;  %4303 = vrot.lane.b32.xlu1 %v11001_v56, %s9764_s16 }
0x12ec   : > { %v5809_v58 = vpop.permute.xlu0 %5808  ;;  %v5806_v59 = vpop.permute.xlu1 %5805 }
0x12ed   : > { %v5824_v61 = vcombine.low %v5798_v36, %v5809_v58  ;;  %v5825_v4 = vcombine.high %v5798_v36, %v5809_v58 }
0x12ef   : > { %v5832_v9 = vrot.slane %v5824_v61, %v10089_v19  ;;  %v5839_v29 = vrot.slane %v5825_v4, %v10089_v19  ;;  %v12154_v4 = vcombine.low %v11458_v47, %v11452_v5 }
0x12f0   : > { %v5816_v41 = vpop.permute.xlu0 %5815  ;;  %v5812_v24 = vpop.permute.xlu1 %5811 }
0x12f1   : > { %v5840_v1 = vcombine.low %v5806_v59, %v5812_v24  ;;  %v5841_v54 = vcombine.high %v5806_v59, %v5812_v24  ;;  %v11571_v15 = vrot.slane %v12154_v4, %v12142_v63 }
0x12f3   : > { %v5848_v3 = vrot.slane %v5840_v1, %v10089_v19  ;;  %v11536_v16 = vrot.slane %v5841_v54, %v10089_v19 }
0x12f4   : > { %v5822_v45 = vpop.permute.xlu0 %5821  ;;  %v5819_v7 = vpop.permute.xlu1 %5818 }
0x12f5   : > { %v5872_v23 = vcombine.low %v5816_v41, %v5822_v45  ;;  %v5873_v56 = vcombine.high %v5816_v41, %v5822_v45  ;;  %v5856_v11 = vcombine.low %v5800_v10, %v5819_v7  ;;  %v5857_v53 = vcombine.high %v5800_v10, %v5819_v7 }
0x12f6   : > { %v5888_v6 = vcombine.low %v5832_v9, %v5848_v3  ;;  %v5889_v21 = vcombine.high %v5832_v9, %v5848_v3  ;;  %v5904_v8 = vcombine.low %v5839_v29, %v11536_v16  ;;  %v11565_v7 = vrot.slane %v4380_v13, %v12142_v63 }
0x12f7   : > { %v5880_v31 = vrot.slane %v5872_v23, %v10089_v19  ;;  %v5887_v36 = vrot.slane %v5873_v56, %v10089_v19  ;;  %v5864_v49 = vrot.slane %v5856_v11, %v10089_v19  ;;  %v5871_v50 = vrot.slane %v5857_v53, %v10089_v19 }
0x12f8   : > { %v4302_v17 = vpop.permute.xlu0 %4301  ;;  %v4300_v10 = vpop.permute.xlu1 %4299  ;;  %v5896_v61 = vrot.slane %v5888_v6, %v12142_v63  ;;  %v5903_v9 = vrot.slane %v5889_v21, %v12142_v63  ;;  %v5912_v55 = vrot.slane %v5904_v8, %v12142_v63  ;;  %v12155_v13 = vcombine.high %v11482_v26, %v11468_v2 }
0x12f9   : > { %v5303_v58 = vsub.f32 %v5295_v37, %v4302_v17  ;;  %v5302_v59 = vsub.f32 %v5294_v0, %v4300_v10  ;;  %v5920_v34 = vcombine.low %v5864_v49, %v5880_v31  ;;  %v5921_v41 = vcombine.high %v5864_v49, %v5880_v31 }
0x12fa   : > { %v5936_v24 = vcombine.low %v5871_v50, %v5887_v36  ;;  %v5937_v43 = vcombine.high %v5871_v50, %v5887_v36  ;;  %v5297_v37 = vmul.f32 2.0, %v12155_v13  ;;  %v12157_v36 = vcombine.low %v11482_v26, %v11468_v2 }
0x12fb   : > { %v11550_v40 = vpack.c.bf16 %v5303_v58, %v5302_v59  ;;  %v5928_v1 = vrot.slane %v5920_v34, %v12142_v63  ;;  %v5935_v54 = vrot.slane %v5921_v41, %v12142_v63  ;;  %v12156_v59 = vcombine.high %v11458_v47, %v11452_v5 }
0x12fc   : > { %v4306_v3 = vpop.permute.xlu0 %4305  ;;  %v4304_v45 = vpop.permute.xlu1 %4303  ;;  %v5944_v23 = vrot.slane %v5936_v24, %v12142_v63  ;;  %v5905_v41 = vcombine.high %v5839_v29, %v11536_v16  ;;  %v5296_v50 = vmul.f32 2.0, %v12157_v36  ;;  %v5951_v47 = vrot.slane %v5937_v43, %v12142_v63 }
0x12fd   : > { %9020 = vmatprep.mubr.msk.bf16.mxu0 %vm1721_vm9, %v11550_v40  ;;  %v5952_v56 = vcombine.low %v5896_v61, %v5928_v1  ;;  %v5953_v11 = vcombine.high %v5896_v61, %v5928_v1  ;;  %v4363_v53 = vcombine.low %v4302_v17, %v4306_v3  ;;  %v4364_v6 = vcombine.high %v4302_v17, %v4306_v3 }
0x12fe   : > { %v4347_v0 = vcombine.low %v4300_v10, %v4304_v45  ;;  %v5954_v31 = vcombine.low %v5903_v9, %v5935_v54  ;;  %v5955_v49 = vcombine.high %v5903_v9, %v5935_v54  ;;  %v4410_v34 = vrot.slane %v12156_v59, %v12142_v63 }
0x12ff   : > { %v5960_v21 = vmul.f32 2.0, %v5952_v56  ;;  %v5961_v58 = vmul.f32 2.0, %v5953_v11  ;;  %v5305_v17 = vsub.f32 %v5297_v37, %v4306_v3  ;;  %v5956_v24 = vcombine.low %v5912_v55, %v5944_v23 }
0x1300   : > { %v5957_v8 = vcombine.high %v5912_v55, %v5944_v23  ;;  %v4371_v61 = vrot.slane %v4363_v53, %v10089_v19  ;;  %v4378_v1 = vrot.slane %v4364_v6, %v10089_v19  ;;  %v4348_v54 = vcombine.high %v4300_v10, %v4304_v45 }
0x1301   : > { %v4355_v4 = vrot.slane %v4347_v0, %v10089_v19  ;;  %v5304_v9 = vsub.f32 %v5296_v50, %v4304_v45  ;;  %v5968_v5 = vsub.f32 %v5960_v21, %v11082_v14  ;;  %v5962_v16 = vmul.f32 2.0, %v5954_v31 }
0x1302   : > { %v5963_v29 = vmul.f32 2.0, %v5955_v49  ;;  %v5969_v3 = vsub.f32 %v5961_v58, %v11084_v57  ;;  %v4362_v2 = vrot.slane %v4348_v54, %v10089_v19  ;;  %v5919_v11 = vrot.slane %v5905_v41, %v12142_v63 }
0x1303   : > { %v4411_v26 = vcombine.low %v4355_v4, %v4371_v61  ;;  %v4412_v23 = vcombine.high %v4355_v4, %v4371_v61  ;;  %v11596_v56 = vpack.c.bf16 %v5305_v17, %v5304_v9  ;;  %v5964_v10 = vmul.f32 2.0, %v5956_v24 }
0x1304   : > { %v5965_v53 = vmul.f32 2.0, %v5957_v8  ;;  %v6500_v6 = vpack.c.bf16 %v5969_v3, %v5968_v5  ;;  %v4427_v43 = vcombine.low %v4362_v2, %v4378_v1  ;;  %v4428_v13 = vcombine.high %v4362_v2, %v4378_v1 }
0x1305   : > { %v4419_v45 = vrot.slane %v4411_v26, %v12142_v63  ;;  %v4426_v55 = vrot.slane %v4412_v23, %v12142_v63  ;;  %9021 = vmatmul.mubr.msk.bf16.gmra.mrb[36].mxu0 %vm1721_vm9, %v11596_v56  ;;  %v5958_v37 = vcombine.low %v5919_v11, %v5951_v47  ;;  %v5959_v0 = vcombine.high %v5919_v11, %v5951_v47  ;;  %v8605_v47 = vld [vmem:[%s12158_s6] ss:$0 sm:$0xff] }
0x1306   : > { %v5970_v31 = vsub.f32 %v5962_v16, %v11086_v28  ;;  %v5971_v49 = vsub.f32 %v5963_v29, %v11088_v51  ;;  %9028 = vmatprep.mubr.msk.bf16.mxu0 %vm1721_vm9, %v6500_v6  ;;  %v4435_v21 = vrot.slane %v4427_v43, %v12142_v63  ;;  %v4442_v58 = vrot.slane %v4428_v13, %v12142_v63 }
0x1307   : > { %v4443_v59 = vcombine.low %v11556_v42, %v4419_v45  ;;  %v4444_v41 = vcombine.high %v11556_v42, %v4419_v45  ;;  %v4445_v17 = vcombine.low %v11565_v7, %v4426_v55  ;;  %v4446_v36 = vcombine.high %v11565_v7, %v4426_v55 }
0x1308   : > { %v5972_v50 = vsub.f32 %v5964_v10, %v11090_v39  ;;  %v5973_v24 = vsub.f32 %v5965_v53, %v11092_v35  ;;  %v4447_v8 = vcombine.low %v11571_v15, %v4435_v21  ;;  %v4448_v61 = vcombine.high %v11571_v15, %v4435_v21 }
0x1309   : > { %v4449_v1 = vcombine.low %v4410_v34, %v4442_v58  ;;  %v4450_v54 = vcombine.high %v4410_v34, %v4442_v58  ;;  %4451 = vst.msk [vmem:[%s11618_s27] sm:$0xff] %vm1721_vm9, %v4443_v59  ;;  %4452 = vst.msk [vmem:[%s11618_s27 + $0x8] sm:$0xff] %vm1721_vm9, %v4444_v41  ;;  %v5966_v42 = vmul.f32 2.0, %v5958_v37  ;;  %v5967_v7 = vmul.f32 2.0, %v5959_v0 }
0x130a   : > { %4453 = vst.msk [vmem:[%s11618_s27 + $0x10] sm:$0xff] %vm1721_vm9, %v4445_v17  ;;  %4454 = vst.msk [vmem:[%s11618_s27 + $0x18] sm:$0xff] %vm1721_vm9, %v4446_v36  ;;  %v6501_v15 = vpack.c.bf16 %v5971_v49, %v5970_v31  ;;  %v6502_v34 = vpack.c.bf16 %v5973_v24, %v5972_v50 }
0x130b   : > { %4455 = vst.msk [vmem:[%s11618_s27 + $0x20] sm:$0xff] %vm1721_vm9, %v4447_v8  ;;  %4456 = vst.msk [vmem:[%s11618_s27 + $0x28] sm:$0xff] %vm1721_vm9, %v4448_v61  ;;  %v5974_v4 = vsub.f32 %v5966_v42, %v11094_v44  ;;  %v5975_v9 = vsub.f32 %v5967_v7, %v11096_v52 }
0x130c   : > { %4457 = vst.msk [vmem:[%s11618_s27 + $0x30] sm:$0xff] %vm1721_vm9, %v4449_v1  ;;  %4458 = vst.msk [vmem:[%s11618_s27 + $0x38] sm:$0xff] %vm1721_vm9, %v4450_v54 }
0x130d   : > { %9029 = vmatmul.mubr.msk.bf16.vlgmr.msra.gmra.mrb[32].mxu0 %vm1721_vm9, %v6501_v15  ;;  %v6503_v5 = vpack.c.bf16 %v5975_v9, %v5974_v4 }
0x130e   : > { %9032 = vmatprep.mubr.msk.bf16.mxu0 %vm1721_vm9, %v6502_v34 }
0x1315   : > { %9033 = vmatmul.mubr.msk.bf16.gmra.mrb[36].mxu0 %vm1721_vm9, %v6503_v5 }
0x13e0   : > { %v9030_v16 = vpop.f32.mrb[32].mxu0 }
0x13e1   : > { %v6615_v29 = vadd.f32 %v9030_v16, %v8605_v47  ;;  %v6567_v3 = vpop.f32.mrb[33].mxu0 }
0x13e2   : > { %v6613_v2 = vadd.f32 %v8605_v47, %v6567_v3  ;;  %v9031_v26 = vpop.f32.mrb[34].mxu0 }
0x13e3   : > { %v8608_v23 = vmul.f32 -1.442695, %v6615_v29  ;;  %v6616_v11 = vadd.f32 %v9031_v26, %v8605_v47  ;;  %v6570_v10 = vpop.f32.mrb[35].mxu0 }
0x13e4   : > { %v8606_v53 = vmul.f32 -1.442695, %v6613_v2  ;;  %v6614_v6 = vadd.f32 %v8605_v47, %v6570_v10 }
0x13e5   : > { %9512 = vpow2.f32 %v8608_v23  ;;  %v8609_v45 = vmul.f32 -1.442695, %v6616_v11 }
0x13e6   : > { %9514 = vpow2.f32 %v8606_v53  ;;  %v8607_v55 = vmul.f32 -1.442695, %v6614_v6 }
0x13e7   : > { %9516 = vpow2.f32 %v8609_v45 }
0x13e8   : > { %9518 = vpow2.f32 %v8607_v55  ;;  %v9034_v43 = vpop.f32.mrb[36].mxu0 }
0x13e9   : > { %v6619_v13 = vadd.f32 %v9034_v43, %v8605_v47  ;;  %v6583_v37 = vpop.f32.mrb[37].mxu0 }
0x13ea   : > { %v6617_v0 = vadd.f32 %v8605_v47, %v6583_v37  ;;  %v9035_v31 = vpop.f32.mrb[38].mxu0 }
0x13eb   : > { %v8612_v49 = vmul.f32 -1.442695, %v6619_v13  ;;  %v6620_v21 = vadd.f32 %v9035_v31, %v8605_v47  ;;  %v6586_v58 = vpop.f32.mrb[39].mxu0 }
0x13ec   : > { %v8610_v59 = vmul.f32 -1.442695, %v6617_v0  ;;  %v6618_v41 = vadd.f32 %v8605_v47, %v6586_v58 }
0x13ed   : > { %9520 = vpow2.f32 %v8612_v49  ;;  %v8613_v17 = vmul.f32 -1.442695, %v6620_v21 }
0x13ee   : > { %9522 = vpow2.f32 %v8610_v59  ;;  %v8611_v36 = vmul.f32 -1.442695, %v6618_v41 }
0x13ef   : > { %v9513_v50 = vpop.eup %9512  ;;  %9524 = vpow2.f32 %v8613_v17 }
0x13f0   : > { %v9515_v24 = vpop.eup %9514  ;;  %9526 = vpow2.f32 %v8611_v36  ;;  %v6647_v1 = vadd.f32 1.0, %v9513_v50 }
0x13f1   : > { %v9517_v8 = vpop.eup %9516  ;;  %v6645_v54 = vadd.f32 1.0, %v9515_v24 }
0x13f2   : > { %v9519_v61 = vpop.eup %9518  ;;  %v6648_v42 = vadd.f32 1.0, %v9517_v8  ;;  %9528 = vrcp.f32 %v6647_v1 }
0x13f3   : > { %v6646_v7 = vadd.f32 1.0, %v9519_v61  ;;  %9530 = vrcp.f32 %v6645_v54 }
0x13f4   : > { %9532 = vrcp.f32 %v6648_v42 }
0x13f5   : > { %9534 = vrcp.f32 %v6646_v7 }
0x13f7   : > { %v9521_v15 = vpop.eup %9520 }
0x13f8   : > { %v9523_v34 = vpop.eup %9522  ;;  %v6651_v4 = vadd.f32 1.0, %v9521_v15 }
0x13f9   : > { %v9525_v9 = vpop.eup %9524  ;;  %v6649_v5 = vadd.f32 1.0, %v9523_v34 }
0x13fa   : > { %v9527_v47 = vpop.eup %9526  ;;  %9536 = vrcp.f32 %v6651_v4  ;;  %v6652_v16 = vadd.f32 1.0, %v9525_v9 }
0x13fb   : > { %9538 = vrcp.f32 %v6649_v5  ;;  %v6650_v29 = vadd.f32 1.0, %v9527_v47 }
0x13fc   : > { %9540 = vrcp.f32 %v6652_v16  ;;  %v11644_v3 = vpop.eup %9528 }
0x13fd   : > { %9542 = vrcp.f32 %v6650_v29  ;;  %12159 = vst [vmem:[#allocation29_spill] sm:$0xff] %v11644_v3  ;;  %v11646_v2 = vpop.eup %9530  ;;  %v11658_v53 = vmul.f32 %v11644_v3, %v11086_v28 }
0x13fe   : > { %12160 = vst [vmem:[#allocation31_spill] sm:$0xff] %v11646_v2  ;;  %v11648_v26 = vpop.eup %9532  ;;  %v11668_v55 = vmul.f32 %v11646_v2, %v11082_v14 }
0x13ff   : > { %12161 = vst [vmem:[#allocation30_spill] sm:$0xff] %v11648_v26  ;;  %v11650_v23 = vpop.eup %9534  ;;  %v11678_v37 = vmul.f32 %v11648_v26, %v11088_v51 }
0x1400   : > { %12162 = vst [vmem:[#allocation32_spill] sm:$0xff] %v11650_v23  ;;  %v11688_v49 = vmul.f32 %v11650_v23, %v11084_v57 }
0x1404   : > { %v11652_v11 = vpop.eup %9536 }
0x1405   : > { %12163 = vst [vmem:[#allocation34_spill] sm:$0xff] %v11652_v11  ;;  %v11654_v10 = vpop.eup %9538  ;;  %v11662_v6 = vmul.f32 %v11652_v11, %v11094_v44 }
0x1406   : > { %12164 = vst [vmem:[#allocation36_spill] sm:$0xff] %v11654_v10  ;;  %v11664_v45 = vpop.eup %9540  ;;  %v11672_v43 = vmul.f32 %v11654_v10, %v11090_v39 }
0x1407   : > { %12165 = vst [vmem:[#allocation33_spill] sm:$0xff] %v11664_v45  ;;  %v11674_v13 = vpop.eup %9542  ;;  %v11682_v0 = vmul.f32 %v11664_v45, %v11096_v52  ;;  %v8615_v31 = vpack.c.bf16 %v11662_v6, %v11658_v53 }
0x1408   : > { %12166 = vst [vmem:[#allocation35_spill] sm:$0xff] %v11674_v13  ;;  %v11692_v21 = vmul.f32 %v11674_v13, %v11092_v35  ;;  %v8614_v58 = vpack.c.bf16 %v11672_v43, %v11668_v55 }
0x1409   : > { %v6700_v59 = vrot.slane %v8615_v31, %v10089_v19  ;;  %v8617_v41 = vpack.c.bf16 %v11682_v0, %v11678_v37 }
0x140a   : > { %v6692_v17 = vrot.slane %v8614_v58, %v10089_v19  ;;  %v8616_v36 = vpack.c.bf16 %v11692_v21, %v11688_v49 }
0x140b   : > { %v6734_v50 = vrot.slane %v8617_v41, %v10089_v19 }
0x140c   : > { %v6702_v24 = vcombine.high %v6692_v17, %v6700_v59  ;;  %v6726_v8 = vrot.slane %v8616_v36, %v10089_v19  ;;  %v6701_v61 = vcombine.low %v6692_v17, %v6700_v59 }
0x140e   : > { %v6716_v1 = vrot.slane %v6702_v24, %v12142_v63  ;;  %v6736_v54 = vcombine.high %v6726_v8, %v6734_v50  ;;  %v6709_v42 = vrot.slane %v6701_v61, %v12142_v63  ;;  %v6735_v7 = vcombine.low %v6726_v8, %v6734_v50 }
0x1410   : > { %v6750_v15 = vrot.slane %v6736_v54, %v12142_v63  ;;  %v6743_v34 = vrot.slane %v6735_v7, %v12142_v63  ;;  %v6768_v4 = vshrl.u32 %v6716_v1, 16  ;;  %v6756_v5 = vshrl.u32 %v6709_v42, 16 }
0x1411   : > { %v6718_v17 = vcombine.high %v6716_v1, %v12143_v22  ;;  %v6717_v36 = vcombine.high %v6709_v42, %v12143_v22 }
0x1412   : > { %v6769_v9 = vshrl.u32 %v6750_v15, 16  ;;  %v6757_v47 = vshrl.u32 %v6743_v34, 16  ;;  %v6767_v16 = vpack.i.b16 %v6750_v15, %v6716_v1  ;;  %v6755_v29 = vpack.i.b16 %v6743_v34, %v6709_v42 }
0x1413   : > { %v6752_v59 = vcombine.high %v6750_v15, %v12143_v22  ;;  %v6751_v41 = vcombine.high %v6743_v34, %v12143_v22  ;;  %v6774_v54 = vshrl.u32 %v6718_v17, 16  ;;  %v6762_v7 = vshrl.u32 %v6717_v36, 16 }
0x1414   : > { %v6770_v31 = vpack.i.b16 %v6769_v9, %v6768_v4  ;;  %v6758_v58 = vpack.i.b16 %v6757_v47, %v6756_v5 }
0x1415   : > { %v6773_v50 = vpack.i.b16 %v6752_v59, %v6718_v17  ;;  %v6761_v24 = vpack.i.b16 %v6751_v41, %v6717_v36  ;;  %v6775_v8 = vshrl.u32 %v6752_v59, 16  ;;  %v6763_v61 = vshrl.u32 %v6751_v41, 16 }
0x1416   : > { %6783 = vrot.lane.b32.xlu0 %v6770_v31, %s9762_s29  ;;  %6777 = vrot.lane.b32.xlu1 %v6758_v58, %s9762_s29 }
0x1417   : > { %v6776_v15 = vpack.i.b16 %v6775_v8, %v6774_v54  ;;  %v6764_v34 = vpack.i.b16 %v6763_v61, %v6762_v7 }
0x141a   : > { %6785 = vrot.lane.b32.xlu0 %v6773_v50, %s9763_s13  ;;  %6779 = vrot.lane.b32.xlu1 %v6761_v24, %s9763_s13 }
0x141e   : > { %6787 = vrot.lane.b32.xlu0 %v6776_v15, %s9764_s16  ;;  %6781 = vrot.lane.b32.xlu1 %v6764_v34, %s9764_s16 }
0x1488   : > { %v6784_v4 = vpop.permute.xlu0 %6783  ;;  %v6778_v1 = vpop.permute.xlu1 %6777 }
0x1489   : > { %v6798_v5 = vsel %vm1721_vm9, %v6767_v16, %v6784_v4  ;;  %v6791_v47 = vsel %vm1721_vm9, %v6755_v29, %v6778_v1 }
0x148c   : > { %v6786_v9 = vpop.permute.xlu0 %6785  ;;  %v6780_v42 = vpop.permute.xlu1 %6779 }
0x148d   : > { %v6800_v31 = vsel %vm1725_vm10, %v6798_v5, %v6786_v9  ;;  %v6793_v58 = vsel %vm1725_vm10, %v6791_v47, %v6780_v42 }
0x1490   : > { %v6788_v59 = vpop.permute.xlu0 %6787  ;;  %v6782_v41 = vpop.permute.xlu1 %6781 }
0x1491   : > { %v6802_v17 = vsel %vm1728_vm11, %v6800_v31, %v6788_v59  ;;  %v6795_v36 = vsel %vm1728_vm11, %v6793_v58, %v6782_v41 }
0x1492   : > { %v6803_v50 = vsel %vm1063_vm8, %v6795_v36, 0  ;;  %8618 = vmatprep.subr.msk.bf16.mxu1 %vm1063_vm8, %v6802_v17 }
0x1493   : > { %6808 = vmatpush1.bf16.msra.mxu1 %v6803_v50 }
0x1496   : > { %8619 = vmatmul.mubr.msk.bf16.vlgmr.msra.gmra.mrb[24].mxu1 %vm957_vm4, %v10194_v46 }
0x1497   : > { %7166 = vmatprep.mubr.bf16.mxu1 %v12143_v22 }
0x1569   : > { %v6841_v16 = vpop.f32.mrb[24].mxu1 }
0x156a   : > { %v6842_v29 = vadd.f32 %v6841_v16, %v10472_v27  ;;  %v6843_v24 = vpop.f32.mrb[25].mxu1 }
0x156b   : > { %v6845_v8 = vpop.f32.mrb[26].mxu1  ;;  %v6844_v54 = vadd.f32 %v6843_v24, %v10482_v60 }
0x156c   : > { %6852 = vrot.lane.b32.xlu0 %v6842_v29, %s9763_s13  ;;  %6849 = vrot.lane.b32.xlu1 %v6842_v29, %s9764_s16  ;;  %v6846_v61 = vpop.f32.mrb[27].mxu1 }
0x1570   : > { %6859 = vrot.lane.b32.xlu0 %v6844_v54, %s9764_s16  ;;  %6855 = vrot.lane.b32.xlu1 %v6842_v29, %s9762_s29 }
0x1574   : > { %6865 = vrot.lane.b32.xlu0 %v6844_v54, %s9762_s29  ;;  %6862 = vrot.lane.b32.xlu1 %v6844_v54, %s9763_s13 }
0x15de   : > { %v6853_v7 = vpop.permute.xlu0 %6852  ;;  %v6850_v15 = vpop.permute.xlu1 %6849 }
0x15df   : > { %v6868_v1 = vcombine.low %v6842_v29, %v6853_v7  ;;  %v6869_v5 = vcombine.high %v6842_v29, %v6853_v7 }
0x15e1   : > { %v6876_v59 = vrot.slane %v6868_v1, %v10089_v19  ;;  %v6883_v24 = vrot.slane %v6869_v5, %v10089_v19 }
0x15e2   : > { %v6860_v34 = vpop.permute.xlu0 %6859  ;;  %v6856_v4 = vpop.permute.xlu1 %6855 }
0x15e3   : > { %v6884_v9 = vcombine.low %v6850_v15, %v6856_v4  ;;  %v6885_v42 = vcombine.high %v6850_v15, %v6856_v4 }
0x15e5   : > { %v6892_v47 = vrot.slane %v6884_v9, %v10089_v19  ;;  %v6899_v41 = vrot.slane %v6885_v42, %v10089_v19 }
0x15e6   : > { %v6866_v31 = vpop.permute.xlu0 %6865  ;;  %v6863_v58 = vpop.permute.xlu1 %6862 }
0x15e7   : > { %v6916_v17 = vcombine.low %v6860_v34, %v6866_v31  ;;  %v6917_v36 = vcombine.high %v6860_v34, %v6866_v31  ;;  %v6900_v50 = vcombine.low %v6844_v54, %v6863_v58  ;;  %v6901_v16 = vcombine.high %v6844_v54, %v6863_v58 }
0x15e8   : > { %v6932_v8 = vcombine.low %v6876_v59, %v6892_v47  ;;  %v6933_v61 = vcombine.high %v6876_v59, %v6892_v47  ;;  %v6948_v4 = vcombine.low %v6883_v24, %v6899_v41  ;;  %v6949_v1 = vcombine.high %v6883_v24, %v6899_v41 }
0x15e9   : > { %v6924_v45 = vrot.slane %v6916_v17, %v10089_v19  ;;  %v6931_v29 = vrot.slane %v6917_v36, %v10089_v19  ;;  %v6908_v7 = vrot.slane %v6900_v50, %v10089_v19  ;;  %v6915_v15 = vrot.slane %v6901_v16, %v10089_v19 }
0x15ea   : > { %v6940_v54 = vrot.slane %v6932_v8, %v12142_v63  ;;  %v6947_v5 = vrot.slane %v6933_v61, %v12142_v63  ;;  %v6956_v17 = vrot.slane %v6948_v4, %v12142_v63  ;;  %v6963_v41 = vrot.slane %v6949_v1, %v12142_v63 }
0x15eb   : > { %v6964_v9 = vcombine.low %v6908_v7, %v6924_v45  ;;  %v6965_v42 = vcombine.high %v6908_v7, %v6924_v45  ;;  %v6980_v11 = vcombine.low %v6915_v15, %v6931_v29  ;;  %v6981_v34 = vcombine.high %v6915_v15, %v6931_v29 }
0x15ed   : > { %v6972_v47 = vrot.slane %v6964_v9, %v12142_v63  ;;  %v6979_v31 = vrot.slane %v6965_v42, %v12142_v63  ;;  %v6988_v58 = vrot.slane %v6980_v11, %v12142_v63  ;;  %v6995_v59 = vrot.slane %v6981_v34, %v12142_v63 }
0x15ef   : > { %v11753_v36 = vcombine.low %v6940_v54, %v6972_v47  ;;  %v11755_v45 = vcombine.high %v6940_v54, %v6972_v47  ;;  %v11757_v50 = vcombine.low %v6947_v5, %v6979_v31  ;;  %v11759_v16 = vcombine.high %v6947_v5, %v6979_v31 }
0x15f0   : > { %v11761_v24 = vcombine.low %v6956_v17, %v6988_v58  ;;  %v11763_v8 = vcombine.high %v6956_v17, %v6988_v58  ;;  %v11765_v61 = vcombine.low %v6963_v41, %v6995_v59  ;;  %v11767_v11 = vcombine.high %v6963_v41, %v6995_v59 }
0x15f2   : > { %v8620_v15 = vpack.c.bf16 %v11761_v24, %v11753_v36  ;;  %v8621_v4 = vpack.c.bf16 %v11765_v61, %v11757_v50  ;;  %v8622_v1 = vpack.c.bf16 %v11763_v8, %v11755_v45  ;;  %v8623_v9 = vpack.c.bf16 %v11767_v11, %v11759_v16 }
0x15f4   : > { %v7019_v54 = vrot.slane %v8620_v15, %v10089_v19  ;;  %v7027_v5 = vrot.slane %v8621_v4, %v10089_v19  ;;  %v7053_v47 = vrot.slane %v8622_v1, %v10089_v19  ;;  %v7061_v31 = vrot.slane %v8623_v9, %v10089_v19 }
0x15f6   : > { %v7028_v58 = vcombine.low %v7019_v54, %v7027_v5  ;;  %v7029_v59 = vcombine.high %v7019_v54, %v7027_v5  ;;  %v7062_v17 = vcombine.low %v7053_v47, %v7061_v31  ;;  %v7063_v41 = vcombine.high %v7053_v47, %v7061_v31 }
0x15f8   : > { %v7043_v29 = vrot.slane %v7029_v59, %v12142_v63  ;;  %v7077_v7 = vrot.slane %v7063_v41, %v12142_v63  ;;  %v7036_v42 = vrot.slane %v7028_v58, %v12142_v63  ;;  %v7070_v34 = vrot.slane %v7062_v17, %v12142_v63 }
0x15fa   : > { %v7095_v13 = vshrl.u32 %v7043_v29, 16  ;;  %v7096_v15 = vshrl.u32 %v7077_v7, 16  ;;  %v7083_v10 = vshrl.u32 %v7036_v42, 16  ;;  %v7084_v4 = vshrl.u32 %v7070_v34, 16 }
0x15fb   : > { %v7045_v1 = vcombine.high %v7043_v29, %v12143_v22  ;;  %v7079_v9 = vcombine.high %v7077_v7, %v12143_v22  ;;  %v7044_v54 = vcombine.high %v7036_v42, %v12143_v22  ;;  %v7078_v5 = vcombine.high %v7070_v34, %v12143_v22 }
0x15fc   : > { %v7097_v47 = vpack.i.b16 %v7096_v15, %v7095_v13  ;;  %v7085_v31 = vpack.i.b16 %v7084_v4, %v7083_v10  ;;  %v7094_v59 = vpack.i.b16 %v7077_v7, %v7043_v29  ;;  %v7082_v41 = vpack.i.b16 %v7070_v34, %v7036_v42 }
0x15fd   : > { %v7100_v58 = vpack.i.b16 %v7079_v9, %v7045_v1  ;;  %v7088_v17 = vpack.i.b16 %v7078_v5, %v7044_v54  ;;  %v7101_v23 = vshrl.u32 %v7045_v1, 16  ;;  %v7102_v2 = vshrl.u32 %v7079_v9, 16 }
0x15fe   : > { %7110 = vrot.lane.b32.xlu0 %v7097_v47, %s9762_s29  ;;  %7104 = vrot.lane.b32.xlu1 %v7085_v31, %s9762_s29  ;;  %v7089_v26 = vshrl.u32 %v7044_v54, 16  ;;  %v7090_v3 = vshrl.u32 %v7078_v5, 16  ;;  %v7351_v54 = vpack.c.bf16 %v11688_v49, %v11668_v55  ;;  %v9454_v5 = vld [vmem:[#allocation9] sm:$0xff]   ;;  %v7352_v47 = vpack.c.bf16 %v11678_v37, %v11658_v53  ;;  %v9455_v31 = vld [vmem:[#allocation9 + $0x8] sm:$0xff]  }
0x15ff   : > { %v7103_v63 = vpack.i.b16 %v7102_v2, %v7101_v23  ;;  %v9452_v2 = vld [vmem:[#allocation11] sm:$0xff]   ;;  %v9453_v23 = vld [vmem:[#allocation11 + $0x8] sm:$0xff]  }
0x1600   : > { %v7091_v22 = vpack.i.b16 %v7090_v3, %v7089_v26 }
0x1602   : > { %7112 = vrot.lane.b32.xlu0 %v7100_v58, %s9763_s13  ;;  %7106 = vrot.lane.b32.xlu1 %v7088_v17, %s9763_s13  ;;  %v9457_v58 = vld [vmem:[#allocation9 + $0x18] sm:$0xff]   ;;  %v9458_v17 = vld [vmem:[#allocation11 + $0x10] sm:$0xff]  }
0x1606   : > { %7114 = vrot.lane.b32.xlu0 %v7103_v63, %s9764_s16  ;;  %7108 = vrot.lane.b32.xlu1 %v7091_v22, %s9764_s16  ;;  %v9459_v22 = vld [vmem:[#allocation11 + $0x18] sm:$0xff]  }
0x1670   : > { %v7111_v10 = vpop.permute.xlu0 %7110  ;;  %v7105_v13 = vpop.permute.xlu1 %7104 }
0x1671   : > { %v7125_v42 = vsel %vm1721_vm9, %v7094_v59, %v7111_v10  ;;  %v7118_v34 = vsel %vm1721_vm9, %v7082_v41, %v7105_v13  ;;  %v7353_v59 = vpack.c.bf16 %v11692_v21, %v11672_v43  ;;  %v7354_v41 = vpack.c.bf16 %v11682_v0, %v11662_v6 }
0x1674   : > { %v7113_v29 = vpop.permute.xlu0 %7112  ;;  %v7107_v7 = vpop.permute.xlu1 %7106 }
0x1675   : > { %v7127_v15 = vsel %vm1725_vm10, %v7125_v42, %v7113_v29  ;;  %v7120_v4 = vsel %vm1725_vm10, %v7118_v34, %v7107_v7 }
0x1678   : > { %v7115_v1 = vpop.permute.xlu0 %7114  ;;  %v7109_v9 = vpop.permute.xlu1 %7108 }
0x1679   : > { %v7129_v3 = vsel %vm1728_vm11, %v7127_v15, %v7115_v1  ;;  %v7122_v63 = vsel %vm1728_vm11, %v7120_v4, %v7109_v9 }
0x167a   : > { %v7130_v26 = vsel %vm1063_vm8, %v7122_v63, 0  ;;  %8624 = vmatprep.subr.msk.bf16.mxu1 %vm1063_vm8, %v7129_v3 }
0x167b   : > { %7135 = vmatpush1.bf16.msra.mxu1 %v7130_v26  ;;  %v12171_v26 = vld [vmem:[#allocation28_spill] sm:$0xff] }
0x167c   : > { %9036 = vmatprep.subr.bf16.mxu1 %v9452_v2 }
0x167e   : > { %8625 = vmatmul.mubr.msk.bf16.vlgmr.msra.gmra.mrb[28].mxu1 %vm957_vm4, %v10194_v46  ;;  %v9456_v46 = vld [vmem:[#allocation9 + $0x10] sm:$0xff]  }
0x167f   : > { %9037 = vmatpush3.bf16.msra.mxu1 %v9452_v2  ;;  %9040 = vmatprep.mubr.msk.bf16.mxu1 %vm1721_vm9, %v7351_v54 }
0x1680   : > { %9038 = vmatprep.subr.bf16.mxu1 %v9453_v23 }
0x1683   : > { %9039 = vmatpush3.bf16.msra.mxu1 %v9453_v23 }
0x1684   : > { %9048 = vmatprep.subr.bf16.mxu1 %v9454_v5 }
0x1686   : > { %9041 = vmatmul.mubr.msk.bf16.vlgmr.msra.gmra.mrb[32].mxu1 %vm1721_vm9, %v7352_v47 }
0x1687   : > { %9044 = vmatprep.mubr.msk.bf16.mxu1 %vm1721_vm9, %v7353_v59  ;;  %9049 = vmatpush3.bf16.msra.mxu1 %v9454_v5 }
0x1688   : > { %9050 = vmatprep.subr.bf16.mxu1 %v9455_v31 }
0x168b   : > { %9051 = vmatpush3.bf16.msra.mxu1 %v9455_v31 }
0x168c   : > { %9060 = vmatprep.subr.bf16.mxu1 %v9456_v46 }
0x168e   : > { %9045 = vmatmul.mubr.msk.bf16.gmra.mrb[36].mxu1 %vm1721_vm9, %v7354_v41 }
0x168f   : > { %9052 = vmatprep.mubr.msk.bf16.mxu1 %vm1721_vm9, %v11403_v38  ;;  %v12167_v38 = vpack.c.bf16 %v11755_v45, %v11753_v36 }
0x1696   : > { %9053 = vmatmul.mubr.msk.bf16.vlgmr.msra.gmra.mrb[32].mxu1 %vm1721_vm9, %v11401_v62  ;;  %v9460_v62 = vld [vmem:[#allocation9 + $0x20] sm:$0xff]  }
0x1697   : > { %9056 = vmatprep.mubr.msk.bf16.mxu1 %vm1721_vm9, %v11417_v18  ;;  %9061 = vmatpush3.bf16.msra.mxu1 %v9456_v46 }
0x1698   : > { %9062 = vmatprep.subr.bf16.mxu1 %v9457_v58 }
0x169b   : > { %9063 = vmatpush3.bf16.msra.mxu1 %v9457_v58 }
0x169c   : > { %9072 = vmatprep.subr.bf16.mxu1 %v9458_v17 }
0x169e   : > { %9057 = vmatmul.mubr.msk.bf16.gmra.mrb[36].mxu1 %vm1721_vm9, %v11415_v33 }
0x169f   : > { %9064 = vmatprep.mubr.msk.bf16.mxu1 %vm1721_vm9, %v11186_v25  ;;  %v9461_v25 = vld [vmem:[#allocation9 + $0x28] sm:$0xff]  }
0x16a6   : > { %9065 = vmatmul.mubr.msk.bf16.vlgmr.msra.gmra.mrb[32].mxu1 %vm1721_vm9, %v11184_v20  ;;  %v12168_v20 = vpack.c.bf16 %v11759_v16, %v11757_v50 }
0x16a7   : > { %9068 = vmatprep.mubr.msk.bf16.mxu1 %vm1721_vm9, %v11188_v32  ;;  %9073 = vmatpush3.bf16.msra.mxu1 %v9458_v17  ;;  %v12169_v32 = vpack.c.bf16 %v11763_v8, %v11761_v24 }
0x16a8   : > { %9074 = vmatprep.subr.bf16.mxu1 %v9459_v22 }
0x16ab   : > { %9075 = vmatpush3.bf16.msra.mxu1 %v9459_v22 }
0x16ac   : > { %9084 = vmatprep.subr.bf16.mxu1 %v9460_v62 }
0x16ae   : > { %9069 = vmatmul.mubr.msk.bf16.gmra.mrb[36].mxu1 %vm1721_vm9, %v11190_v48  ;;  %v12170_v48 = vpack.c.bf16 %v11767_v11, %v11765_v61 }
0x16af   : > { %9076 = vmatprep.mubr.msk.bf16.mxu1 %vm1721_vm9, %v12167_v38 }
0x16b6   : > { %9077 = vmatmul.mubr.msk.bf16.vlgmr.msra.gmra.mrb[32].mxu1 %vm1721_vm9, %v12168_v20 }
0x16b7   : > { %9080 = vmatprep.mubr.msk.bf16.mxu1 %vm1721_vm9, %v12169_v32  ;;  %9085 = vmatpush3.bf16.msra.mxu1 %v9460_v62 }
0x16b8   : > { %9086 = vmatprep.subr.bf16.mxu1 %v9461_v25 }
0x16bb   : > { %9087 = vmatpush3.bf16.msra.mxu1 %v9461_v25 }
0x16be   : > { %9081 = vmatmul.mubr.msk.bf16.gmra.mrb[36].mxu1 %vm1721_vm9, %v12170_v48 }
0x16bf   : > { %9088 = vmatprep.mubr.msk.bf16.mxu1 %vm1721_vm9, %v11505_v12 }
0x16c6   : > { %9089 = vmatmul.mubr.msk.bf16.vlgmr.msra.gmra.mrb[32].mxu1 %vm1721_vm9, %v11513_v30  ;;  %v9462_v30 = vld [vmem:[#allocation11 + $0x20] sm:$0xff]  }
0x16c7   : > { %9092 = vmatprep.mubr.msk.bf16.mxu1 %vm1721_vm9, %v11550_v40  ;;  %9096 = vmatprep.subr.bf16.mxu1 %v9462_v30 }
0x16c8   : > { %9097 = vmatpush3.bf16.msra.mxu1 %v9462_v30 }
0x16ce   : > { %9093 = vmatmul.mubr.msk.bf16.gmra.mrb[36].mxu1 %vm1721_vm9, %v11596_v56 }
0x1751   : > { %v7168_v33 = vpop.f32.mrb[28].mxu1 }
0x1752   : > { %v7169_v18 = vadd.f32 %v7168_v33, %v10472_v27  ;;  %v7170_v36 = vpop.f32.mrb[29].mxu1  ;;  %v9463_v27 = vld [vmem:[#allocation11 + $0x28] sm:$0xff]  }
0x1753   : > { %v7172_v45 = vpop.f32.mrb[30].mxu1  ;;  %v7171_v12 = vadd.f32 %v7170_v36, %v10482_v60  ;;  %9098 = vmatprep.subr.bf16.mxu1 %v9463_v27 }
0x1754   : > { %7179 = vrot.lane.b32.xlu0 %v7169_v18, %s9763_s13  ;;  %7176 = vrot.lane.b32.xlu1 %v7169_v18, %s9764_s16  ;;  %v7173_v50 = vpop.f32.mrb[31].mxu1 }
0x1755   : > { %9099 = vmatpush3.bf16.msra.mxu1 %v9463_v27 }
0x1758   : > { %7186 = vrot.lane.b32.xlu0 %v7171_v12, %s9764_s16  ;;  %7182 = vrot.lane.b32.xlu1 %v7169_v18, %s9762_s29 }
0x175c   : > { %7192 = vrot.lane.b32.xlu0 %v7171_v12, %s9762_s29  ;;  %7189 = vrot.lane.b32.xlu1 %v7171_v12, %s9763_s13 }
0x1760   : > { %7950 = vrot.lane.b32.xlu0 %v11084_v57, %s9762_s29  ;;  %7948 = vrot.lane.b32.xlu1 %v11082_v14, %s9762_s29 }
0x1764   : > { %7954 = vrot.lane.b32.xlu0 %v11088_v51, %s9762_s29  ;;  %7952 = vrot.lane.b32.xlu1 %v11086_v28, %s9762_s29 }
0x1768   : > { %7958 = vrot.lane.b32.xlu0 %v11092_v35, %s9762_s29  ;;  %7956 = vrot.lane.b32.xlu1 %v11090_v39, %s9762_s29 }
0x176c   : > { %7962 = vrot.lane.b32.xlu0 %v11096_v52, %s9762_s29  ;;  %7960 = vrot.lane.b32.xlu1 %v11094_v44, %s9762_s29 }
0x17c6   : > { %v7180_v60 = vpop.permute.xlu0 %7179  ;;  %v7177_v14 = vpop.permute.xlu1 %7176 }
0x17c7   : > { %v7195_v51 = vcombine.low %v7169_v18, %v7180_v60  ;;  %v7196_v28 = vcombine.high %v7169_v18, %v7180_v60 }
0x17c9   : > { %v7203_v39 = vrot.slane %v7195_v51, %v10089_v19  ;;  %v7210_v13 = vrot.slane %v7196_v28, %v10089_v19 }
0x17ca   : > { %v7187_v57 = vpop.permute.xlu0 %7186  ;;  %v7183_v40 = vpop.permute.xlu1 %7182 }
0x17cb   : > { %v7211_v56 = vcombine.low %v7177_v14, %v7183_v40  ;;  %v7212_v16 = vcombine.high %v7177_v14, %v7183_v40 }
0x17cd   : > { %v7219_v24 = vrot.slane %v7211_v56, %v10089_v19  ;;  %v7226_v61 = vrot.slane %v7212_v16, %v10089_v19 }
0x17ce   : > { %v7193_v35 = vpop.permute.xlu0 %7192  ;;  %v7190_v8 = vpop.permute.xlu1 %7189 }
0x17cf   : > { %v7243_v52 = vcombine.low %v7187_v57, %v7193_v35  ;;  %v7244_v11 = vcombine.high %v7187_v57, %v7193_v35  ;;  %v7227_v10 = vcombine.low %v7171_v12, %v7190_v8  ;;  %v7228_v44 = vcombine.high %v7171_v12, %v7190_v8 }
0x17d0   : > { %v7259_v29 = vcombine.low %v7203_v39, %v7219_v24  ;;  %v7260_v7 = vcombine.high %v7203_v39, %v7219_v24  ;;  %v7275_v1 = vcombine.low %v7210_v13, %v7226_v61  ;;  %v7276_v54 = vcombine.high %v7210_v13, %v7226_v61 }
0x17d1   : > { %v7251_v42 = vrot.slane %v7243_v52, %v10089_v19  ;;  %v7258_v34 = vrot.slane %v7244_v11, %v10089_v19  ;;  %v7235_v15 = vrot.slane %v7227_v10, %v10089_v19  ;;  %v7242_v4 = vrot.slane %v7228_v44, %v10089_v19 }
0x17d2   : > { %v7267_v23 = vrot.slane %v7259_v29, %v12171_v26  ;;  %v7274_v5 = vrot.slane %v7260_v7, %v12171_v26  ;;  %v7283_v46 = vrot.slane %v7275_v1, %v12171_v26  ;;  %v7290_v38 = vrot.slane %v7276_v54, %v12171_v26  ;;  %v7951_v54 = vpop.permute.xlu0 %7950 }
0x17d3   : > { %v7291_v9 = vcombine.low %v7235_v15, %v7251_v42  ;;  %v7292_v2 = vcombine.high %v7235_v15, %v7251_v42  ;;  %v7307_v3 = vcombine.low %v7242_v4, %v7258_v34  ;;  %v7308_v63 = vcombine.high %v7242_v4, %v7258_v34 }
0x17d5   : > { %v7299_v47 = vrot.slane %v7291_v9, %v12171_v26  ;;  %v7306_v31 = vrot.slane %v7292_v2, %v12171_v26  ;;  %v7315_v59 = vrot.slane %v7307_v3, %v12171_v26  ;;  %v7322_v41 = vrot.slane %v7308_v63, %v12171_v26 }
0x17d7   : > { %v7323_v58 = vcombine.low %v7267_v23, %v7299_v47  ;;  %v7324_v17 = vcombine.high %v7267_v23, %v7299_v47  ;;  %v7325_v22 = vcombine.low %v7274_v5, %v7306_v31  ;;  %v7326_v62 = vcombine.high %v7274_v5, %v7306_v31  ;;  %v7949_v23 = vpop.permute.xlu1 %7948  ;;  %v7955_v47 = vpop.permute.xlu0 %7954 }
0x17d8   : > { %v7327_v25 = vcombine.low %v7283_v46, %v7315_v59  ;;  %v7328_v20 = vcombine.high %v7283_v46, %v7315_v59  ;;  %v7329_v50 = vcombine.low %v7290_v38, %v7322_v41  ;;  %v7330_v12 = vcombine.high %v7290_v38, %v7322_v41 }
0x17d9   : > { %v7331_v32 = vmul.f32 2.0, %v7323_v58  ;;  %v7332_v48 = vmul.f32 2.0, %v7324_v17  ;;  %v7333_v33 = vmul.f32 2.0, %v7325_v22  ;;  %v7334_v18 = vmul.f32 2.0, %v7326_v62  ;;  %v12173_v58 = vld [vmem:[#allocation29_spill] sm:$0xff] }
0x17da   : > { %v7335_v36 = vmul.f32 2.0, %v7327_v25  ;;  %v7336_v45 = vmul.f32 2.0, %v7328_v20  ;;  %v7337_v16 = vmul.f32 2.0, %v7329_v50  ;;  %v7338_v28 = vmul.f32 2.0, %v7330_v12  ;;  %v12174_v25 = vld [vmem:[#allocation30_spill] sm:$0xff] }
0x17db   : > { %v7341_v30 = vsub.f32 %v7333_v33, %v11658_v53  ;;  %v7342_v27 = vsub.f32 %v7334_v18, %v11678_v37  ;;  %v7339_v60 = vsub.f32 %v7331_v32, %v11668_v55  ;;  %v7340_v14 = vsub.f32 %v7332_v48, %v11688_v49  ;;  %v7953_v5 = vpop.permute.xlu1 %7952  ;;  %v7959_v59 = vpop.permute.xlu0 %7958 }
0x17dc   : > { %v7343_v57 = vsub.f32 %v7335_v36, %v11672_v43  ;;  %v7344_v40 = vsub.f32 %v7336_v45, %v11692_v21  ;;  %v7345_v53 = vsub.f32 %v7337_v16, %v11662_v6  ;;  %v7346_v55 = vsub.f32 %v7338_v28, %v11682_v0  ;;  %v8662_v43 = vld [vmem:[%s12172_s30] ss:$0 sm:$0xff]  ;;  %v12175_v36 = vld [vmem:[#allocation31_spill] sm:$0xff]  ;;  %v12177_v16 = vld [vmem:[#allocation36_spill] sm:$0xff] }
0x17dd   : > { %v7812_v51 = vpack.c.bf16 %v7342_v27, %v7341_v30  ;;  %v7811_v56 = vpack.c.bf16 %v7340_v14, %v7339_v60  ;;  %v7982_v17 = vsub.f32 1.0, %v12173_v58  ;;  %v7974_v62 = vmul.f32 %v12173_v58, %v7953_v5  ;;  %v12176_v60 = vld [vmem:[#allocation32_spill] sm:$0xff] }
0x17de   : > { %v7813_v24 = vpack.c.bf16 %v7344_v40, %v7343_v57  ;;  %v7814_v37 = vpack.c.bf16 %v7346_v55, %v7345_v53  ;;  %v7983_v20 = vsub.f32 1.0, %v12174_v25  ;;  %v7975_v48 = vmul.f32 %v12174_v25, %v7955_v47 }
0x17df   : > { %9100 = vmatprep.mubr.msk.bf16.mxu1 %vm1721_vm9, %v7811_v56  ;;  %v7957_v31 = vpop.permute.xlu1 %7956  ;;  %v7963_v41 = vpop.permute.xlu0 %7962  ;;  %v7980_v45 = vsub.f32 1.0, %v12175_v36  ;;  %v7972_v12 = vmul.f32 %v12175_v36, %v7949_v23  ;;  %v7981_v14 = vsub.f32 1.0, %v12176_v60  ;;  %v7973_v40 = vmul.f32 %v12176_v60, %v7951_v54 }
0x17e0   : > { %9101 = vmatmul.mubr.msk.bf16.vlgmr.msra.gmra.mrb[32].mxu1 %vm1721_vm9, %v7812_v51  ;;  %v7984_v28 = vsub.f32 1.0, %v12177_v16  ;;  %v7976_v55 = vmul.f32 %v12177_v16, %v7957_v31 }
0x17e1   : > { %9104 = vmatprep.mubr.msk.bf16.mxu1 %vm1721_vm9, %v7813_v24 }
0x17e3   : > { %v7961_v46 = vpop.permute.xlu1 %7960 }
0x17e8   : > { %9105 = vmatmul.mubr.msk.bf16.gmra.mrb[36].mxu1 %vm1721_vm9, %v7814_v37 }
0x18b3   : > { %v9102_v49 = vpop.f32.mrb[32].mxu1 }
0x18b4   : > { %v7926_v21 = vadd.f32 %v9102_v49, %v8662_v43  ;;  %v7878_v35 = vpop.f32.mrb[33].mxu1 }
0x18b5   : > { %v9103_v8 = vpop.f32.mrb[34].mxu1  ;;  %v7924_v39 = vadd.f32 %v8662_v43, %v7878_v35 }
0x18b6   : > { %9544 = vtanh.f32 %v7926_v21  ;;  %v7927_v61 = vadd.f32 %v9103_v8, %v8662_v43  ;;  %v7881_v52 = vpop.f32.mrb[35].mxu1 }
0x18b7   : > { %v7925_v11 = vadd.f32 %v8662_v43, %v7881_v52 }
0x18b8   : > { %9546 = vtanh.f32 %v7927_v61  ;;  %v12179_v61 = vld [vmem:[#allocation34_spill] sm:$0xff] }
0x18b9   : > { %9548 = vtanh.f32 %v7924_v39  ;;  %v7986_v52 = vsub.f32 1.0, %v12179_v61 }
0x18ba   : > { %9550 = vtanh.f32 %v7925_v11 }
0x18bb   : > { %v9106_v6 = vpop.f32.mrb[36].mxu1 }
0x18bc   : > { %v7894_v0 = vpop.f32.mrb[37].mxu1  ;;  %v7930_v29 = vadd.f32 %v9106_v6, %v8662_v43  ;;  %v7978_v6 = vmul.f32 %v12179_v61, %v7961_v46 }
0x18bd   : > { %v7928_v10 = vadd.f32 %v8662_v43, %v7894_v0  ;;  %v9107_v44 = vpop.f32.mrb[38].mxu1 }
0x18be   : > { %v7897_v13 = vpop.f32.mrb[39].mxu1  ;;  %v7931_v34 = vadd.f32 %v9107_v44, %v8662_v43  ;;  %v12180_v44 = vld [vmem:[#allocation33_spill] sm:$0xff] }
0x18bf   : > { %9552 = vtanh.f32 %v7928_v10  ;;  %v7929_v7 = vadd.f32 %v8662_v43, %v7897_v13  ;;  %v12178_v43 = vld [vmem:[#allocation35_spill] sm:$0xff]  ;;  %v7987_v13 = vsub.f32 1.0, %v12180_v44 }
0x18c0   : > { %v9545_v42 = vpop.eup %9544  ;;  %v7985_v49 = vsub.f32 1.0, %v12178_v43  ;;  %v7977_v35 = vmul.f32 %v12178_v43, %v7959_v59 }
0x18c1   : > { %9554 = vtanh.f32 %v7929_v7  ;;  %8000 = vrot.lane.b32.xlu1 %v9545_v42, %s9762_s29  ;;  %v7979_v7 = vmul.f32 %v12180_v44, %v7963_v41 }
0x18c2   : > { %v9547_v15 = vpop.eup %9546  ;;  %9556 = vtanh.f32 %v7930_v29 }
0x18c3   : > { %8002 = vrot.lane.b32.xlu0 %v9547_v15, %s9762_s29  ;;  %v9549_v4 = vpop.eup %9548  ;;  %9558 = vtanh.f32 %v7931_v34 }
0x18c4   : > { %v9551_v1 = vpop.eup %9550 }
0x18c5   : > { %7996 = vrot.lane.b32.xlu1 %v9549_v4, %s9762_s29 }
0x18c7   : > { %7998 = vrot.lane.b32.xlu0 %v9551_v1, %s9762_s29 }
0x18c9   : > { %v9553_v9 = vpop.eup %9552 }
0x18ca   : > { %8004 = vrot.lane.b32.xlu1 %v9553_v9, %s9762_s29 }
0x18cb   : > { %v9555_v2 = vpop.eup %9554 }
0x18cc   : > { %8006 = vrot.lane.b32.xlu0 %v9555_v2, %s9762_s29  ;;  %v9557_v3 = vpop.eup %9556 }
0x18cd   : > { %v9559_v63 = vpop.eup %9558 }
0x18ce   : > { %8008 = vrot.lane.b32.xlu1 %v9557_v3, %s9762_s29 }
0x18d0   : > { %8010 = vrot.lane.b32.xlu0 %v9559_v63, %s9762_s29  ;;  %s8214_s29 = scalar_lea.sflag [#allocation4], %s10056_s5 }
0x1933   : > { %v8001_v22 = vpop.permute.xlu1 %8000 }
0x1934   : > { %v8022_v38 = vmul.f32 %v8001_v22, %v7982_v17 }
0x1935   : > { %v8003_v32 = vpop.permute.xlu0 %8002 }
0x1936   : > { %v8030_v33 = vadd.f32 %v8022_v38, %v7974_v62  ;;  %v8023_v18 = vmul.f32 %v8003_v32, %v7983_v20 }
0x1937   : > { %v7997_v50 = vpop.permute.xlu1 %7996 }
0x1938   : > { %v8031_v30 = vadd.f32 %v8023_v18, %v7975_v48  ;;  %v8020_v27 = vmul.f32 %v7997_v50, %v7980_v45  ;;  %8048 = vrot.lane.b32.xlu1 %v8030_v33, %s9764_s16 }
0x1939   : > { %v7999_v57 = vpop.permute.xlu0 %7998 }
0x193a   : > { %v8028_v51 = vadd.f32 %v8020_v27, %v7972_v12  ;;  %v8021_v56 = vmul.f32 %v7999_v57, %v7981_v14  ;;  %8050 = vrot.lane.b32.xlu0 %v8031_v30, %s9764_s16 }
0x193c   : > { %v8029_v24 = vadd.f32 %v8021_v56, %v7973_v40  ;;  %8044 = vrot.lane.b32.xlu1 %v8028_v51, %s9764_s16  ;;  %v8005_v53 = vpop.permute.xlu1 %8004 }
0x193d   : > { %v8024_v37 = vmul.f32 %v8005_v53, %v7984_v28 }
0x193e   : > { %8046 = vrot.lane.b32.xlu0 %v8029_v24, %s9764_s16  ;;  %v8007_v21 = vpop.permute.xlu0 %8006 }
0x193f   : > { %v8032_v8 = vadd.f32 %v8024_v37, %v7976_v55  ;;  %v8025_v39 = vmul.f32 %v8007_v21, %v7985_v49 }
0x1940   : > { %v8009_v11 = vpop.permute.xlu1 %8008 }
0x1941   : > { %v8033_v0 = vadd.f32 %v8025_v39, %v7977_v35  ;;  %v8026_v10 = vmul.f32 %v8009_v11, %v7986_v52  ;;  %8052 = vrot.lane.b32.xlu1 %v8032_v8, %s9764_s16 }
0x1942   : > { %v8011_v29 = vpop.permute.xlu0 %8010 }
0x1943   : > { %v8034_v42 = vadd.f32 %v8026_v10, %v7978_v6  ;;  %v8027_v34 = vmul.f32 %v8011_v29, %v7987_v13  ;;  %8054 = vrot.lane.b32.xlu0 %v8033_v0, %s9764_s16 }
0x1945   : > { %v8035_v15 = vadd.f32 %v8027_v34, %v7979_v7  ;;  %8056 = vrot.lane.b32.xlu1 %v8034_v42, %s9764_s16 }
0x1947   : > { %8058 = vrot.lane.b32.xlu0 %v8035_v15, %s9764_s16 }
0x19aa   : > { %v8049_v4 = vpop.permute.xlu1 %8048 }
0x19ac   : > { %v8051_v1 = vpop.permute.xlu0 %8050 }
0x19ae   : > { %v8045_v9 = vpop.permute.xlu1 %8044 }
0x19af   : > { %v8068_v23 = vcombine.low %v8045_v9, %v8049_v4  ;;  %v8069_v47 = vcombine.high %v8045_v9, %v8049_v4 }
0x19b0   : > { %v8047_v2 = vpop.permute.xlu0 %8046 }
0x19b1   : > { %v8084_v3 = vcombine.low %v8047_v2, %v8051_v1  ;;  %v8085_v54 = vcombine.high %v8047_v2, %v8051_v1  ;;  %v8076_v58 = vrot.slane %v8068_v23, %v10089_v19  ;;  %v8083_v25 = vrot.slane %v8069_v47, %v10089_v19 }
0x19b3   : > { %v8053_v63 = vpop.permute.xlu1 %8052  ;;  %v8092_v31 = vrot.slane %v8084_v3, %v10089_v19  ;;  %v8099_v17 = vrot.slane %v8085_v54, %v10089_v19 }
0x19b5   : > { %v8055_v5 = vpop.permute.xlu0 %8054  ;;  %v8132_v20 = vcombine.low %v8076_v58, %v8092_v31  ;;  %v8133_v32 = vcombine.high %v8076_v58, %v8092_v31  ;;  %v8148_v45 = vcombine.low %v8083_v25, %v8099_v17  ;;  %v8149_v50 = vcombine.high %v8083_v25, %v8099_v17 }
0x19b7   : > { %v8057_v59 = vpop.permute.xlu1 %8056  ;;  %v8140_v14 = vrot.slane %v8132_v20, %v12171_v26  ;;  %v8147_v57 = vrot.slane %v8133_v32, %v12171_v26  ;;  %v8156_v16 = vrot.slane %v8148_v45, %v12171_v26  ;;  %v8163_v28 = vrot.slane %v8149_v50, %v12171_v26 }
0x19b8   : > { %v8100_v46 = vcombine.low %v8053_v63, %v8057_v59  ;;  %v8101_v41 = vcombine.high %v8053_v63, %v8057_v59 }
0x19b9   : > { %v8059_v22 = vpop.permute.xlu0 %8058 }
0x19ba   : > { %v8116_v62 = vcombine.low %v8055_v5, %v8059_v22  ;;  %v8117_v38 = vcombine.high %v8055_v5, %v8059_v22  ;;  %v8108_v48 = vrot.slane %v8100_v46, %v10089_v19  ;;  %v8115_v33 = vrot.slane %v8101_v41, %v10089_v19 }
0x19bc   : > { %v8124_v18 = vrot.slane %v8116_v62, %v10089_v19  ;;  %v8131_v36 = vrot.slane %v8117_v38, %v10089_v19 }
0x19be   : > { %v8164_v12 = vcombine.low %v8108_v48, %v8124_v18  ;;  %v8165_v30 = vcombine.high %v8108_v48, %v8124_v18  ;;  %v8180_v27 = vcombine.low %v8115_v33, %v8131_v36  ;;  %v8181_v60 = vcombine.high %v8115_v33, %v8131_v36 }
0x19c0   : > { %v8172_v40 = vrot.slane %v8164_v12, %v12171_v26  ;;  %v8179_v51 = vrot.slane %v8165_v30, %v12171_v26  ;;  %v8188_v19 = vrot.slane %v8180_v27, %v12171_v26  ;;  %v8195_v56 = vrot.slane %v8181_v60, %v12171_v26 }
0x19c2   : > { %v8196_v24 = vcombine.low %v8140_v14, %v8172_v40  ;;  %v8197_v53 = vcombine.high %v8140_v14, %v8172_v40  ;;  %v8198_v55 = vcombine.low %v8147_v57, %v8179_v51  ;;  %v8199_v37 = vcombine.high %v8147_v57, %v8179_v51 }
0x19c3   : > { %v8200_v43 = vcombine.low %v8156_v16, %v8188_v19  ;;  %v8201_v49 = vcombine.high %v8156_v16, %v8188_v19  ;;  %v8202_v21 = vcombine.low %v8163_v28, %v8195_v56  ;;  %v8203_v35 = vcombine.high %v8163_v28, %v8195_v56 }
0x19c4   : > { %8663 = vst.msk [vmem:[%s11618_s27 + $0x40] sm:$0xff] %vm1721_vm9, %v8196_v24  ;;  %8664 = vst.msk [vmem:[%s11618_s27 + $0x48] sm:$0xff] %vm1721_vm9, %v8197_v53 }
0x19c5   : > { %8665 = vst.msk [vmem:[%s11618_s27 + $0x50] sm:$0xff] %vm1721_vm9, %v8198_v55  ;;  %8666 = vst.msk [vmem:[%s11618_s27 + $0x58] sm:$0xff] %vm1721_vm9, %v8199_v37 }
0x19c6   : > { %8667 = vst.msk [vmem:[%s11618_s27 + $0x60] sm:$0xff] %vm1721_vm9, %v8200_v43  ;;  %8668 = vst.msk [vmem:[%s11618_s27 + $0x68] sm:$0xff] %vm1721_vm9, %v8201_v49 }
0x19c7   : > { %8669 = vst.msk [vmem:[%s11618_s27 + $0x70] sm:$0xff] %vm1721_vm9, %v8202_v21  ;;  %8670 = vst.msk [vmem:[%s11618_s27 + $0x78] sm:$0xff] %vm1721_vm9, %v8203_v35 }
0x19c8   : > { %s12181_s16 = sld [smem:[#allocation26_spill]]  ;;  %s8677_s28 = sshll.u32 %s9872_s22, 10 }
0x19c9   : > { %s8243_s14 = sshll.u32 %s11618_s27, 4  ;;  %s12182_s18 = sld [smem:[#allocation43_spill]]  ;;  %s8244_s14 = int_to_ptr.vmem [resolvable:$true] %s8243_s14 }
0x19ca   : > { %s9765_s8 = smov 1024   ;;  %s9766_s5 = smov 2048  }
0x19cb   : > { %s9767_s6 = smov 8   ;;  %s9768_s13 = smov 128  }
0x19cc   : > { %s9769_s22 = smov [#allocation15]   ;;  %s9770_s27 = smov 0  }
0x19ce   : > { %p12183_p9 = scmp.ne.s32.totalorder %s12181_s16, 0 }
0x19cf   : > { %s8226_s9 = scalar_lea.hbm %s12182_s18, %s8677_s28 }
0x19d0   : > { %9299 = sst [smem:[#allocation16]] (%p12183_p9), %s9765_s8 }
0x19d1   : > { %9300 = sst [smem:[#allocation16 + $0x1]] (%p12183_p9), %s9766_s5 }
0x19d2   : > { %9301 = sst [smem:[#allocation16 + $0x2]] (%p12183_p9), %s9767_s6 }
0x19d3   : > { %9302 = sst [smem:[#allocation16 + $0x3]] (%p12183_p9), %s9768_s13 }
0x19d4   : > { %9303 = sst [smem:[#allocation16 + $0x4]] (%p12183_p9), %s9768_s13 }
0x19d5   : > { %9304 = sst [smem:[#allocation16 + $0x5]] (%p12183_p9), %s9767_s6 }
0x19d6   : > { %9305 = dma.general (%p12183_p9), %s8244_s14, 2048, %s8226_s9, %s8214_s29, %s9769_s22, [#allocation16], %s9770_s27, 0  }
0x19d7 PF: > { %s12184_s24 = sld [smem:[#allocation23_spill]]  ;;  %s12185_s30 = sld [smem:[#allocation27_spill]] }
0x19dd   : > { %s8271_s28 = sand.u32 1, %s12184_s24   ;;  %p12186_p10 = scmp.ne.s32.totalorder %s12185_s30, 0 }
0x19de   : > { %s8272_s17 = scalar_lea.sflag [#allocation4], %s8271_s28 }
0x19df   : > { %p9321_p1 = pnand %p8393_p4, %p12186_p10 }
0x19e1   : > { %9713 = dma.done.wait (!%p9321_p1), %s8272_s17, 2048  }
0x19e2   : > { %9715 = vsyncadd (!%p9321_p1), %s8272_s17, 4294965248  ;;  %s12187_s21 = sld [smem:[#allocation24_spill]]  ;;  %s12188_s25 = sld [smem:[#allocation25_spill]] }
0x19e3   : > { %s12189_s18 = smov %s9722_s19  ;;  %s12190_s19 = smov %s9726_s20 }
0x19e8   : > { %p30_p3 = scmp.ge.s32.totalorder %s12187_s21, 4   ;;  %s12191_s20 = smov %s12188_s25 }
0x19ea   :  { %32 = sbr.rel (!%p30_p3) target bundleno = 15 (0xf), region = 216 }
0x19f1   :  { %8277 = vsyncpa [#allocation3], 1 }
0x19f2   :  { %8279 = vsyncpa [#allocation3 + $0x1], 1 }
0x19f3   :  { %8280 = vsyncpa [#allocation7], 1 }
0x19f4   :  { %8282 = vsyncpa [#allocation7 + $0x1], 1 }
0x19f5   :  { %8283 = vsyncpa [#allocation10], 1 }
0x19f6   :  { %8284 = vsyncpa [#allocation4], 1 }
0x19f7   :  { %8286 = vsyncpa [#allocation4 + $0x1], 1 }

</bundles_post_ra>
